<compile_context>
chip_gen: v7x
topology: tpu7x:2x2x1
jax: 0.10.0
libtpu: 0.0.40
codegen_flags: <defaults>
</compile_context>

<pallas_src>
import functools
import math

import jax
import jax.numpy as jnp
from jax.experimental import pallas as pl
from jax.experimental.pallas import tpu as pltpu

LANE = 128
_VMEM_LIMIT = 48 * 1024 * 1024  # <= v7x 64 MiB physical; plenty on v5e/v6e.


def _round_up(x, m):
    return (x + m - 1) // m * m


def _pad_to(a, shape):
    return jnp.pad(a, [(0, s - d) for d, s in zip(a.shape, shape)])


# ---------------------------------------------------------------------------
# GraphConv layer kernel:  out = relu?( h @ Wr + (A @ h) @ Wn + b )
# grid = (N/TM, N/TK); axis 1 reduces over adjacency column tiles.
# A is streamed as int8 (TM, TK) tiles; h / weights are VMEM-resident.
# ---------------------------------------------------------------------------
def _graphconv_kernel(a_ref, h_ref, wr_ref, wn_ref, b_ref, out_ref, acc_ref,
                      *, relu):
    i = pl.program_id(0)
    k = pl.program_id(1)
    tm = out_ref.shape[0]
    tk = a_ref.shape[1]

    @pl.when(k == 0)
    def _():
        acc_ref[...] = jnp.zeros_like(acc_ref)

    # Neighbor aggregation: acc[i_tile] += A[i_tile, k_tile] @ h[k_tile].
    # int8 -> bf16 widening on the VPU (free: the kernel is A-DMA-bound);
    # the int8 dequant scale was folded into Wn outside the kernel.
    a = a_ref[...].astype(jnp.float32).astype(h_ref.dtype)
    h_k = h_ref[pl.ds(pl.multiple_of(k * tk, LANE), tk), :]
    acc_ref[...] += jnp.dot(a, h_k, preferred_element_type=jnp.float32)

    @pl.when(k == pl.num_programs(1) - 1)
    def _():
        # Root term read from the resident h (no second streamed h input),
        # separate Wr / Wn dots (no lane-axis concat relayout).
        h_root = h_ref[pl.ds(pl.multiple_of(i * tm, LANE), tm), :]
        agg = acc_ref[...].astype(wn_ref.dtype)  # f32 -> bf16 before MXU
        out = (jnp.dot(h_root, wr_ref[...], preferred_element_type=jnp.float32)
               + jnp.dot(agg, wn_ref[...], preferred_element_type=jnp.float32)
               + b_ref[...])
        if relu:
            out = jnp.maximum(out, 0.0)
        out_ref[...] = out.astype(out_ref.dtype)


def graphconv_layer(adj_q, h, wr, wn, b, *, relu, tm, tk,
                    out_dtype=jnp.bfloat16):
    n_pad = adj_q.shape[0]
    c_in = h.shape[1]
    c_out = wr.shape[1]
    grid = (n_pad // tm, n_pad // tk)
    kernel = functools.partial(_graphconv_kernel, relu=relu)
    return pl.pallas_call(
        kernel,
        out_shape=jax.ShapeDtypeStruct((n_pad, c_out), out_dtype),
        grid_spec=pltpu.PrefetchScalarGridSpec(
            num_scalar_prefetch=0,
            grid=grid,
            in_specs=[
                pl.BlockSpec((tm, tk), lambda i, k: (i, k)),        # A tile (int8 stream)
                pl.BlockSpec((n_pad, c_in), lambda i, k: (0, 0)),   # h fully resident
                pl.BlockSpec((c_in, c_out), lambda i, k: (0, 0)),   # Wr resident
                pl.BlockSpec((c_in, c_out), lambda i, k: (0, 0)),   # Wn resident (scaled)
                pl.BlockSpec((1, c_out), lambda i, k: (0, 0)),      # bias resident
            ],
            out_specs=pl.BlockSpec((tm, c_out), lambda i, k: (i, 0)),
            scratch_shapes=[pltpu.VMEM((tm, c_in), jnp.float32)],
        ),
        compiler_params=pltpu.CompilerParams(
            dimension_semantics=("parallel", "arbitrary"),
            vmem_limit_bytes=_VMEM_LIMIT,
        ),
    )(adj_q, h, wr, wn, b)


# ---------------------------------------------------------------------------
# Predictor kernel: 2-layer MLP over [z_src || z_dst], tiled over edge rows.
# The concat is algebraically split: feat @ W1 == zs @ W1_src + zd @ W1_dst.
# ---------------------------------------------------------------------------
def _predictor_kernel(zs_ref, zd_ref, w1s_ref, w1d_ref, b1_ref, w2_ref,
                      b2_ref, o_ref):
    h = (jnp.dot(zs_ref[...], w1s_ref[...], preferred_element_type=jnp.float32)
         + jnp.dot(zd_ref[...], w1d_ref[...], preferred_element_type=jnp.float32)
         + b1_ref[...])
    h = jnp.maximum(h, 0.0).astype(w2_ref.dtype)
    o_ref[...] = (jnp.dot(h, w2_ref[...], preferred_element_type=jnp.float32)
                  + b2_ref[...])


def predictor_forward(z_src, z_dst, w1s, w1d, b1, w2, b2, *, block):
    e_pad, c = z_src.shape
    hid = w1s.shape[1]
    ncls = w2.shape[1]
    te = block
    grid = (e_pad // te,)
    return pl.pallas_call(
        _predictor_kernel,
        out_shape=jax.ShapeDtypeStruct((e_pad, ncls), jnp.float32),
        grid_spec=pltpu.PrefetchScalarGridSpec(
            num_scalar_prefetch=0,
            grid=grid,
            in_specs=[
                pl.BlockSpec((te, c), lambda i: (i, 0)),
                pl.BlockSpec((te, c), lambda i: (i, 0)),
                pl.BlockSpec((c, hid), lambda i: (0, 0)),
                pl.BlockSpec((c, hid), lambda i: (0, 0)),
                pl.BlockSpec((1, hid), lambda i: (0, 0)),
                pl.BlockSpec((hid, ncls), lambda i: (0, 0)),
                pl.BlockSpec((1, ncls), lambda i: (0, 0)),
            ],
            out_specs=pl.BlockSpec((te, ncls), lambda i: (i, 0)),
        ),
        compiler_params=pltpu.CompilerParams(
            dimension_semantics=("parallel",),
            vmem_limit_bytes=_VMEM_LIMIT,
        ),
    )(z_src, z_dst, w1s, w1d, b1, w2, b2)


# ---------------------------------------------------------------------------
# Full GCN forward (padding / adjacency build / gather are plain-JAX glue).
# ---------------------------------------------------------------------------
@functools.partial(jax.jit, static_argnames=("num_nodes", "block_nodes_m",
                                             "block_nodes_k", "block_edges"))
def gcn_forward(x, edge_index, edge_label_index, edge_weight, params, *,
                num_nodes, block_nodes_m=512, block_nodes_k=1024,
                block_edges=512):
    compute_dtype = jnp.bfloat16

    # ---- static (padded) sizes -------------------------------------------
    f_in = x.shape[1]
    hidden = params["w1r"].shape[1]
    latent = params["w3r"].shape[1]
    hidden_pred = params["wp1"].shape[1]
    n_classes = params["wp2"].shape[1]

    f_in_p = _round_up(f_in, LANE)
    hidden_p = _round_up(hidden, LANE)
    latent_p = _round_up(latent, LANE)
    hpred_p = _round_up(hidden_pred, LANE)
    ncls_p = _round_up(n_classes, LANE)

    assert block_nodes_m % LANE == 0 and block_nodes_k % LANE == 0
    assert block_edges % 8 == 0

    # Tile sizes: large streamed A tiles (TM x TK), and >= 2 row tiles whenever
    # possible so both v7x TensorCores get work on the "parallel" axis.
    n_pad0 = _round_up(num_nodes, LANE)
    tm = min(block_nodes_m, n_pad0)
    half = (n_pad0 // 2) // LANE * LANE
    if half >= LANE:
        tm = min(tm, half)
    tk = min(block_nodes_k, n_pad0)
    n_pad = _round_up(n_pad0, math.lcm(tm, tk))

    # ---- dense weighted adjacency, quantized to int8 -----------------------
    # A[dst, src] = sum of duplicate edge weights (messages flow src -> dst).
    # Scatter-add directly in bf16 (no f32 N^2 intermediate), then quantize
    # with a single per-graph scale; the dequant scale is folded into Wn.
    # TODO(synk): for realistic sparse graphs (E << N^2) replace with a
    # sorted-by-dst CSR aggregation kernel (scalar-prefetched offsets + manual
    # double-buffered DMA gather of neighbor rows).
    src, dst = edge_index[0], edge_index[1]
    adj = (jnp.zeros((n_pad, n_pad), compute_dtype)
           .at[dst, src].add(edge_weight.astype(compute_dtype)))
    a_max = jnp.maximum(jnp.max(jnp.abs(adj)).astype(jnp.float32), 1e-6)
    q_scale = 127.0 / a_max
    adj_q = jnp.clip(jnp.round(adj.astype(jnp.float32) * q_scale),
                     -127.0, 127.0).astype(jnp.int8)
    dq_scale = a_max * (1.0 / 127.0)

    # ---- encoder weights: zero-padded, bf16; dequant scale folded into Wn --
    def enc_weights(wr, wn, ci_p, co_p):
        wr_p = _pad_to(wr, (ci_p, co_p)).astype(compute_dtype)
        wn_p = (_pad_to(wn, (ci_p, co_p)).astype(jnp.float32)
                * dq_scale).astype(compute_dtype)
        return wr_p, wn_p

    w1r, w1n = enc_weights(params["w1r"], params["w1n"], f_in_p, hidden_p)
    w2r, w2n = enc_weights(params["w2r"], params["w2n"], hidden_p, hidden_p)
    w3r, w3n = enc_weights(params["w3r"], params["w3n"], hidden_p, latent_p)
    b1p = _pad_to(params["b1"], (1, hidden_p)).astype(jnp.float32)
    b2p = _pad_to(params["b2"], (1, hidden_p)).astype(jnp.float32)
    b3p = _pad_to(params["b3"], (1, latent_p)).astype(jnp.float32)

    # ---- predictor weights: W1 split into src/dst halves, re-padded --------
    wp1 = params["wp1"]                                     # [2*latent, hidden_pred]
    wp1s = _pad_to(wp1[:latent], (latent_p, hpred_p)).astype(compute_dtype)
    wp1d = _pad_to(wp1[latent:], (latent_p, hpred_p)).astype(compute_dtype)
    bp1p = _pad_to(params["bp1"], (1, hpred_p)).astype(jnp.float32)
    wp2p = _pad_to(params["wp2"], (hpred_p, ncls_p)).astype(compute_dtype)
    bp2p = _pad_to(params["bp2"], (1, ncls_p)).astype(jnp.float32)

    # ---- inputs -------------------------------------------------------------
    x_p = _pad_to(x, (n_pad, f_in_p)).astype(compute_dtype)

    # ---- encoder: 3 GraphConv layers (dropout = identity in eval mode) -----
    # h is fully VMEM-resident inside each layer (~n_pad * 128 * 2B; budget
    # comfortably below the 48 MiB VMEM limit for any graph whose dense A fits
    # in HBM at all).
    h1 = graphconv_layer(adj_q, x_p, w1r, w1n, b1p, relu=True, tm=tm, tk=tk)
    h2 = graphconv_layer(adj_q, h1, w2r, w2n, b2p, relu=True, tm=tm, tk=tk)
    z = graphconv_layer(adj_q, h2, w3r, w3n, b3p, relu=False, tm=tm, tk=tk)

    # ---- predictor: MLP over [z_src || z_dst] -------------------------------
    e_lab = edge_label_index.shape[1]
    e_pad = _round_up(e_lab, 8)
    be = min(block_edges, e_pad)
    e_pad = _round_up(e_pad, be)
    # TODO(synk): for very large E_lab fuse this endpoint gather into the
    # predictor kernel (scalar-prefetched indices + manual DMA row gather of z).
    src_idx = _pad_to(edge_label_index[0], (e_pad,))
    dst_idx = _pad_to(edge_label_index[1], (e_pad,))
    z_src = jnp.take(z, src_idx, axis=0)
    z_dst = jnp.take(z, dst_idx, axis=0)

    logits = predictor_forward(z_src, z_dst, wp1s, wp1d, bp1p, wp2p, bp2p,
                               block=be)
    return logits[:e_lab, :n_classes]


# ---------------------------------------------------------------------------
# Parameters (logical / unpadded, matching the PyTorch module).
# ---------------------------------------------------------------------------
def init_params(key, f_in, hidden_enc, latent, hidden_pred, n_classes):
    ks = jax.random.split(key, 10)

    def lin(k, fi, fo):
        return jax.random.normal(k, (fi, fo), jnp.float32) * (1.0 / jnp.sqrt(fi))

    return {
        "w1r": lin(ks[0], f_in, hidden_enc),
        "w1n": lin(ks[1], f_in, hidden_enc),
        "b1": jnp.zeros((1, hidden_enc), jnp.float32),
        "w2r": lin(ks[2], hidden_enc, hidden_enc),
        "w2n": lin(ks[3], hidden_enc, hidden_enc),
        "b2": jnp.zeros((1, hidden_enc), jnp.float32),
        "w3r": lin(ks[4], hidden_enc, latent),
        "w3n": lin(ks[5], hidden_enc, latent),
        "b3": jnp.zeros((1, latent), jnp.float32),
        "wp1": lin(ks[6], 2 * latent, hidden_pred),
        "bp1": jnp.zeros((1, hidden_pred), jnp.float32),
        "wp2": lin(ks[7], hidden_pred, n_classes),
        "bp2": jnp.zeros((1, n_classes), jnp.float32),
    }


def gcn_reference(x, edge_index, edge_label_index, edge_weight, params, num_nodes):
    src, dst = edge_index[0], edge_index[1]
    adj = jnp.zeros((num_nodes, num_nodes), jnp.float32).at[dst, src].add(edge_weight)

    def gconv(h, wr, wn, b):
        return h @ wr + (adj @ h) @ wn + b

    h1 = jax.nn.relu(gconv(x, params["w1r"], params["w1n"], params["b1"]))
    h2 = jax.nn.relu(gconv(h1, params["w2r"], params["w2n"], params["b2"]))
    z = gconv(h2, params["w3r"], params["w3n"], params["b3"])
    feat = jnp.concatenate([z[edge_label_index[0]], z[edge_label_index[1]]], axis=-1)
    h = jax.nn.relu(feat @ params["wp1"] + params["bp1"])
    return h @ params["wp2"] + params["bp2"]


if __name__ == "__main__":
    key = jax.random.PRNGKey(0)
    k_x, k_e, k_w, k_lab, k_p = jax.random.split(key, 5)

    # Small synthetic graph sized so the tiled pipeline is actually exercised:
    # N=600 -> n_pad=768 with (tm, tk)=(256, 256) -> 3x3 encoder grid
    # (2+ row tiles for megacore, 3 reduction steps over A column tiles).
    N, F_IN = 600, 8
    HIDDEN_ENC, LATENT, HIDDEN_PRED, N_CLASSES = 16, 8, 16, 2
    E, E_LAB = 2400, 40

    x = jax.random.normal(k_x, (N, F_IN), jnp.float32)
    edge_index = jax.random.randint(k_e, (2, E), 0, N, dtype=jnp.int32)
    edge_weight = jax.random.uniform(k_w, (E,), jnp.float32)
    edge_label_index = jax.random.randint(k_lab, (2, E_LAB), 0, N, dtype=jnp.int32)

    params = init_params(k_p, F_IN, HIDDEN_ENC, LATENT, HIDDEN_PRED, N_CLASSES)

    out = gcn_forward(x, edge_index, edge_label_index, edge_weight, params,
                      num_nodes=N, block_nodes_m=256, block_nodes_k=256,
                      block_edges=64)
    jax.block_until_ready(out)
    assert out.shape == (E_LAB, N_CLASSES)

    # Sanity check vs. a pure-JAX f32 reference (kernels use bf16 operands, an
    # int8-quantized adjacency and f32 accumulation, hence loose tolerances).
    ref = gcn_reference(x, edge_index, edge_label_index, edge_weight, params, N)
    err = float(jnp.max(jnp.abs(out - ref)))
    assert bool(jnp.allclose(out, ref, rtol=0.2, atol=0.25)), f"max abs err {err}"

    print("KERNEL_OK")
</pallas_src>

<mosaic_0001>
module attributes {stable_mosaic.version = 11 : i64} {
  func.func @_graphconv_kernel(%arg0: i32, %arg1: i32, %arg2: memref<256x256xi8, #tpu.memory_space<vmem>>, %arg3: memref<768x128xbf16, #tpu.memory_space<vmem>>, %arg4: memref<128x128xbf16, #tpu.memory_space<vmem>>, %arg5: memref<128x128xbf16, #tpu.memory_space<vmem>>, %arg6: memref<1x128xf32, #tpu.memory_space<vmem>>, %arg7: memref<256x128xbf16, #tpu.memory_space<vmem>>, %arg8: memref<256x128xf32, #tpu.memory_space<vmem>>) attributes {dimension_semantics = [#tpu.dimension_semantics<parallel>, #tpu.dimension_semantics<arbitrary>], iteration_bounds = array<i64: 3, 3>, scalar_prefetch = 0 : i64, scratch_operands = 1 : i64, tpu.core_type = #tpu.core_type<tc>, window_params = [{transform_indices = @transform_0, window_bounds = array<i64: 256, 256>}, {pipeline_mode = #tpu.pipeline_mode<synchronous>, transform_indices = @transform_1, window_bounds = array<i64: 768, 128>}, {pipeline_mode = #tpu.pipeline_mode<synchronous>, transform_indices = @transform_2, window_bounds = array<i64: 128, 128>}, {pipeline_mode = #tpu.pipeline_mode<synchronous>, transform_indices = @transform_3, window_bounds = array<i64: 128, 128>}, {pipeline_mode = #tpu.pipeline_mode<synchronous>, transform_indices = @transform_4, window_bounds = array<i64: 1, 128>}, {transform_indices = @transform_5, window_bounds = array<i64: 256, 128>}]} {
    %c0_i32 = arith.constant 0 : i32
    %0 = arith.cmpi eq, %arg1, %c0_i32 : i32
    %1 = arith.extui %0 : i1 to i32
    %c0_i32_0 = arith.constant 0 : i32
    %2 = arith.cmpi ne, %1, %c0_i32_0 : i32
    scf.if %2 {
      %cst_8 = arith.constant 0.000000e+00 : f32
      %17 = vector.broadcast %cst_8 : f32 to vector<256x128xf32>
      %c0_9 = arith.constant 0 : index
      %c0_10 = arith.constant 0 : index
      %18 = vector.load %arg8[%c0_9, %c0_10] : memref<256x128xf32, #tpu.memory_space<vmem>>, vector<256x128xf32>
      tpu.vector_store %arg8[%c0_9, %c0_10], %17 {strides = array<i32>} : memref<256x128xf32, #tpu.memory_space<vmem>>, vector<256x128xf32>,
    } else {
    }
    %c0 = arith.constant 0 : index
    %c0_1 = arith.constant 0 : index
    %3 = vector.load %arg2[%c0, %c0_1] : memref<256x256xi8, #tpu.memory_space<vmem>>, vector<256x256xi8>
    %4 = arith.sitofp %3 : vector<256x256xi8> to vector<256x256xf32>
    %5 = arith.truncf %4 : vector<256x256xf32> to vector<256x256xbf16>
    %c256_i32 = arith.constant 256 : i32
    %6 = arith.muli %arg1, %c256_i32 : i32
    %7 = tpu.assume_multiple %6, 128 : i32
    %8 = arith.index_cast %7 : i32 to index
    %c0_2 = arith.constant 0 : index
    %9 = vector.load %arg3[%8, %c0_2] : memref<768x128xbf16, #tpu.memory_space<vmem>>, vector<256x128xbf16>
    %c0_3 = arith.constant 0 : index
    %c0_4 = arith.constant 0 : index
    %10 = vector.load %arg8[%c0_3, %c0_4] : memref<256x128xf32, #tpu.memory_space<vmem>>, vector<256x128xf32>
    %cst = arith.constant dense<0.000000e+00> : vector<256x128xf32>
    %11 = tpu.matmul %5, %9, %cst {dimension_numbers = #tpu.dot_dimension_numbers<[1], [0], [0], [1], [0, 0, 1, 1], [], []>} : vector<256x256xbf16>, vector<256x128xbf16>, vector<256x128xf32> -> vector<256x128xf32>
    %12 = arith.addf %10, %11 : vector<256x128xf32>
    %c0_5 = arith.constant 0 : index
    %c0_6 = arith.constant 0 : index
    %13 = vector.load %arg8[%c0_5, %c0_6] : memref<256x128xf32, #tpu.memory_space<vmem>>, vector<256x128xf32>
    tpu.vector_store %arg8[%c0_5, %c0_6], %12 {strides = array<i32>} : memref<256x128xf32, #tpu.memory_space<vmem>>, vector<256x128xf32>,
    %c2_i32 = arith.constant 2 : i32
    %14 = arith.cmpi eq, %arg1, %c2_i32 : i32
    %15 = arith.extui %14 : i1 to i32
    %c0_i32_7 = arith.constant 0 : i32
    %16 = arith.cmpi ne, %15, %c0_i32_7 : i32
    scf.if %16 {
      %c256_i32_8 = arith.constant 256 : i32
      %17 = arith.muli %arg0, %c256_i32_8 : i32
      %18 = tpu.assume_multiple %17, 128 : i32
      %19 = arith.index_cast %18 : i32 to index
      %c0_9 = arith.constant 0 : index
      %20 = vector.load %arg3[%19, %c0_9] : memref<768x128xbf16, #tpu.memory_space<vmem>>, vector<256x128xbf16>
      %c0_10 = arith.constant 0 : index
      %c0_11 = arith.constant 0 : index
      %21 = vector.load %arg8[%c0_10, %c0_11] : memref<256x128xf32, #tpu.memory_space<vmem>>, vector<256x128xf32>
      %22 = arith.truncf %21 : vector<256x128xf32> to vector<256x128xbf16>
      %c0_12 = arith.constant 0 : index
      %c0_13 = arith.constant 0 : index
      %23 = vector.load %arg4[%c0_12, %c0_13] : memref<128x128xbf16, #tpu.memory_space<vmem>>, vector<128x128xbf16>
      %cst_14 = arith.constant dense<0.000000e+00> : vector<256x128xf32>
      %24 = tpu.matmul %20, %23, %cst_14 {dimension_numbers = #tpu.dot_dimension_numbers<[1], [0], [0], [1], [0, 0, 1, 1], [], []>} : vector<256x128xbf16>, vector<128x128xbf16>, vector<256x128xf32> -> vector<256x128xf32>
      %c0_15 = arith.constant 0 : index
      %c0_16 = arith.constant 0 : index
      %25 = vector.load %arg5[%c0_15, %c0_16] : memref<128x128xbf16, #tpu.memory_space<vmem>>, vector<128x128xbf16>
      %cst_17 = arith.constant dense<0.000000e+00> : vector<256x128xf32>
      %26 = tpu.matmul %22, %25, %cst_17 {dimension_numbers = #tpu.dot_dimension_numbers<[1], [0], [0], [1], [0, 0, 1, 1], [], []>} : vector<256x128xbf16>, vector<128x128xbf16>, vector<256x128xf32> -> vector<256x128xf32>
      %27 = arith.addf %24, %26 : vector<256x128xf32>
      %c0_18 = arith.constant 0 : index
      %c0_19 = arith.constant 0 : index
      %28 = vector.load %arg6[%c0_18, %c0_19] : memref<1x128xf32, #tpu.memory_space<vmem>>, vector<1x128xf32>
      %29 = vector.broadcast %28 : vector<1x128xf32> to vector<256x128xf32>
      %30 = arith.addf %27, %29 : vector<256x128xf32>
      %cst_20 = arith.constant 0.000000e+00 : f32
      %31 = vector.broadcast %cst_20 : f32 to vector<256x128xf32>
      %32 = arith.maximumf %30, %31 : vector<256x128xf32>
      %33 = arith.truncf %32 : vector<256x128xf32> to vector<256x128xbf16>
      %c0_21 = arith.constant 0 : index
      %c0_22 = arith.constant 0 : index
      %34 = vector.load %arg7[%c0_21, %c0_22] : memref<256x128xbf16, #tpu.memory_space<vmem>>, vector<256x128xbf16>
      tpu.vector_store %arg7[%c0_21, %c0_22], %33 {strides = array<i32>} : memref<256x128xbf16, #tpu.memory_space<vmem>>, vector<256x128xbf16>,
    } else {
    }
    return
  }
  func.func @transform_0(%arg0: i32, %arg1: i32) -> (i32, i32) {
    %c0_i32 = arith.constant 0 : i32
    return %arg0, %arg1 : i32, i32
  }
  func.func @transform_1(%arg0: i32, %arg1: i32) -> (i32, i32) {
    %c0_i32 = arith.constant 0 : i32
    %c0_i32_0 = arith.constant 0 : i32
    %c0_i32_1 = arith.constant 0 : i32
    return %c0_i32, %c0_i32_0 : i32, i32
  }
  func.func @transform_2(%arg0: i32, %arg1: i32) -> (i32, i32) {
    %c0_i32 = arith.constant 0 : i32
    %c0_i32_0 = arith.constant 0 : i32
    %c0_i32_1 = arith.constant 0 : i32
    return %c0_i32, %c0_i32_0 : i32, i32
  }
  func.func @transform_3(%arg0: i32, %arg1: i32) -> (i32, i32) {
    %c0_i32 = arith.constant 0 : i32
    %c0_i32_0 = arith.constant 0 : i32
    %c0_i32_1 = arith.constant 0 : i32
    return %c0_i32, %c0_i32_0 : i32, i32
  }
  func.func @transform_4(%arg0: i32, %arg1: i32) -> (i32, i32) {
    %c0_i32 = arith.constant 0 : i32
    %c0_i32_0 = arith.constant 0 : i32
    %c0_i32_1 = arith.constant 0 : i32
    return %c0_i32, %c0_i32_0 : i32, i32
  }
  func.func @transform_5(%arg0: i32, %arg1: i32) -> (i32, i32) {
    %c0_i32 = arith.constant 0 : i32
    %c0_i32_0 = arith.constant 0 : i32
    return %arg0, %c0_i32 : i32, i32
  }
}

module attributes {stable_mosaic.version = 11 : i64} {
  func.func @_graphconv_kernel(%arg0: i32, %arg1: i32, %arg2: memref<256x256xi8, #tpu.memory_space<vmem>>, %arg3: memref<768x128xbf16, #tpu.memory_space<vmem>>, %arg4: memref<128x128xbf16, #tpu.memory_space<vmem>>, %arg5: memref<128x128xbf16, #tpu.memory_space<vmem>>, %arg6: memref<1x128xf32, #tpu.memory_space<vmem>>, %arg7: memref<256x128xbf16, #tpu.memory_space<vmem>>, %arg8: memref<256x128xf32, #tpu.memory_space<vmem>>) attributes {dimension_semantics = [#tpu.dimension_semantics<parallel>, #tpu.dimension_semantics<arbitrary>], iteration_bounds = array<i64: 3, 3>, scalar_prefetch = 0 : i64, scratch_operands = 1 : i64, tpu.core_type = #tpu.core_type<tc>, window_params = [{transform_indices = @transform_0, window_bounds = array<i64: 256, 256>}, {pipeline_mode = #tpu.pipeline_mode<synchronous>, transform_indices = @transform_1, window_bounds = array<i64: 768, 128>}, {pipeline_mode = #tpu.pipeline_mode<synchronous>, transform_indices = @transform_2, window_bounds = array<i64: 128, 128>}, {pipeline_mode = #tpu.pipeline_mode<synchronous>, transform_indices = @transform_3, window_bounds = array<i64: 128, 128>}, {pipeline_mode = #tpu.pipeline_mode<synchronous>, transform_indices = @transform_4, window_bounds = array<i64: 1, 128>}, {transform_indices = @transform_5, window_bounds = array<i64: 256, 128>}]} {
    %c0_i32 = arith.constant 0 : i32
    %0 = arith.cmpi eq, %arg1, %c0_i32 : i32
    %1 = arith.extui %0 : i1 to i32
    %c0_i32_0 = arith.constant 0 : i32
    %2 = arith.cmpi ne, %1, %c0_i32_0 : i32
    scf.if %2 {
      %cst_8 = arith.constant 0.000000e+00 : f32
      %17 = vector.broadcast %cst_8 : f32 to vector<256x128xf32>
      %c0_9 = arith.constant 0 : index
      %c0_10 = arith.constant 0 : index
      %18 = vector.load %arg8[%c0_9, %c0_10] : memref<256x128xf32, #tpu.memory_space<vmem>>, vector<256x128xf32>
      tpu.vector_store %arg8[%c0_9, %c0_10], %17 {strides = array<i32>} : memref<256x128xf32, #tpu.memory_space<vmem>>, vector<256x128xf32>,
    } else {
    }
    %c0 = arith.constant 0 : index
    %c0_1 = arith.constant 0 : index
    %3 = vector.load %arg2[%c0, %c0_1] : memref<256x256xi8, #tpu.memory_space<vmem>>, vector<256x256xi8>
    %4 = arith.sitofp %3 : vector<256x256xi8> to vector<256x256xf32>
    %5 = arith.truncf %4 : vector<256x256xf32> to vector<256x256xbf16>
    %c256_i32 = arith.constant 256 : i32
    %6 = arith.muli %arg1, %c256_i32 : i32
    %7 = tpu.assume_multiple %6, 128 : i32
    %8 = arith.index_cast %7 : i32 to index
    %c0_2 = arith.constant 0 : index
    %9 = vector.load %arg3[%8, %c0_2] : memref<768x128xbf16, #tpu.memory_space<vmem>>, vector<256x128xbf16>
    %c0_3 = arith.constant 0 : index
    %c0_4 = arith.constant 0 : index
    %10 = vector.load %arg8[%c0_3, %c0_4] : memref<256x128xf32, #tpu.memory_space<vmem>>, vector<256x128xf32>
    %cst = arith.constant dense<0.000000e+00> : vector<256x128xf32>
    %11 = tpu.matmul %5, %9, %cst {dimension_numbers = #tpu.dot_dimension_numbers<[1], [0], [0], [1], [0, 0, 1, 1], [], []>} : vector<256x256xbf16>, vector<256x128xbf16>, vector<256x128xf32> -> vector<256x128xf32>
    %12 = arith.addf %10, %11 : vector<256x128xf32>
    %c0_5 = arith.constant 0 : index
    %c0_6 = arith.constant 0 : index
    %13 = vector.load %arg8[%c0_5, %c0_6] : memref<256x128xf32, #tpu.memory_space<vmem>>, vector<256x128xf32>
    tpu.vector_store %arg8[%c0_5, %c0_6], %12 {strides = array<i32>} : memref<256x128xf32, #tpu.memory_space<vmem>>, vector<256x128xf32>,
    %c2_i32 = arith.constant 2 : i32
    %14 = arith.cmpi eq, %arg1, %c2_i32 : i32
    %15 = arith.extui %14 : i1 to i32
    %c0_i32_7 = arith.constant 0 : i32
    %16 = arith.cmpi ne, %15, %c0_i32_7 : i32
    scf.if %16 {
      %c256_i32_8 = arith.constant 256 : i32
      %17 = arith.muli %arg0, %c256_i32_8 : i32
      %18 = tpu.assume_multiple %17, 128 : i32
      %19 = arith.index_cast %18 : i32 to index
      %c0_9 = arith.constant 0 : index
      %20 = vector.load %arg3[%19, %c0_9] : memref<768x128xbf16, #tpu.memory_space<vmem>>, vector<256x128xbf16>
      %c0_10 = arith.constant 0 : index
      %c0_11 = arith.constant 0 : index
      %21 = vector.load %arg8[%c0_10, %c0_11] : memref<256x128xf32, #tpu.memory_space<vmem>>, vector<256x128xf32>
      %22 = arith.truncf %21 : vector<256x128xf32> to vector<256x128xbf16>
      %c0_12 = arith.constant 0 : index
      %c0_13 = arith.constant 0 : index
      %23 = vector.load %arg4[%c0_12, %c0_13] : memref<128x128xbf16, #tpu.memory_space<vmem>>, vector<128x128xbf16>
      %cst_14 = arith.constant dense<0.000000e+00> : vector<256x128xf32>
      %24 = tpu.matmul %20, %23, %cst_14 {dimension_numbers = #tpu.dot_dimension_numbers<[1], [0], [0], [1], [0, 0, 1, 1], [], []>} : vector<256x128xbf16>, vector<128x128xbf16>, vector<256x128xf32> -> vector<256x128xf32>
      %c0_15 = arith.constant 0 : index
      %c0_16 = arith.constant 0 : index
      %25 = vector.load %arg5[%c0_15, %c0_16] : memref<128x128xbf16, #tpu.memory_space<vmem>>, vector<128x128xbf16>
      %cst_17 = arith.constant dense<0.000000e+00> : vector<256x128xf32>
      %26 = tpu.matmul %22, %25, %cst_17 {dimension_numbers = #tpu.dot_dimension_numbers<[1], [0], [0], [1], [0, 0, 1, 1], [], []>} : vector<256x128xbf16>, vector<128x128xbf16>, vector<256x128xf32> -> vector<256x128xf32>
      %27 = arith.addf %24, %26 : vector<256x128xf32>
      %c0_18 = arith.constant 0 : index
      %c0_19 = arith.constant 0 : index
      %28 = vector.load %arg6[%c0_18, %c0_19] : memref<1x128xf32, #tpu.memory_space<vmem>>, vector<1x128xf32>
      %29 = vector.broadcast %28 : vector<1x128xf32> to vector<256x128xf32>
      %30 = arith.addf %27, %29 : vector<256x128xf32>
      %31 = arith.truncf %30 : vector<256x128xf32> to vector<256x128xbf16>
      %c0_20 = arith.constant 0 : index
      %c0_21 = arith.constant 0 : index
      %32 = vector.load %arg7[%c0_20, %c0_21] : memref<256x128xbf16, #tpu.memory_space<vmem>>, vector<256x128xbf16>
      tpu.vector_store %arg7[%c0_20, %c0_21], %31 {strides = array<i32>} : memref<256x128xbf16, #tpu.memory_space<vmem>>, vector<256x128xbf16>,
    } else {
    }
    return
  }
  func.func @transform_0(%arg0: i32, %arg1: i32) -> (i32, i32) {
    %c0_i32 = arith.constant 0 : i32
    return %arg0, %arg1 : i32, i32
  }
  func.func @transform_1(%arg0: i32, %arg1: i32) -> (i32, i32) {
    %c0_i32 = arith.constant 0 : i32
    %c0_i32_0 = arith.constant 0 : i32
    %c0_i32_1 = arith.constant 0 : i32
    return %c0_i32, %c0_i32_0 : i32, i32
  }
  func.func @transform_2(%arg0: i32, %arg1: i32) -> (i32, i32) {
    %c0_i32 = arith.constant 0 : i32
    %c0_i32_0 = arith.constant 0 : i32
    %c0_i32_1 = arith.constant 0 : i32
    return %c0_i32, %c0_i32_0 : i32, i32
  }
  func.func @transform_3(%arg0: i32, %arg1: i32) -> (i32, i32) {
    %c0_i32 = arith.constant 0 : i32
    %c0_i32_0 = arith.constant 0 : i32
    %c0_i32_1 = arith.constant 0 : i32
    return %c0_i32, %c0_i32_0 : i32, i32
  }
  func.func @transform_4(%arg0: i32, %arg1: i32) -> (i32, i32) {
    %c0_i32 = arith.constant 0 : i32
    %c0_i32_0 = arith.constant 0 : i32
    %c0_i32_1 = arith.constant 0 : i32
    return %c0_i32, %c0_i32_0 : i32, i32
  }
  func.func @transform_5(%arg0: i32, %arg1: i32) -> (i32, i32) {
    %c0_i32 = arith.constant 0 : i32
    %c0_i32_0 = arith.constant 0 : i32
    return %arg0, %c0_i32 : i32, i32
  }
}

module attributes {stable_mosaic.version = 11 : i64} {
  func.func @_predictor_kernel(%arg0: i32, %arg1: memref<40x128xbf16, #tpu.memory_space<vmem>>, %arg2: memref<40x128xbf16, #tpu.memory_space<vmem>>, %arg3: memref<128x128xbf16, #tpu.memory_space<vmem>>, %arg4: memref<128x128xbf16, #tpu.memory_space<vmem>>, %arg5: memref<1x128xf32, #tpu.memory_space<vmem>>, %arg6: memref<128x128xbf16, #tpu.memory_space<vmem>>, %arg7: memref<1x128xf32, #tpu.memory_space<vmem>>, %arg8: memref<40x128xf32, #tpu.memory_space<vmem>>) attributes {dimension_semantics = [#tpu.dimension_semantics<parallel>], iteration_bounds = array<i64: 1>, scalar_prefetch = 0 : i64, scratch_operands = 0 : i64, tpu.core_type = #tpu.core_type<tc>, window_params = [{transform_indices = @transform_0, window_bounds = array<i64: 40, 128>}, {transform_indices = @transform_1, window_bounds = array<i64: 40, 128>}, {pipeline_mode = #tpu.pipeline_mode<synchronous>, transform_indices = @transform_2, window_bounds = array<i64: 128, 128>}, {pipeline_mode = #tpu.pipeline_mode<synchronous>, transform_indices = @transform_3, window_bounds = array<i64: 128, 128>}, {pipeline_mode = #tpu.pipeline_mode<synchronous>, transform_indices = @transform_4, window_bounds = array<i64: 1, 128>}, {pipeline_mode = #tpu.pipeline_mode<synchronous>, transform_indices = @transform_5, window_bounds = array<i64: 128, 128>}, {pipeline_mode = #tpu.pipeline_mode<synchronous>, transform_indices = @transform_6, window_bounds = array<i64: 1, 128>}, {transform_indices = @transform_7, window_bounds = array<i64: 40, 128>}]} {
    %c0 = arith.constant 0 : index
    %c0_0 = arith.constant 0 : index
    %0 = vector.load %arg1[%c0, %c0_0] : memref<40x128xbf16, #tpu.memory_space<vmem>>, vector<40x128xbf16>
    %c0_1 = arith.constant 0 : index
    %c0_2 = arith.constant 0 : index
    %1 = vector.load %arg3[%c0_1, %c0_2] : memref<128x128xbf16, #tpu.memory_space<vmem>>, vector<128x128xbf16>
    %cst = arith.constant dense<0.000000e+00> : vector<40x128xf32>
    %2 = tpu.matmul %0, %1, %cst {dimension_numbers = #tpu.dot_dimension_numbers<[1], [0], [0], [1], [0, 0, 1, 1], [], []>} : vector<40x128xbf16>, vector<128x128xbf16>, vector<40x128xf32> -> vector<40x128xf32>
    %c0_3 = arith.constant 0 : index
    %c0_4 = arith.constant 0 : index
    %3 = vector.load %arg2[%c0_3, %c0_4] : memref<40x128xbf16, #tpu.memory_space<vmem>>, vector<40x128xbf16>
    %c0_5 = arith.constant 0 : index
    %c0_6 = arith.constant 0 : index
    %4 = vector.load %arg4[%c0_5, %c0_6] : memref<128x128xbf16, #tpu.memory_space<vmem>>, vector<128x128xbf16>
    %cst_7 = arith.constant dense<0.000000e+00> : vector<40x128xf32>
    %5 = tpu.matmul %3, %4, %cst_7 {dimension_numbers = #tpu.dot_dimension_numbers<[1], [0], [0], [1], [0, 0, 1, 1], [], []>} : vector<40x128xbf16>, vector<128x128xbf16>, vector<40x128xf32> -> vector<40x128xf32>
    %6 = arith.addf %2, %5 : vector<40x128xf32>
    %c0_8 = arith.constant 0 : index
    %c0_9 = arith.constant 0 : index
    %7 = vector.load %arg5[%c0_8, %c0_9] : memref<1x128xf32, #tpu.memory_space<vmem>>, vector<1x128xf32>
    %8 = vector.broadcast %7 : vector<1x128xf32> to vector<40x128xf32>
    %9 = arith.addf %6, %8 : vector<40x128xf32>
    %cst_10 = arith.constant 0.000000e+00 : f32
    %10 = vector.broadcast %cst_10 : f32 to vector<40x128xf32>
    %11 = arith.maximumf %9, %10 : vector<40x128xf32>
    %12 = arith.truncf %11 : vector<40x128xf32> to vector<40x128xbf16>
    %c0_11 = arith.constant 0 : index
    %c0_12 = arith.constant 0 : index
    %13 = vector.load %arg6[%c0_11, %c0_12] : memref<128x128xbf16, #tpu.memory_space<vmem>>, vector<128x128xbf16>
    %cst_13 = arith.constant dense<0.000000e+00> : vector<40x128xf32>
    %14 = tpu.matmul %12, %13, %cst_13 {dimension_numbers = #tpu.dot_dimension_numbers<[1], [0], [0], [1], [0, 0, 1, 1], [], []>} : vector<40x128xbf16>, vector<128x128xbf16>, vector<40x128xf32> -> vector<40x128xf32>
    %c0_14 = arith.constant 0 : index
    %c0_15 = arith.constant 0 : index
    %15 = vector.load %arg7[%c0_14, %c0_15] : memref<1x128xf32, #tpu.memory_space<vmem>>, vector<1x128xf32>
    %16 = vector.broadcast %15 : vector<1x128xf32> to vector<40x128xf32>
    %17 = arith.addf %14, %16 : vector<40x128xf32>
    %c0_16 = arith.constant 0 : index
    %c0_17 = arith.constant 0 : index
    %18 = vector.load %arg8[%c0_16, %c0_17] : memref<40x128xf32, #tpu.memory_space<vmem>>, vector<40x128xf32>
    tpu.vector_store %arg8[%c0_16, %c0_17], %17 {strides = array<i32>} : memref<40x128xf32, #tpu.memory_space<vmem>>, vector<40x128xf32>,
    return
  }
  func.func @transform_0(%arg0: i32) -> (i32, i32) {
    %c0_i32 = arith.constant 0 : i32
    %c0_i32_0 = arith.constant 0 : i32
    return %arg0, %c0_i32 : i32, i32
  }
  func.func @transform_1(%arg0: i32) -> (i32, i32) {
    %c0_i32 = arith.constant 0 : i32
    %c0_i32_0 = arith.constant 0 : i32
    return %arg0, %c0_i32 : i32, i32
  }
  func.func @transform_2(%arg0: i32) -> (i32, i32) {
    %c0_i32 = arith.constant 0 : i32
    %c0_i32_0 = arith.constant 0 : i32
    %c0_i32_1 = arith.constant 0 : i32
    return %c0_i32, %c0_i32_0 : i32, i32
  }
  func.func @transform_3(%arg0: i32) -> (i32, i32) {
    %c0_i32 = arith.constant 0 : i32
    %c0_i32_0 = arith.constant 0 : i32
    %c0_i32_1 = arith.constant 0 : i32
    return %c0_i32, %c0_i32_0 : i32, i32
  }
  func.func @transform_4(%arg0: i32) -> (i32, i32) {
    %c0_i32 = arith.constant 0 : i32
    %c0_i32_0 = arith.constant 0 : i32
    %c0_i32_1 = arith.constant 0 : i32
    return %c0_i32, %c0_i32_0 : i32, i32
  }
  func.func @transform_5(%arg0: i32) -> (i32, i32) {
    %c0_i32 = arith.constant 0 : i32
    %c0_i32_0 = arith.constant 0 : i32
    %c0_i32_1 = arith.constant 0 : i32
    return %c0_i32, %c0_i32_0 : i32, i32
  }
  func.func @transform_6(%arg0: i32) -> (i32, i32) {
    %c0_i32 = arith.constant 0 : i32
    %c0_i32_0 = arith.constant 0 : i32
    %c0_i32_1 = arith.constant 0 : i32
    return %c0_i32, %c0_i32_0 : i32, i32
  }
  func.func @transform_7(%arg0: i32) -> (i32, i32) {
    %c0_i32 = arith.constant 0 : i32
    %c0_i32_0 = arith.constant 0 : i32
    return %arg0, %c0_i32 : i32, i32
  }
}

</mosaic_0001>

<bundles_post_ra>
// kernel: gcn_forward.4
= control target key start
LH: loop header
LB: loop body
LE: loop exit
PB: predicated region body
PF: predicated region fallthrough
CT: control target
= control target key end

     0   :  { %s2443_s18 = smov 0   ;;  %s2445_s19 = smov 0   ;;  %s2724_s0 = inlined_call_operand.vmem [shape: s8[768,768], index: 0, kind: input, shape index: {}]   ;;  %s2725_s1 = inlined_call_operand.vmem [shape: bf16[768,128], index: 1, kind: input, shape index: {}]   ;;  %s2726_s2 = inlined_call_operand.vmem [shape: bf16[128,128], index: 2, kind: input, shape index: {}]   ;;  %s2727_s3 = inlined_call_operand.vmem [shape: bf16[128,128], index: 3, kind: input, shape index: {}]   ;;  %s2728_s4 = inlined_call_operand.vmem [shape: f32[1,128], index: 4, kind: input, shape index: {}]   ;;  %s2729_s5 = inlined_call_operand.vmem [shape: bf16[768,128], index: 5, kind: output, shape index: {}]  }
   0x1   :  { %s2447_s20 = smov 0   ;;  %s2449_s21 = smov 0  }
   0x2   :  { %s2451_s22 = smov 0   ;;  %s2453_s23 = smov 0  }
   0x3   :  { %s2455_s24 = smov 0  }
   0x4 LB: > { %s24_s25 = sadd.s32 1, %s2402_s22  ;;  %s27_s26 = sadd.s32 1, %s2406_s23  ;;  %s2410_s24 = sphi %s2455_s24, %s15_s24   ;;  %s2406_s23 = sphi %s2453_s23, %s2735_s23   ;;  %s2402_s22 = sphi %s2451_s22, %s2734_s22   ;;  %s2398_s21 = sphi %s2449_s21, %s2733_s21   ;;  %s2394_s20 = sphi %s2447_s20, %s2732_s20   ;;  %s2390_s19 = sphi %s2445_s19, %s2731_s19   ;;  %s2386_s18 = sphi %s2443_s18, %s2730_s18  }
   0x5   : > { %p25_p0 = scmp.ge.s32.totalorder %s24_s25, 3  ;;  %p43_p1 = scmp.ne.s32.totalorder %s2390_s19, %s2386_s18 }
   0x6   : > { %p44_p2 = scmp.eq.s32.totalorder %s2410_s24, 0  ;;  %s36_s30 = sadd.s32 1, %s2390_s19 }
   0x7   : > { %s2737_s25 = smov (%p25_p0, %s24_s25), 0  ;;  %s2739_s26 = smov (!%p25_p0, %s27_s26), %s2406_s23 }
   0x8   : > { %p45_p3 = por %p44_p2, %p43_p1  ;;  %p29_p4 = scmp.ge.s32.totalorder %s2739_s26, 3 }
   0x9   : > { %s32_s27 = ssub.s32 %s2402_s22, %s2737_s25  ;;  %p1720_p6 = scmp.ge.s32.totalorder %s2410_s24, 9 }
   0xa   : > { %s2741_s26 = smov (%p29_p4, %s2739_s26), 0 }
   0xb   : > { %s31_s28 = ssub.s32 %s2406_s23, %s2741_s26  ;;  %191 = sbr.rel (%p1720_p6) target bundleno = 34 (0x22), region = 32 }
   0xc   : > { %s33_s29 = sor.u32 %s32_s27, %s31_s28 }
   0xd   : > { %p34_p5 = scmp.eq.s32.totalorder %s33_s29, 0 }
   0xf   : > { %s2494_s6 = scalar_select %p34_p5, %s2390_s19, %s36_s30  }
  0x12   : > { %194 = sbr.rel (!%p45_p3) target bundleno = 34 (0x22), region = 36  ;;  %s196_s7 = sand.u32 (%p45_p3), 1, %s2390_s19  }
  0x13   : > { %s1723_s8 = sshll.u32 (%p45_p3), %s2402_s22, 1  ;;  %s1721_s9 = sshll.u32 (%p45_p3), %s196_s7, 7 }
  0x14   : > { %s2250_s10 = smul.u32 (%p45_p3), 48, %s2406_s23  ;;  %s198_s16 = scalar_lea.vmem (%p45_p3), [#allocation3], %s1721_s9 }
  0x16   : > { %s202_s11 = sadd.s32 (%p45_p3), %s2250_s10, %s1723_s8 }
  0x17   : > { %s1725_s12 = sshll.u32 (%p45_p3), %s202_s11, 3 }
  0x18   : > { %s2503_s15 = scalar_lea.vmem (%p45_p3), %s2724_s0, %s1725_s12 }
  0x19   : > { %v217_v0 = vld [vmem:[%s2503_s15] sm:$0xff]  ;;  %v219_v1 = vld [vmem:[%s2503_s15 + $0x8] sm:$0xff]  ;;  %v221_v2 = vld [vmem:[%s2503_s15 + $0x30] sm:$0xff] }
  0x1a   : > { %218 = vst [vmem:[%s198_s16] sm:$0xff] %v217_v0  ;;  %220 = vst [vmem:[%s198_s16 + $0x8] sm:$0xff] %v219_v1  ;;  %v223_v3 = vld [vmem:[%s2503_s15 + $0x38] sm:$0xff]  ;;  %v225_v4 = vld [vmem:[%s2503_s15 + $0x60] sm:$0xff] }
  0x1b   : > { %222 = vst [vmem:[%s198_s16 + $0x10] sm:$0xff] %v221_v2  ;;  %v227_v5 = vld [vmem:[%s2503_s15 + $0x68] sm:$0xff]  ;;  %224 = vst [vmem:[%s198_s16 + $0x18] sm:$0xff] %v223_v3  ;;  %v229_v6 = vld [vmem:[%s2503_s15 + $0x90] sm:$0xff] }
  0x1c   : > { %226 = vst [vmem:[%s198_s16 + $0x20] sm:$0xff] %v225_v4  ;;  %228 = vst [vmem:[%s198_s16 + $0x28] sm:$0xff] %v227_v5  ;;  %v231_v7 = vld [vmem:[%s2503_s15 + $0x98] sm:$0xff]  ;;  %v233_v8 = vld [vmem:[%s2503_s15 + $0xc0] sm:$0xff] }
  0x1d   : > { %230 = vst [vmem:[%s198_s16 + $0x30] sm:$0xff] %v229_v6  ;;  %232 = vst [vmem:[%s198_s16 + $0x38] sm:$0xff] %v231_v7  ;;  %v235_v9 = vld [vmem:[%s2503_s15 + $0xc8] sm:$0xff]  ;;  %v237_v10 = vld [vmem:[%s2503_s15 + $0xf0] sm:$0xff] }
  0x1e   : > { %234 = vst [vmem:[%s198_s16 + $0x40] sm:$0xff] %v233_v8  ;;  %v239_v11 = vld [vmem:[%s2503_s15 + $0xf8] sm:$0xff]  ;;  %236 = vst [vmem:[%s198_s16 + $0x48] sm:$0xff] %v235_v9  ;;  %v241_v12 = vld [vmem:[%s2503_s15 + $0x120] sm:$0xff] }
  0x1f   : > { %238 = vst [vmem:[%s198_s16 + $0x50] sm:$0xff] %v237_v10  ;;  %240 = vst [vmem:[%s198_s16 + $0x58] sm:$0xff] %v239_v11  ;;  %v243_v13 = vld [vmem:[%s2503_s15 + $0x128] sm:$0xff]  ;;  %v245_v14 = vld [vmem:[%s2503_s15 + $0x150] sm:$0xff] }
  0x20   : > { %242 = vst [vmem:[%s198_s16 + $0x60] sm:$0xff] %v241_v12  ;;  %244 = vst [vmem:[%s198_s16 + $0x68] sm:$0xff] %v243_v13  ;;  %v247_v15 = vld [vmem:[%s2503_s15 + $0x158] sm:$0xff] }
  0x21   : > { %246 = vst [vmem:[%s198_s16 + $0x70] sm:$0xff] %v245_v14  ;;  %248 = vst [vmem:[%s198_s16 + $0x78] sm:$0xff] %v247_v15 }
  0x22 PF: > { %p1726_p7 = scmp.ge.s32.totalorder %s2410_s24, 1  ;;  %p253_p8 = scmp.lt.s32.totalorder %s2410_s24, 10 }
  0x24   : > { %p254_p9 = pnand %p1726_p7, %p253_p8 }
  0x25   : > { %s260_s17 = sand.u32 (!%p254_p9), 1, %s2386_s18   ;;  %s1728_s27 = sshll.u32 (!%p254_p9), %s2398_s21, 5 }
  0x26   : > { %257 = sbr.rel (%p254_p9) target bundleno = 663 (0x297), region = 59  ;;  %s1727_s28 = sshll.u32 (!%p254_p9), %s260_s17, 7 }
  0x27   : > { %p290_p10 = scmp.lt.s32.totalorder (!%p254_p9), %s1728_s27, 95  ;;  %s2530_s9 = scalar_lea.vmem (!%p254_p9), [#allocation3], %s1727_s28 }
  0x28   : > { %p1730_p11 = scmp.ne.s32.totalorder (!%p254_p9), %s2394_s20, 0 }
  0x2d   : > { %s2743_s27 = smov (!%p290_p10, %s1728_s27), 95  ;;  %299 = sbr.rel (%p1730_p11) target bundleno = 63 (0x3f), region = 67 }
  0x2e   : > { %s1729_s29 = sshll.u32 %s2743_s27, 2  ;;  %v2412_v16 = vmov (!%p1730_p11), 0.0  }
  0x2f   : > { %s2528_s8 = scalar_lea.vmem %s2729_s5, %s1729_s29  ;;  %300 = vst [vmem:[#allocation2] sm:$0xff] (!%p1730_p11), %v2412_v16  ;;  %301 = vst [vmem:[#allocation2 + $0x8] sm:$0xff] (!%p1730_p11), %v2412_v16 }
  0x30   : > { %302 = vst [vmem:[#allocation2 + $0x10] sm:$0xff] (!%p1730_p11), %v2412_v16  ;;  %303 = vst [vmem:[#allocation2 + $0x18] sm:$0xff] (!%p1730_p11), %v2412_v16 }
  0x31   : > { %304 = vst [vmem:[#allocation2 + $0x20] sm:$0xff] (!%p1730_p11), %v2412_v16  ;;  %305 = vst [vmem:[#allocation2 + $0x28] sm:$0xff] (!%p1730_p11), %v2412_v16 }
  0x32   : > { %306 = vst [vmem:[#allocation2 + $0x30] sm:$0xff] (!%p1730_p11), %v2412_v16  ;;  %307 = vst [vmem:[#allocation2 + $0x38] sm:$0xff] (!%p1730_p11), %v2412_v16 }
  0x33   : > { %308 = vst [vmem:[#allocation2 + $0x40] sm:$0xff] (!%p1730_p11), %v2412_v16  ;;  %309 = vst [vmem:[#allocation2 + $0x48] sm:$0xff] (!%p1730_p11), %v2412_v16 }
  0x34   : > { %310 = vst [vmem:[#allocation2 + $0x50] sm:$0xff] %v2412_v16  ;;  %311 = vst [vmem:[#allocation2 + $0x58] sm:$0xff] %v2412_v16 }
  0x35   : > { %312 = vst [vmem:[#allocation2 + $0x60] sm:$0xff] %v2412_v16  ;;  %313 = vst [vmem:[#allocation2 + $0x68] sm:$0xff] %v2412_v16 }
  0x36   : > { %314 = vst [vmem:[#allocation2 + $0x70] sm:$0xff] %v2412_v16  ;;  %315 = vst [vmem:[#allocation2 + $0x78] sm:$0xff] %v2412_v16 }
  0x37   : > { %316 = vst [vmem:[#allocation2 + $0x80] sm:$0xff] %v2412_v16  ;;  %317 = vst [vmem:[#allocation2 + $0x88] sm:$0xff] %v2412_v16 }
  0x38   : > { %318 = vst [vmem:[#allocation2 + $0x90] sm:$0xff] %v2412_v16  ;;  %319 = vst [vmem:[#allocation2 + $0x98] sm:$0xff] %v2412_v16 }
  0x39   : > { %320 = vst [vmem:[#allocation2 + $0xa0] sm:$0xff] %v2412_v16  ;;  %321 = vst [vmem:[#allocation2 + $0xa8] sm:$0xff] %v2412_v16 }
  0x3a   : > { %322 = vst [vmem:[#allocation2 + $0xb0] sm:$0xff] %v2412_v16  ;;  %323 = vst [vmem:[#allocation2 + $0xb8] sm:$0xff] %v2412_v16 }
  0x3b   : > { %324 = vst [vmem:[#allocation2 + $0xc0] sm:$0xff] %v2412_v16  ;;  %325 = vst [vmem:[#allocation2 + $0xc8] sm:$0xff] %v2412_v16 }
  0x3c   : > { %326 = vst [vmem:[#allocation2 + $0xd0] sm:$0xff] %v2412_v16  ;;  %327 = vst [vmem:[#allocation2 + $0xd8] sm:$0xff] %v2412_v16 }
  0x3d   : > { %328 = vst [vmem:[#allocation2 + $0xe0] sm:$0xff] %v2412_v16  ;;  %329 = vst [vmem:[#allocation2 + $0xe8] sm:$0xff] %v2412_v16 }
  0x3e   : > { %330 = vst [vmem:[#allocation2 + $0xf0] sm:$0xff] %v2412_v16  ;;  %331 = vst [vmem:[#allocation2 + $0xf8] sm:$0xff] %v2412_v16 }
  0x3f PF: > { %s1731_s18 = sshll.u32 %s2394_s20, 8  ;;  %v2535_v17 = vld [vmem:[%s2530_s9 + $0x8] sm:$0xff]  ;;  %v332_v37 = vld [vmem:[%s2530_s9] sm:$0xff]  ;;  %v335_v43 = vld [vmem:[%s2530_s9 + $0x18] sm:$0xff]  ;;  %p1749_p12 = scmp.ne.s32.totalorder %s2394_s20, 2 }
  0x40   : > { %v2538_v18 = vld [vmem:[%s2530_s9 + $0x48] sm:$0xff]  ;;  %s381_s10 = sshra.s32 %s1731_s18, 3  ;;  %v349_v19 = vunpack.c.l.s8.bf16 %v2535_v17  ;;  %v340_v38 = vld [vmem:[%s2530_s9 + $0x40] sm:$0xff]  ;;  %v348_v39 = vunpack.c.l.s8.bf16 %v332_v37  ;;  %v351_v41 = vunpack.c.h.s8.bf16 %v2535_v17  ;;  %v343_v44 = vld [vmem:[%s2530_s9 + $0x58] sm:$0xff]  ;;  %v350_v45 = vunpack.c.h.s8.bf16 %v332_v37 }
  0x41   : > { %v365_v20 = vunpack.c.l.s8.bf16 %v2538_v18  ;;  %s1732_s11 = sshll.u32 %s381_s10, 2  ;;  %v364_v40 = vunpack.c.l.s8.bf16 %v340_v38  ;;  %v367_v42 = vunpack.c.h.s8.bf16 %v2538_v18  ;;  %v366_v46 = vunpack.c.h.s8.bf16 %v340_v38  ;;  %v334_v49 = vld [vmem:[%s2530_s9 + $0x10] sm:$0xff]  ;;  %v337_v55 = vld [vmem:[%s2530_s9 + $0x28] sm:$0xff]  ;;  %v336_v61 = vld [vmem:[%s2530_s9 + $0x20] sm:$0xff] }
  0x42   : > { %s2545_s14 = scalar_lea.vmem %s2725_s1, %s1732_s11  ;;  %577 = vmatprep.mubr.bf16.mxu0 %v349_v19  ;;  %v353_v47 = vunpack.c.l.s8.bf16 %v335_v43  ;;  %v369_v48 = vunpack.c.l.s8.bf16 %v343_v44  ;;  %v342_v50 = vld [vmem:[%s2530_s9 + $0x50] sm:$0xff]  ;;  %v352_v51 = vunpack.c.l.s8.bf16 %v334_v49  ;;  %v355_v53 = vunpack.c.h.s8.bf16 %v335_v43  ;;  %v345_v56 = vld [vmem:[%s2530_s9 + $0x68] sm:$0xff]  ;;  %v344_v62 = vld [vmem:[%s2530_s9 + $0x60] sm:$0xff]  ;;  %s1750_s11 = sshll.u32 (!%p1749_p12), %s2398_s21, 8 }
  0x43   : > { %641 = vmatprep.mubr.bf16.mxu1 %v365_v20  ;;  %v2308_v21 = vld [vmem:[%s2545_s14 + $0x40] sm:$0xff]   ;;  %v2310_v23 = vld [vmem:[%s2545_s14 + $0x48] sm:$0xff]   ;;  %v2312_v25 = vld [vmem:[%s2545_s14 + $0x50] sm:$0xff]   ;;  %v368_v52 = vunpack.c.l.s8.bf16 %v342_v50  ;;  %v371_v54 = vunpack.c.h.s8.bf16 %v343_v44  ;;  %v354_v57 = vunpack.c.h.s8.bf16 %v334_v49  ;;  %v370_v58 = vunpack.c.h.s8.bf16 %v342_v50 }
  0x44   : > { %v2309_v22 = vld [vmem:[%s2545_s14] sm:$0xff]   ;;  %1946 = vmatprep.subr.bf16.mxu0 %v2308_v21  ;;  %2202 = vmatprep.subr.bf16.mxu1 %v2308_v21  ;;  %v2311_v24 = vld [vmem:[%s2545_s14 + $0x8] sm:$0xff]   ;;  %v2313_v26 = vld [vmem:[%s2545_s14 + $0x10] sm:$0xff]   ;;  %v357_v59 = vunpack.c.l.s8.bf16 %v337_v55  ;;  %v373_v60 = vunpack.c.l.s8.bf16 %v345_v56  ;;  %v356_v63 = vunpack.c.l.s8.bf16 %v336_v61  ;;  %v372_v0 = vunpack.c.l.s8.bf16 %v344_v62 }
  0x45   : > { %1947 = vmatpush3.bf16.msra.mxu0 %v2309_v22  ;;  %2210 = vmatpush3.bf16.msra.mxu1 %v2309_v22  ;;  %v2314_v27 = vld [vmem:[%s2545_s14 + $0x58] sm:$0xff]   ;;  %v2316_v29 = vld [vmem:[%s2545_s14 + $0x60] sm:$0xff]   ;;  %v2318_v31 = vld [vmem:[%s2545_s14 + $0x68] sm:$0xff]   ;;  %v359_v1 = vunpack.c.h.s8.bf16 %v337_v55  ;;  %v375_v2 = vunpack.c.h.s8.bf16 %v345_v56  ;;  %v358_v5 = vunpack.c.h.s8.bf16 %v336_v61  ;;  %v374_v6 = vunpack.c.h.s8.bf16 %v344_v62 }
  0x46   : > { %1948 = vmatprep.subr.bf16.mxu0 %v2310_v23  ;;  %2203 = vmatprep.subr.bf16.mxu1 %v2310_v23  ;;  %v2315_v28 = vld [vmem:[%s2545_s14 + $0x18] sm:$0xff]   ;;  %v2317_v30 = vld [vmem:[%s2545_s14 + $0x20] sm:$0xff]   ;;  %v2319_v32 = vld [vmem:[%s2545_s14 + $0x28] sm:$0xff]  }
  0x47   : > { %v2320_v33 = vld [vmem:[%s2545_s14 + $0x70] sm:$0xff]   ;;  %v2322_v35 = vld [vmem:[%s2545_s14 + $0x78] sm:$0xff]   ;;  %v417_v19 = vld [vmem:[#allocation2] sm:$0xff] }
  0x48   : > { %v2321_v34 = vld [vmem:[%s2545_s14 + $0x30] sm:$0xff]   ;;  %v2323_v36 = vld [vmem:[%s2545_s14 + $0x38] sm:$0xff]   ;;  %v433_v21 = vld [vmem:[#allocation2 + $0x80] sm:$0xff]  ;;  %s775_s14 = sshra.s32 (!%p1749_p12), %s1750_s11, 3 }
  0x49   : > { %1949 = vmatpush3.bf16.msra.mxu0 %v2311_v24  ;;  %2211 = vmatpush3.bf16.msra.mxu1 %v2311_v24  ;;  %v339_v3 = vld [vmem:[%s2530_s9 + $0x38] sm:$0xff]  ;;  %v338_v9 = vld [vmem:[%s2530_s9 + $0x30] sm:$0xff]  ;;  %v437_v61 = vld [vmem:[#allocation2 + $0xa0] sm:$0xff]  ;;  %s1751_s17 = sshll.u32 (!%p1749_p12), %s775_s14, 2 }
  0x4a   : > { %1950 = vmatprep.subr.bf16.mxu0 %v2312_v25  ;;  %2204 = vmatprep.subr.bf16.mxu1 %v2312_v25  ;;  %v347_v4 = vld [vmem:[%s2530_s9 + $0x78] sm:$0xff]  ;;  %v361_v7 = vunpack.c.l.s8.bf16 %v339_v3  ;;  %v346_v10 = vld [vmem:[%s2530_s9 + $0x70] sm:$0xff]  ;;  %v360_v11 = vunpack.c.l.s8.bf16 %v338_v9  ;;  %v363_v13 = vunpack.c.h.s8.bf16 %v339_v3  ;;  %v362_v15 = vunpack.c.h.s8.bf16 %v338_v9  ;;  %v422_v3 = vld [vmem:[#allocation2 + $0x28] sm:$0xff]  ;;  %s2614_s20 = scalar_lea.vmem (!%p1749_p12), %s2725_s1, %s1751_s17 }
  0x4b   : > { %v377_v8 = vunpack.c.l.s8.bf16 %v347_v4  ;;  %v376_v12 = vunpack.c.l.s8.bf16 %v346_v10  ;;  %v379_v14 = vunpack.c.h.s8.bf16 %v347_v4  ;;  %v378_v16 = vunpack.c.h.s8.bf16 %v346_v10  ;;  %v436_v49 = vld [vmem:[#allocation2 + $0x98] sm:$0xff] }
  0x4d   : > { %1951 = vmatpush3.bf16.msra.mxu0 %v2313_v26  ;;  %2212 = vmatpush3.bf16.msra.mxu1 %v2313_v26 }
  0x4e   : > { %1952 = vmatprep.subr.bf16.mxu0 %v2314_v27  ;;  %2205 = vmatprep.subr.bf16.mxu1 %v2314_v27  ;;  %v418_v27 = vld [vmem:[#allocation2 + $0x8] sm:$0xff] }
  0x51   : > { %1953 = vmatpush3.bf16.msra.mxu0 %v2315_v28  ;;  %2213 = vmatpush3.bf16.msra.mxu1 %v2315_v28 }
  0x52   : > { %1954 = vmatprep.subr.bf16.mxu0 %v2316_v29  ;;  %2206 = vmatprep.subr.bf16.mxu1 %v2316_v29  ;;  %v434_v29 = vld [vmem:[#allocation2 + $0x88] sm:$0xff] }
  0x55   : > { %1955 = vmatpush3.bf16.msra.mxu0 %v2317_v30  ;;  %2214 = vmatpush3.bf16.msra.mxu1 %v2317_v30 }
  0x56   : > { %1956 = vmatprep.subr.bf16.mxu0 %v2318_v31  ;;  %2207 = vmatprep.subr.bf16.mxu1 %v2318_v31 }
  0x59   : > { %1957 = vmatpush3.bf16.msra.mxu0 %v2319_v32  ;;  %2215 = vmatpush3.bf16.msra.mxu1 %v2319_v32 }
  0x5a   : > { %1958 = vmatprep.subr.bf16.mxu0 %v2320_v33  ;;  %2208 = vmatprep.subr.bf16.mxu1 %v2320_v33 }
  0x5d   : > { %1959 = vmatpush3.bf16.msra.mxu0 %v2321_v34  ;;  %2216 = vmatpush3.bf16.msra.mxu1 %v2321_v34 }
  0x5e   : > { %1960 = vmatprep.subr.bf16.mxu0 %v2322_v35  ;;  %2209 = vmatprep.subr.bf16.mxu1 %v2322_v35 }
  0x61   : > { %1961 = vmatpush3.bf16.msra.mxu0 %v2323_v36  ;;  %2217 = vmatpush3.bf16.msra.mxu1 %v2323_v36 }
  0x64   : > { %578 = vmatmul.mubr.bf16.vlgmr.msra.gmra.mrb[0].mxu0 %v348_v39  ;;  %642 = vmatmul.mubr.bf16.vlgmr.msra.gmra.mrb[0].mxu1 %v364_v40  ;;  %v419_v39 = vld [vmem:[#allocation2 + $0x10] sm:$0xff] }
  0x65   : > { %585 = vmatprep.mubr.bf16.mxu0 %v351_v41  ;;  %649 = vmatprep.mubr.bf16.mxu1 %v367_v42  ;;  %v435_v41 = vld [vmem:[#allocation2 + $0x90] sm:$0xff] }
  0x6c   : > { %586 = vmatmul.mubr.bf16.gmra.mrb[4].mxu0 %v350_v45  ;;  %650 = vmatmul.mubr.bf16.gmra.mrb[4].mxu1 %v366_v46 }
  0x6d   : > { %593 = vmatprep.mubr.bf16.mxu0 %v353_v47  ;;  %657 = vmatprep.mubr.bf16.mxu1 %v369_v48  ;;  %v420_v47 = vld [vmem:[#allocation2 + $0x18] sm:$0xff] }
  0x74   : > { %594 = vmatmul.mubr.bf16.gmra.mrb[8].mxu0 %v352_v51  ;;  %658 = vmatmul.mubr.bf16.gmra.mrb[8].mxu1 %v368_v52 }
  0x75   : > { %601 = vmatprep.mubr.bf16.mxu0 %v355_v53  ;;  %665 = vmatprep.mubr.bf16.mxu1 %v371_v54 }
  0x7c   : > { %602 = vmatmul.mubr.bf16.gmra.mrb[12].mxu0 %v354_v57  ;;  %666 = vmatmul.mubr.bf16.gmra.mrb[12].mxu1 %v370_v58 }
  0x7d   : > { %609 = vmatprep.mubr.bf16.mxu0 %v357_v59  ;;  %673 = vmatprep.mubr.bf16.mxu1 %v373_v60  ;;  %v421_v59 = vld [vmem:[#allocation2 + $0x20] sm:$0xff] }
  0x84   : > { %610 = vmatmul.mubr.bf16.gmra.mrb[16].mxu0 %v356_v63  ;;  %674 = vmatmul.mubr.bf16.gmra.mrb[16].mxu1 %v372_v0 }
  0x85   : > { %617 = vmatprep.mubr.bf16.mxu0 %v359_v1  ;;  %681 = vmatprep.mubr.bf16.mxu1 %v375_v2 }
  0x8c   : > { %618 = vmatmul.mubr.bf16.gmra.mrb[20].mxu0 %v358_v5  ;;  %682 = vmatmul.mubr.bf16.gmra.mrb[20].mxu1 %v374_v6  ;;  %v438_v5 = vld [vmem:[#allocation2 + $0xa8] sm:$0xff] }
  0x8d   : > { %625 = vmatprep.mubr.bf16.mxu0 %v361_v7  ;;  %689 = vmatprep.mubr.bf16.mxu1 %v377_v8 }
  0x94   : > { %626 = vmatmul.mubr.bf16.gmra.mrb[24].mxu0 %v360_v11  ;;  %690 = vmatmul.mubr.bf16.gmra.mrb[24].mxu1 %v376_v12 }
  0x95   : > { %633 = vmatprep.mubr.bf16.mxu0 %v363_v13  ;;  %697 = vmatprep.mubr.bf16.mxu1 %v379_v14 }
  0x9c   : > { %634 = vmatmul.mubr.bf16.gmra.mrb[28].mxu0 %v362_v15  ;;  %698 = vmatmul.mubr.bf16.gmra.mrb[28].mxu1 %v378_v16  ;;  %v423_v15 = vld [vmem:[#allocation2 + $0x30] sm:$0xff] }
 0x137   : > { %v1962_v17 = vpop.f32.mrb[0].mxu0  ;;  %v2010_v18 = vpop.f32.mrb[0].mxu1 }
 0x138   : > { %v1963_v20 = vpop.f32.mrb[1].mxu0  ;;  %v2011_v22 = vpop.f32.mrb[1].mxu1 }
 0x139   : > { %v1964_v23 = vadd.f32 %v1963_v20, %v1962_v17  ;;  %v2012_v24 = vadd.f32 %v2011_v22, %v2010_v18  ;;  %v1965_v25 = vpop.f32.mrb[2].mxu0  ;;  %v2013_v26 = vpop.f32.mrb[2].mxu1  ;;  %v439_v17 = vld [vmem:[#allocation2 + $0xb0] sm:$0xff] }
 0x13a   : > { %v1966_v28 = vpop.f32.mrb[3].mxu0  ;;  %v2014_v30 = vpop.f32.mrb[3].mxu1 }
 0x13b   : > { %v706_v31 = vadd.f32 %v1964_v23, %v417_v19  ;;  %v722_v32 = vadd.f32 %v2012_v24, %v433_v21  ;;  %v1967_v33 = vadd.f32 %v1966_v28, %v1965_v25  ;;  %v2015_v34 = vadd.f32 %v2014_v30, %v2013_v26  ;;  %v424_v23 = vld [vmem:[#allocation2 + $0x38] sm:$0xff] }
 0x13c   : > { %v440_v25 = vld [vmem:[#allocation2 + $0xb8] sm:$0xff] }
 0x13d   : > { %738 = vst [vmem:[#allocation2] sm:$0xff] %v706_v31  ;;  %754 = vst [vmem:[#allocation2 + $0x80] sm:$0xff] %v722_v32  ;;  %v707_v35 = vadd.f32 %v1967_v33, %v418_v27  ;;  %v723_v36 = vadd.f32 %v2015_v34, %v434_v29 }
 0x13f   : > { %739 = vst [vmem:[#allocation2 + $0x8] sm:$0xff] %v707_v35  ;;  %755 = vst [vmem:[#allocation2 + $0x88] sm:$0xff] %v723_v36  ;;  %v1968_v37 = vpop.f32.mrb[4].mxu0  ;;  %v2016_v38 = vpop.f32.mrb[4].mxu1  ;;  %v425_v35 = vld [vmem:[#allocation2 + $0x40] sm:$0xff] }
 0x140   : > { %v1969_v40 = vpop.f32.mrb[5].mxu0  ;;  %v2017_v42 = vpop.f32.mrb[5].mxu1 }
 0x141   : > { %v1970_v43 = vadd.f32 %v1969_v40, %v1968_v37  ;;  %v2018_v44 = vadd.f32 %v2017_v42, %v2016_v38  ;;  %v1971_v45 = vpop.f32.mrb[6].mxu0  ;;  %v2019_v46 = vpop.f32.mrb[6].mxu1  ;;  %v441_v37 = vld [vmem:[#allocation2 + $0xc0] sm:$0xff] }
 0x142   : > { %v1972_v48 = vpop.f32.mrb[7].mxu0  ;;  %v2020_v50 = vpop.f32.mrb[7].mxu1 }
 0x143   : > { %v708_v51 = vadd.f32 %v1970_v43, %v419_v39  ;;  %v724_v52 = vadd.f32 %v2018_v44, %v435_v41  ;;  %v1973_v53 = vadd.f32 %v1972_v48, %v1971_v45  ;;  %v2021_v54 = vadd.f32 %v2020_v50, %v2019_v46  ;;  %v426_v43 = vld [vmem:[#allocation2 + $0x48] sm:$0xff] }
 0x144   : > { %v442_v45 = vld [vmem:[#allocation2 + $0xc8] sm:$0xff] }
 0x145   : > { %740 = vst [vmem:[#allocation2 + $0x10] sm:$0xff] %v708_v51  ;;  %756 = vst [vmem:[#allocation2 + $0x90] sm:$0xff] %v724_v52  ;;  %v709_v55 = vadd.f32 %v1973_v53, %v420_v47  ;;  %v725_v56 = vadd.f32 %v2021_v54, %v436_v49 }
 0x147   : > { %741 = vst [vmem:[#allocation2 + $0x18] sm:$0xff] %v709_v55  ;;  %757 = vst [vmem:[#allocation2 + $0x98] sm:$0xff] %v725_v56  ;;  %v1974_v57 = vpop.f32.mrb[8].mxu0  ;;  %v2022_v58 = vpop.f32.mrb[8].mxu1  ;;  %v427_v55 = vld [vmem:[#allocation2 + $0x50] sm:$0xff] }
 0x148   : > { %v1975_v60 = vpop.f32.mrb[9].mxu0  ;;  %v2023_v62 = vpop.f32.mrb[9].mxu1 }
 0x149   : > { %v1976_v63 = vadd.f32 %v1975_v60, %v1974_v57  ;;  %v2024_v0 = vadd.f32 %v2023_v62, %v2022_v58  ;;  %v1977_v1 = vpop.f32.mrb[10].mxu0  ;;  %v2025_v2 = vpop.f32.mrb[10].mxu1  ;;  %v443_v57 = vld [vmem:[#allocation2 + $0xd0] sm:$0xff] }
 0x14a   : > { %v1978_v4 = vpop.f32.mrb[11].mxu0  ;;  %v2026_v6 = vpop.f32.mrb[11].mxu1 }
 0x14b   : > { %v710_v7 = vadd.f32 %v1976_v63, %v421_v59  ;;  %v726_v8 = vadd.f32 %v2024_v0, %v437_v61  ;;  %v1979_v9 = vadd.f32 %v1978_v4, %v1977_v1  ;;  %v2027_v10 = vadd.f32 %v2026_v6, %v2025_v2  ;;  %v428_v63 = vld [vmem:[#allocation2 + $0x58] sm:$0xff] }
 0x14c   : > { %v444_v1 = vld [vmem:[#allocation2 + $0xd8] sm:$0xff] }
 0x14d   : > { %742 = vst [vmem:[#allocation2 + $0x20] sm:$0xff] %v710_v7  ;;  %758 = vst [vmem:[#allocation2 + $0xa0] sm:$0xff] %v726_v8  ;;  %v711_v11 = vadd.f32 %v1979_v9, %v422_v3  ;;  %v727_v12 = vadd.f32 %v2027_v10, %v438_v5 }
 0x14f   : > { %743 = vst [vmem:[#allocation2 + $0x28] sm:$0xff] %v711_v11  ;;  %759 = vst [vmem:[#allocation2 + $0xa8] sm:$0xff] %v727_v12  ;;  %v1980_v13 = vpop.f32.mrb[12].mxu0  ;;  %v2028_v14 = vpop.f32.mrb[12].mxu1  ;;  %v429_v11 = vld [vmem:[#allocation2 + $0x60] sm:$0xff] }
 0x150   : > { %v1981_v16 = vpop.f32.mrb[13].mxu0  ;;  %v2029_v18 = vpop.f32.mrb[13].mxu1 }
 0x151   : > { %v1982_v19 = vadd.f32 %v1981_v16, %v1980_v13  ;;  %v2030_v20 = vadd.f32 %v2029_v18, %v2028_v14  ;;  %v1983_v21 = vpop.f32.mrb[14].mxu0  ;;  %v2031_v22 = vpop.f32.mrb[14].mxu1  ;;  %v445_v13 = vld [vmem:[#allocation2 + $0xe0] sm:$0xff] }
 0x152   : > { %v1984_v24 = vpop.f32.mrb[15].mxu0  ;;  %v2032_v26 = vpop.f32.mrb[15].mxu1 }
 0x153   : > { %v712_v27 = vadd.f32 %v1982_v19, %v423_v15  ;;  %v728_v28 = vadd.f32 %v2030_v20, %v439_v17  ;;  %v1985_v29 = vadd.f32 %v1984_v24, %v1983_v21  ;;  %v2033_v30 = vadd.f32 %v2032_v26, %v2031_v22  ;;  %v430_v19 = vld [vmem:[#allocation2 + $0x68] sm:$0xff] }
 0x154   : > { %v446_v21 = vld [vmem:[#allocation2 + $0xe8] sm:$0xff] }
 0x155   : > { %744 = vst [vmem:[#allocation2 + $0x30] sm:$0xff] %v712_v27  ;;  %760 = vst [vmem:[#allocation2 + $0xb0] sm:$0xff] %v728_v28  ;;  %v713_v31 = vadd.f32 %v1985_v29, %v424_v23  ;;  %v729_v32 = vadd.f32 %v2033_v30, %v440_v25 }
 0x157   : > { %745 = vst [vmem:[#allocation2 + $0x38] sm:$0xff] %v713_v31  ;;  %761 = vst [vmem:[#allocation2 + $0xb8] sm:$0xff] %v729_v32  ;;  %v1986_v33 = vpop.f32.mrb[16].mxu0  ;;  %v2034_v34 = vpop.f32.mrb[16].mxu1  ;;  %v431_v31 = vld [vmem:[#allocation2 + $0x70] sm:$0xff] }
 0x158   : > { %v1987_v36 = vpop.f32.mrb[17].mxu0  ;;  %v2035_v38 = vpop.f32.mrb[17].mxu1 }
 0x159   : > { %v1988_v39 = vadd.f32 %v1987_v36, %v1986_v33  ;;  %v2036_v40 = vadd.f32 %v2035_v38, %v2034_v34  ;;  %v1989_v41 = vpop.f32.mrb[18].mxu0  ;;  %v2037_v42 = vpop.f32.mrb[18].mxu1  ;;  %v447_v33 = vld [vmem:[#allocation2 + $0xf0] sm:$0xff] }
 0x15a   : > { %v1990_v44 = vpop.f32.mrb[19].mxu0  ;;  %v2038_v46 = vpop.f32.mrb[19].mxu1 }
 0x15b   : > { %v714_v47 = vadd.f32 %v1988_v39, %v425_v35  ;;  %v730_v48 = vadd.f32 %v2036_v40, %v441_v37  ;;  %v1991_v49 = vadd.f32 %v1990_v44, %v1989_v41  ;;  %v2039_v50 = vadd.f32 %v2038_v46, %v2037_v42  ;;  %v432_v39 = vld [vmem:[#allocation2 + $0x78] sm:$0xff] }
 0x15c   : > { %v448_v41 = vld [vmem:[#allocation2 + $0xf8] sm:$0xff] }
 0x15d   : > { %746 = vst [vmem:[#allocation2 + $0x40] sm:$0xff] %v714_v47  ;;  %762 = vst [vmem:[#allocation2 + $0xc0] sm:$0xff] %v730_v48  ;;  %v715_v51 = vadd.f32 %v1991_v49, %v426_v43  ;;  %v731_v52 = vadd.f32 %v2039_v50, %v442_v45  ;;  %v2324_v49 = vld [vmem:[%s2727_s3] sm:$0xff] (!%p1749_p12)  }
 0x15e   : > { %v2325_v50 = vld [vmem:[%s2726_s2] sm:$0xff] (!%p1749_p12)   ;;  %2106 = vmatprep.subr.bf16.mxu1 (!%p1749_p12), %v2324_v49 }
 0x15f   : > { %747 = vst [vmem:[#allocation2 + $0x48] sm:$0xff] %v715_v51  ;;  %763 = vst [vmem:[#allocation2 + $0xc8] sm:$0xff] %v731_v52  ;;  %v1992_v53 = vpop.f32.mrb[20].mxu0  ;;  %v2040_v54 = vpop.f32.mrb[20].mxu1  ;;  %v2326_v51 = vld [vmem:[%s2727_s3 + $0x8] sm:$0xff] (!%p1749_p12)   ;;  %2154 = vmatprep.subr.bf16.mxu0 (!%p1749_p12), %v2325_v50  ;;  %2107 = vmatpush3.bf16.msra.mxu1 (!%p1749_p12), %v2324_v49 }
 0x160   : > { %v1993_v56 = vpop.f32.mrb[21].mxu0  ;;  %v2041_v58 = vpop.f32.mrb[21].mxu1  ;;  %v2327_v52 = vld [vmem:[%s2726_s2 + $0x8] sm:$0xff] (!%p1749_p12)   ;;  %2155 = vmatpush3.bf16.msra.mxu0 (!%p1749_p12), %v2325_v50  ;;  %2108 = vmatprep.subr.bf16.mxu1 (!%p1749_p12), %v2326_v51  ;;  %v2351_v50 = vld [vmem:[%s2614_s20 + $0x58] sm:$0xff] (!%p1749_p12)  }
 0x161   : > { %v1994_v59 = vadd.f32 %v1993_v56, %v1992_v53  ;;  %v2042_v60 = vadd.f32 %v2041_v58, %v2040_v54  ;;  %v1995_v61 = vpop.f32.mrb[22].mxu0  ;;  %v2043_v62 = vpop.f32.mrb[22].mxu1  ;;  %v2328_v53 = vld [vmem:[%s2727_s3 + $0x10] sm:$0xff] (!%p1749_p12)   ;;  %2156 = vmatprep.subr.bf16.mxu0 (!%p1749_p12), %v2327_v52  ;;  %v2331_v56 = vld [vmem:[%s2726_s2 + $0x18] sm:$0xff] (!%p1749_p12)   ;;  %v2333_v58 = vld [vmem:[%s2726_s2 + $0x20] sm:$0xff] (!%p1749_p12)  }
 0x162   : > { %v1996_v0 = vpop.f32.mrb[23].mxu0  ;;  %v2044_v2 = vpop.f32.mrb[23].mxu1  ;;  %v2329_v54 = vld [vmem:[%s2726_s2 + $0x10] sm:$0xff] (!%p1749_p12)  }
 0x163   : > { %v716_v3 = vadd.f32 %v1994_v59, %v427_v55  ;;  %v732_v4 = vadd.f32 %v2042_v60, %v443_v57  ;;  %v1997_v5 = vadd.f32 %v1996_v0, %v1995_v61  ;;  %v2045_v6 = vadd.f32 %v2044_v2, %v2043_v62  ;;  %2109 = vmatpush3.bf16.msra.mxu1 (!%p1749_p12), %v2326_v51  ;;  %v2330_v55 = vld [vmem:[%s2727_s3 + $0x18] sm:$0xff] (!%p1749_p12)   ;;  %v2332_v57 = vld [vmem:[%s2727_s3 + $0x20] sm:$0xff] (!%p1749_p12)   ;;  %v2334_v59 = vld [vmem:[%s2727_s3 + $0x28] sm:$0xff] (!%p1749_p12)  }
 0x164   : > { %2157 = vmatpush3.bf16.msra.mxu0 (!%p1749_p12), %v2327_v52  ;;  %2110 = vmatprep.subr.bf16.mxu1 (!%p1749_p12), %v2328_v53  ;;  %v811_v60 = vld [vmem:[#allocation2] sm:$0xff] (!%p1749_p12)  ;;  %v812_v61 = vld [vmem:[#allocation2 + $0x8] sm:$0xff] (!%p1749_p12)  ;;  %v2337_v2 = vld [vmem:[%s2726_s2 + $0x30] sm:$0xff] (!%p1749_p12)  }
 0x165   : > { %748 = vst [vmem:[#allocation2 + $0x50] sm:$0xff] %v716_v3  ;;  %764 = vst [vmem:[#allocation2 + $0xd0] sm:$0xff] %v732_v4  ;;  %v717_v7 = vadd.f32 %v1997_v5, %v428_v63  ;;  %v733_v8 = vadd.f32 %v2045_v6, %v444_v1  ;;  %2158 = vmatprep.subr.bf16.mxu0 (!%p1749_p12), %v2329_v54  ;;  %v2335_v62 = vld [vmem:[%s2726_s2 + $0x28] sm:$0xff] (!%p1749_p12)   ;;  %v843_v63 = vpack.c.bf16 (!%p1749_p12), %v812_v61, %v811_v60  ;;  %v2340_v0 = vld [vmem:[%s2614_s20] sm:$0xff] (!%p1749_p12)  }
 0x166   : > { %v2336_v1 = vld [vmem:[%s2727_s3 + $0x30] sm:$0xff] (!%p1749_p12)   ;;  %2170 = vmatprep.mubr.bf16.mxu0 (!%p1749_p12), %v2340_v0  ;;  %v2338_v3 = vld [vmem:[%s2727_s3 + $0x38] sm:$0xff] (!%p1749_p12)   ;;  %v2352_v52 = vld [vmem:[%s2614_s20 + $0x60] sm:$0xff] (!%p1749_p12)  }
 0x167   : > { %749 = vst [vmem:[#allocation2 + $0x58] sm:$0xff] %v717_v7  ;;  %765 = vst [vmem:[#allocation2 + $0xd8] sm:$0xff] %v733_v8  ;;  %v1998_v9 = vpop.f32.mrb[24].mxu0  ;;  %v2046_v10 = vpop.f32.mrb[24].mxu1  ;;  %2111 = vmatpush3.bf16.msra.mxu1 (!%p1749_p12), %v2328_v53  ;;  %2122 = vmatprep.mubr.bf16.mxu1 (!%p1749_p12), %v843_v63  ;;  %v2339_v4 = vld [vmem:[%s2726_s2 + $0x38] sm:$0xff] (!%p1749_p12)   ;;  %v813_v5 = vld [vmem:[#allocation2 + $0x10] sm:$0xff] (!%p1749_p12) }
 0x168   : > { %v1999_v12 = vpop.f32.mrb[25].mxu0  ;;  %v2047_v14 = vpop.f32.mrb[25].mxu1  ;;  %2159 = vmatpush3.bf16.msra.mxu0 (!%p1749_p12), %v2329_v54  ;;  %2112 = vmatprep.subr.bf16.mxu1 (!%p1749_p12), %v2330_v55  ;;  %v814_v6 = vld [vmem:[#allocation2 + $0x18] sm:$0xff] (!%p1749_p12)  ;;  %v815_v7 = vld [vmem:[#allocation2 + $0x20] sm:$0xff] (!%p1749_p12)  ;;  %v816_v8 = vld [vmem:[#allocation2 + $0x28] sm:$0xff] (!%p1749_p12) }
 0x169   : > { %v2000_v15 = vadd.f32 %v1999_v12, %v1998_v9  ;;  %v2048_v16 = vadd.f32 %v2047_v14, %v2046_v10  ;;  %v2001_v17 = vpop.f32.mrb[26].mxu0  ;;  %v2049_v18 = vpop.f32.mrb[26].mxu1  ;;  %2160 = vmatprep.subr.bf16.mxu0 (!%p1749_p12), %v2331_v56  ;;  %v844_v9 = vpack.c.bf16 (!%p1749_p12), %v814_v6, %v813_v5  ;;  %v2341_v10 = vld [vmem:[%s2614_s20 + $0x8] sm:$0xff] (!%p1749_p12)   ;;  %v2342_v12 = vld [vmem:[%s2614_s20 + $0x10] sm:$0xff] (!%p1749_p12)   ;;  %v818_v14 = vld [vmem:[#allocation2 + $0x38] sm:$0xff] (!%p1749_p12) }
 0x16a   : > { %v2002_v20 = vpop.f32.mrb[27].mxu0  ;;  %v2050_v22 = vpop.f32.mrb[27].mxu1  ;;  %v2354_v60 = vld [vmem:[%s2614_s20 + $0x70] sm:$0xff] (!%p1749_p12)   ;;  %v2355_v0 = vld [vmem:[%s2614_s20 + $0x78] sm:$0xff] (!%p1749_p12)  }
 0x16b   : > { %v718_v23 = vadd.f32 %v2000_v15, %v429_v11  ;;  %v734_v24 = vadd.f32 %v2048_v16, %v445_v13  ;;  %v2003_v25 = vadd.f32 %v2002_v20, %v2001_v17  ;;  %v2051_v26 = vadd.f32 %v2050_v22, %v2049_v18  ;;  %2113 = vmatpush3.bf16.msra.mxu1 (!%p1749_p12), %v2330_v55  ;;  %v817_v13 = vld [vmem:[#allocation2 + $0x30] sm:$0xff] (!%p1749_p12)  ;;  %v819_v15 = vld [vmem:[#allocation2 + $0x40] sm:$0xff] (!%p1749_p12)  ;;  %v820_v16 = vld [vmem:[#allocation2 + $0x48] sm:$0xff] (!%p1749_p12) }
 0x16c   : > { %2161 = vmatpush3.bf16.msra.mxu0 (!%p1749_p12), %v2331_v56  ;;  %2114 = vmatprep.subr.bf16.mxu1 (!%p1749_p12), %v2332_v57  ;;  %v845_v11 = vpack.c.bf16 (!%p1749_p12), %v816_v8, %v815_v7  ;;  %v846_v17 = vpack.c.bf16 (!%p1749_p12), %v818_v14, %v817_v13  ;;  %v2343_v18 = vld [vmem:[%s2614_s20 + $0x18] sm:$0xff] (!%p1749_p12)   ;;  %v2344_v20 = vld [vmem:[%s2614_s20 + $0x20] sm:$0xff] (!%p1749_p12)   ;;  %v837_v53 = vld [vmem:[#allocation2 + $0xd0] sm:$0xff] (!%p1749_p12) }
 0x16d   : > { %750 = vst [vmem:[#allocation2 + $0x60] sm:$0xff] %v718_v23  ;;  %766 = vst [vmem:[#allocation2 + $0xe0] sm:$0xff] %v734_v24  ;;  %v719_v27 = vadd.f32 %v2003_v25, %v430_v19  ;;  %v735_v28 = vadd.f32 %v2051_v26, %v446_v21  ;;  %2162 = vmatprep.subr.bf16.mxu0 (!%p1749_p12), %v2333_v58  ;;  %v847_v19 = vpack.c.bf16 (!%p1749_p12), %v820_v16, %v819_v15  ;;  %v821_v21 = vld [vmem:[#allocation2 + $0x50] sm:$0xff] (!%p1749_p12)  ;;  %v2345_v26 = vld [vmem:[%s2614_s20 + $0x28] sm:$0xff] (!%p1749_p12)  }
 0x16e   : > { %v822_v22 = vld [vmem:[#allocation2 + $0x58] sm:$0xff] (!%p1749_p12) }
 0x16f   : > { %751 = vst [vmem:[#allocation2 + $0x68] sm:$0xff] %v719_v27  ;;  %767 = vst [vmem:[#allocation2 + $0xe8] sm:$0xff] %v735_v28  ;;  %v2004_v29 = vpop.f32.mrb[28].mxu0  ;;  %v2052_v30 = vpop.f32.mrb[28].mxu1  ;;  %2115 = vmatpush3.bf16.msra.mxu1 (!%p1749_p12), %v2332_v57  ;;  %v848_v25 = vpack.c.bf16 (!%p1749_p12), %v822_v22, %v821_v21  ;;  %v2346_v28 = vld [vmem:[%s2614_s20 + $0x30] sm:$0xff] (!%p1749_p12)   ;;  %v838_v54 = vld [vmem:[#allocation2 + $0xd8] sm:$0xff] (!%p1749_p12) }
 0x170   : > { %v2005_v32 = vpop.f32.mrb[29].mxu0  ;;  %v2053_v34 = vpop.f32.mrb[29].mxu1  ;;  %2163 = vmatpush3.bf16.msra.mxu0 (!%p1749_p12), %v2333_v58  ;;  %2116 = vmatprep.subr.bf16.mxu1 (!%p1749_p12), %v2334_v59  ;;  %v856_v57 = vpack.c.bf16 (!%p1749_p12), %v838_v54, %v837_v53  ;;  %v2353_v58 = vld [vmem:[%s2614_s20 + $0x68] sm:$0xff] (!%p1749_p12)  }
 0x171   : > { %v2006_v35 = vadd.f32 %v2005_v32, %v2004_v29  ;;  %v2054_v36 = vadd.f32 %v2053_v34, %v2052_v30  ;;  %v2007_v37 = vpop.f32.mrb[30].mxu0  ;;  %v2055_v38 = vpop.f32.mrb[30].mxu1  ;;  %773 = sbr.rel (%p1749_p12) target bundleno = 663 (0x297), region = 71  ;;  %2164 = vmatprep.subr.bf16.mxu0 (!%p1749_p12), %v2335_v62  ;;  %v828_v32 = vld [vmem:[#allocation2 + $0x88] sm:$0xff] (!%p1749_p12)  ;;  %v2347_v34 = vld [vmem:[%s2614_s20 + $0x38] sm:$0xff] (!%p1749_p12)  }
 0x172   : > { %v2008_v40 = vpop.f32.mrb[31].mxu0  ;;  %v2056_v42 = vpop.f32.mrb[31].mxu1 }
 0x173   : > { %v720_v43 = vadd.f32 %v2006_v35, %v431_v31  ;;  %v736_v44 = vadd.f32 %v2054_v36, %v447_v33  ;;  %v2009_v45 = vadd.f32 %v2008_v40, %v2007_v37  ;;  %v2057_v46 = vadd.f32 %v2056_v42, %v2055_v38  ;;  %2117 = vmatpush3.bf16.msra.mxu1 (!%p1749_p12), %v2334_v59  ;;  %v827_v31 = vld [vmem:[#allocation2 + $0x80] sm:$0xff] (!%p1749_p12)  ;;  %v829_v37 = vld [vmem:[#allocation2 + $0x90] sm:$0xff] (!%p1749_p12)  ;;  %v830_v38 = vld [vmem:[#allocation2 + $0x98] sm:$0xff] (!%p1749_p12) }
 0x174   : > { %2165 = vmatpush3.bf16.msra.mxu0 (!%p1749_p12), %v2335_v62  ;;  %2118 = vmatprep.subr.bf16.mxu1 (!%p1749_p12), %v2336_v1  ;;  %v823_v23 = vld [vmem:[#allocation2 + $0x60] sm:$0xff] (!%p1749_p12)  ;;  %v851_v35 = vpack.c.bf16 (!%p1749_p12), %v828_v32, %v827_v31  ;;  %v832_v40 = vld [vmem:[#allocation2 + $0xa8] sm:$0xff] (!%p1749_p12) }
 0x175   : > { %752 = vst [vmem:[#allocation2 + $0x70] sm:$0xff] %v720_v43  ;;  %768 = vst [vmem:[#allocation2 + $0xf0] sm:$0xff] %v736_v44  ;;  %v721_v47 = vadd.f32 %v2009_v45, %v432_v39  ;;  %v737_v48 = vadd.f32 %v2057_v46, %v448_v41  ;;  %2166 = vmatprep.subr.bf16.mxu0 (!%p1749_p12), %v2337_v2  ;;  %v2348_v36 = vld [vmem:[%s2614_s20 + $0x40] sm:$0xff] (!%p1749_p12)   ;;  %v852_v41 = vpack.c.bf16 (!%p1749_p12), %v830_v38, %v829_v37  ;;  %v2349_v42 = vld [vmem:[%s2614_s20 + $0x48] sm:$0xff] (!%p1749_p12)  }
 0x176   : > { %v824_v24 = vld [vmem:[#allocation2 + $0x68] sm:$0xff] (!%p1749_p12)  ;;  %v831_v39 = vld [vmem:[#allocation2 + $0xa0] sm:$0xff] (!%p1749_p12)  ;;  %v2350_v44 = vld [vmem:[%s2614_s20 + $0x50] sm:$0xff] (!%p1749_p12)  }
 0x177   : > { %753 = vst [vmem:[#allocation2 + $0x78] sm:$0xff] %v721_v47  ;;  %769 = vst [vmem:[#allocation2 + $0xf8] sm:$0xff] %v737_v48  ;;  %2119 = vmatpush3.bf16.msra.mxu1 (!%p1749_p12), %v2336_v1  ;;  %v849_v27 = vpack.c.bf16 (!%p1749_p12), %v824_v24, %v823_v23  ;;  %v853_v43 = vpack.c.bf16 (!%p1749_p12), %v832_v40, %v831_v39  ;;  %v833_v45 = vld [vmem:[#allocation2 + $0xb0] sm:$0xff] (!%p1749_p12)  ;;  %v834_v46 = vld [vmem:[#allocation2 + $0xb8] sm:$0xff] (!%p1749_p12) }
 0x178   : > { %2167 = vmatpush3.bf16.msra.mxu0 %v2337_v2  ;;  %2120 = vmatprep.subr.bf16.mxu1 %v2338_v3  ;;  %v835_v47 = vld [vmem:[#allocation2 + $0xc0] sm:$0xff]  ;;  %v836_v48 = vld [vmem:[#allocation2 + $0xc8] sm:$0xff]  ;;  %v854_v49 = vpack.c.bf16 %v834_v46, %v833_v45 }
 0x179   : > { %2168 = vmatprep.subr.bf16.mxu0 %v2339_v4  ;;  %v855_v51 = vpack.c.bf16 %v836_v48, %v835_v47  ;;  %v839_v55 = vld [vmem:[#allocation2 + $0xe0] sm:$0xff]  ;;  %v840_v56 = vld [vmem:[#allocation2 + $0xe8] sm:$0xff] }
 0x17a   : > { %v857_v59 = vpack.c.bf16 %v840_v56, %v839_v55 }
 0x17b   : > { %2121 = vmatpush3.bf16.msra.mxu1 %v2338_v3  ;;  %v2653_v3 = vld [vmem:[%s2728_s4] ss:$0 sm:$0xff] }
 0x17c   : > { %2169 = vmatpush3.bf16.msra.mxu0 %v2339_v4  ;;  %v825_v29 = vld [vmem:[#allocation2 + $0x70] sm:$0xff] }
 0x17d   : > { %v841_v61 = vld [vmem:[#allocation2 + $0xf0] sm:$0xff] }
 0x17e   : > { %2123 = vmatmul.mubr.bf16.vlgmr.msra.gmra.mrb[0].mxu1 %v844_v9  ;;  %v826_v30 = vld [vmem:[#allocation2 + $0x78] sm:$0xff] }
 0x17f   : > { %2171 = vmatmul.mubr.bf16.vlgmr.msra.gmra.mrb[0].mxu0 %v2341_v10  ;;  %2126 = vmatprep.mubr.bf16.mxu1 %v845_v11  ;;  %v850_v33 = vpack.c.bf16 %v826_v30, %v825_v29  ;;  %v842_v62 = vld [vmem:[#allocation2 + $0xf8] sm:$0xff] }
 0x180   : > { %2174 = vmatprep.mubr.bf16.mxu0 %v2342_v12  ;;  %v858_v63 = vpack.c.bf16 %v842_v62, %v841_v61 }
 0x186   : > { %2127 = vmatmul.mubr.bf16.gmra.mrb[4].mxu1 %v846_v17 }
 0x187   : > { %2175 = vmatmul.mubr.bf16.gmra.mrb[4].mxu0 %v2343_v18  ;;  %2130 = vmatprep.mubr.bf16.mxu1 %v847_v19 }
 0x188   : > { %2178 = vmatprep.mubr.bf16.mxu0 %v2344_v20 }
 0x18e   : > { %2131 = vmatmul.mubr.bf16.gmra.mrb[8].mxu1 %v848_v25 }
 0x18f   : > { %2179 = vmatmul.mubr.bf16.gmra.mrb[8].mxu0 %v2345_v26  ;;  %2134 = vmatprep.mubr.bf16.mxu1 %v849_v27 }
 0x190   : > { %2182 = vmatprep.mubr.bf16.mxu0 %v2346_v28 }
 0x196   : > { %2135 = vmatmul.mubr.bf16.gmra.mrb[12].mxu1 %v850_v33 }
 0x197   : > { %2183 = vmatmul.mubr.bf16.gmra.mrb[12].mxu0 %v2347_v34  ;;  %2138 = vmatprep.mubr.bf16.mxu1 %v851_v35 }
 0x198   : > { %2186 = vmatprep.mubr.bf16.mxu0 %v2348_v36 }
 0x19e   : > { %2139 = vmatmul.mubr.bf16.gmra.mrb[16].mxu1 %v852_v41 }
 0x19f   : > { %2187 = vmatmul.mubr.bf16.gmra.mrb[16].mxu0 %v2349_v42  ;;  %2142 = vmatprep.mubr.bf16.mxu1 %v853_v43 }
 0x1a0   : > { %2190 = vmatprep.mubr.bf16.mxu0 %v2350_v44 }
 0x1a6   : > { %2143 = vmatmul.mubr.bf16.gmra.mrb[20].mxu1 %v854_v49 }
 0x1a7   : > { %2191 = vmatmul.mubr.bf16.gmra.mrb[20].mxu0 %v2351_v50  ;;  %2146 = vmatprep.mubr.bf16.mxu1 %v855_v51 }
 0x1a8   : > { %2194 = vmatprep.mubr.bf16.mxu0 %v2352_v52 }
 0x1ae   : > { %2147 = vmatmul.mubr.bf16.gmra.mrb[24].mxu1 %v856_v57 }
 0x1af   : > { %2195 = vmatmul.mubr.bf16.gmra.mrb[24].mxu0 %v2353_v58  ;;  %2150 = vmatprep.mubr.bf16.mxu1 %v857_v59 }
 0x1b0   : > { %2198 = vmatprep.mubr.bf16.mxu0 %v2354_v60 }
 0x1b6   : > { %2151 = vmatmul.mubr.bf16.gmra.mrb[28].mxu1 %v858_v63 }
 0x1b7   : > { %2199 = vmatmul.mubr.bf16.gmra.mrb[28].mxu0 %v2355_v0 }
 0x251   : > { %v2124_v1 = vpop.f32.mrb[0].mxu1 }
 0x252   : > { %v2172_v2 = vpop.f32.mrb[0].mxu0  ;;  %v973_v4 = vpop.f32.mrb[1].mxu1 }
 0x253   : > { %v1287_v5 = vadd.f32 %v2172_v2, %v2124_v1  ;;  %v1278_v6 = vpop.f32.mrb[1].mxu0  ;;  %v2125_v7 = vpop.f32.mrb[2].mxu1 }
 0x254   : > { %v1279_v8 = vadd.f32 %v1278_v6, %v973_v4  ;;  %v2173_v9 = vpop.f32.mrb[2].mxu0  ;;  %v976_v10 = vpop.f32.mrb[3].mxu1 }
 0x255   : > { %v1414_v11 = vadd.f32 %v2653_v3, %v1287_v5  ;;  %v1290_v12 = vadd.f32 %v2173_v9, %v2125_v7  ;;  %v1281_v13 = vpop.f32.mrb[3].mxu0 }
 0x256   : > { %v1412_v14 = vadd.f32 %v2653_v3, %v1279_v8  ;;  %v1282_v15 = vadd.f32 %v1281_v13, %v976_v10 }
 0x257   : > { %v1415_v16 = vadd.f32 %v2653_v3, %v1290_v12  ;;  %v1446_v18 = vmax.f32 %v1414_v11, 0.0 }
 0x258   : > { %v1413_v17 = vadd.f32 %v2653_v3, %v1282_v15  ;;  %v1444_v21 = vmax.f32 %v1412_v14, 0.0 }
 0x259   : > { %v1447_v19 = vmax.f32 %v1415_v16, 0.0  ;;  %v2128_v20 = vpop.f32.mrb[4].mxu1 }
 0x25a   : > { %v1445_v22 = vmax.f32 %v1413_v17, 0.0  ;;  %v2176_v23 = vpop.f32.mrb[4].mxu0  ;;  %v989_v24 = vpop.f32.mrb[5].mxu1 }
 0x25b   : > { %v1859_v25 = vpack.c.bf16 %v1447_v19, %v1446_v18  ;;  %v1303_v26 = vadd.f32 %v2176_v23, %v2128_v20  ;;  %v1294_v27 = vpop.f32.mrb[5].mxu0  ;;  %v2129_v28 = vpop.f32.mrb[6].mxu1 }
 0x25c   : > { %v1854_v29 = vpack.c.bf16 %v1445_v22, %v1444_v21  ;;  %v1295_v30 = vadd.f32 %v1294_v27, %v989_v24  ;;  %v2177_v31 = vpop.f32.mrb[6].mxu0  ;;  %v992_v32 = vpop.f32.mrb[7].mxu1 }
 0x25d   : > { %1931 = vst [vmem:[%s2528_s8 + $0x8] sm:$0xff] %v1859_v25   ;;  %v1418_v33 = vadd.f32 %v2653_v3, %v1303_v26  ;;  %v1306_v34 = vadd.f32 %v2177_v31, %v2129_v28  ;;  %v1297_v35 = vpop.f32.mrb[7].mxu0 }
 0x25e   : > { %1855 = vst [vmem:[%s2528_s8] sm:$0xff] %v1854_v29   ;;  %v1416_v36 = vadd.f32 %v2653_v3, %v1295_v30  ;;  %v1298_v37 = vadd.f32 %v1297_v35, %v992_v32 }
 0x25f   : > { %v1419_v38 = vadd.f32 %v2653_v3, %v1306_v34  ;;  %v1450_v40 = vmax.f32 %v1418_v33, 0.0 }
 0x260   : > { %v1417_v39 = vadd.f32 %v2653_v3, %v1298_v37  ;;  %v1448_v43 = vmax.f32 %v1416_v36, 0.0 }
 0x261   : > { %v1451_v41 = vmax.f32 %v1419_v38, 0.0  ;;  %v2132_v42 = vpop.f32.mrb[8].mxu1 }
 0x262   : > { %v1449_v44 = vmax.f32 %v1417_v39, 0.0  ;;  %v2180_v45 = vpop.f32.mrb[8].mxu0  ;;  %v1005_v46 = vpop.f32.mrb[9].mxu1 }
 0x263   : > { %v1869_v47 = vpack.c.bf16 %v1451_v41, %v1450_v40  ;;  %v1319_v48 = vadd.f32 %v2180_v45, %v2132_v42  ;;  %v1310_v49 = vpop.f32.mrb[9].mxu0  ;;  %v2133_v50 = vpop.f32.mrb[10].mxu1 }
 0x264   : > { %v1864_v51 = vpack.c.bf16 %v1449_v44, %v1448_v43  ;;  %v1311_v52 = vadd.f32 %v1310_v49, %v1005_v46  ;;  %v2181_v53 = vpop.f32.mrb[10].mxu0  ;;  %v1008_v54 = vpop.f32.mrb[11].mxu1 }
 0x265   : > { %1933 = vst [vmem:[%s2528_s8 + $0x18] sm:$0xff] %v1869_v47   ;;  %v1422_v55 = vadd.f32 %v2653_v3, %v1319_v48  ;;  %v1322_v56 = vadd.f32 %v2181_v53, %v2133_v50  ;;  %v1313_v57 = vpop.f32.mrb[11].mxu0 }
 0x266   : > { %1932 = vst [vmem:[%s2528_s8 + $0x10] sm:$0xff] %v1864_v51   ;;  %v1420_v58 = vadd.f32 %v2653_v3, %v1311_v52  ;;  %v1314_v59 = vadd.f32 %v1313_v57, %v1008_v54 }
 0x267   : > { %v1423_v60 = vadd.f32 %v2653_v3, %v1322_v56  ;;  %v1454_v62 = vmax.f32 %v1422_v55, 0.0 }
 0x268   : > { %v1421_v61 = vadd.f32 %v2653_v3, %v1314_v59  ;;  %v1452_v1 = vmax.f32 %v1420_v58, 0.0 }
 0x269   : > { %v1455_v63 = vmax.f32 %v1423_v60, 0.0  ;;  %v2136_v0 = vpop.f32.mrb[12].mxu1 }
 0x26a   : > { %v1453_v2 = vmax.f32 %v1421_v61, 0.0  ;;  %v2184_v4 = vpop.f32.mrb[12].mxu0  ;;  %v1021_v5 = vpop.f32.mrb[13].mxu1 }
 0x26b   : > { %v1879_v6 = vpack.c.bf16 %v1455_v63, %v1454_v62  ;;  %v1335_v7 = vadd.f32 %v2184_v4, %v2136_v0  ;;  %v1326_v8 = vpop.f32.mrb[13].mxu0  ;;  %v2137_v9 = vpop.f32.mrb[14].mxu1 }
 0x26c   : > { %v1874_v10 = vpack.c.bf16 %v1453_v2, %v1452_v1  ;;  %v1327_v11 = vadd.f32 %v1326_v8, %v1021_v5  ;;  %v2185_v12 = vpop.f32.mrb[14].mxu0  ;;  %v1024_v13 = vpop.f32.mrb[15].mxu1 }
 0x26d   : > { %1935 = vst [vmem:[%s2528_s8 + $0x28] sm:$0xff] %v1879_v6   ;;  %v1426_v14 = vadd.f32 %v2653_v3, %v1335_v7  ;;  %v1338_v15 = vadd.f32 %v2185_v12, %v2137_v9  ;;  %v1329_v16 = vpop.f32.mrb[15].mxu0 }
 0x26e   : > { %1934 = vst [vmem:[%s2528_s8 + $0x20] sm:$0xff] %v1874_v10   ;;  %v1424_v17 = vadd.f32 %v2653_v3, %v1327_v11  ;;  %v1330_v18 = vadd.f32 %v1329_v16, %v1024_v13 }
 0x26f   : > { %v1427_v19 = vadd.f32 %v2653_v3, %v1338_v15  ;;  %v1458_v21 = vmax.f32 %v1426_v14, 0.0 }
 0x270   : > { %v1425_v20 = vadd.f32 %v2653_v3, %v1330_v18  ;;  %v1456_v24 = vmax.f32 %v1424_v17, 0.0 }
 0x271   : > { %v1459_v22 = vmax.f32 %v1427_v19, 0.0  ;;  %v2140_v23 = vpop.f32.mrb[16].mxu1 }
 0x272   : > { %v1457_v25 = vmax.f32 %v1425_v20, 0.0  ;;  %v2188_v26 = vpop.f32.mrb[16].mxu0  ;;  %v1037_v27 = vpop.f32.mrb[17].mxu1 }
 0x273   : > { %v1889_v28 = vpack.c.bf16 %v1459_v22, %v1458_v21  ;;  %v1351_v29 = vadd.f32 %v2188_v26, %v2140_v23  ;;  %v1342_v30 = vpop.f32.mrb[17].mxu0  ;;  %v2141_v31 = vpop.f32.mrb[18].mxu1 }
 0x274   : > { %v1884_v32 = vpack.c.bf16 %v1457_v25, %v1456_v24  ;;  %v1343_v33 = vadd.f32 %v1342_v30, %v1037_v27  ;;  %v2189_v34 = vpop.f32.mrb[18].mxu0  ;;  %v1040_v35 = vpop.f32.mrb[19].mxu1 }
 0x275   : > { %1937 = vst [vmem:[%s2528_s8 + $0x38] sm:$0xff] %v1889_v28   ;;  %v1430_v36 = vadd.f32 %v2653_v3, %v1351_v29  ;;  %v1354_v37 = vadd.f32 %v2189_v34, %v2141_v31  ;;  %v1345_v38 = vpop.f32.mrb[19].mxu0 }
 0x276   : > { %1936 = vst [vmem:[%s2528_s8 + $0x30] sm:$0xff] %v1884_v32   ;;  %v1428_v39 = vadd.f32 %v2653_v3, %v1343_v33  ;;  %v1346_v40 = vadd.f32 %v1345_v38, %v1040_v35 }
 0x277   : > { %v1431_v41 = vadd.f32 %v2653_v3, %v1354_v37  ;;  %v1462_v43 = vmax.f32 %v1430_v36, 0.0 }
 0x278   : > { %v1429_v42 = vadd.f32 %v2653_v3, %v1346_v40  ;;  %v1460_v46 = vmax.f32 %v1428_v39, 0.0 }
 0x279   : > { %v1463_v44 = vmax.f32 %v1431_v41, 0.0  ;;  %v2144_v45 = vpop.f32.mrb[20].mxu1 }
 0x27a   : > { %v1461_v47 = vmax.f32 %v1429_v42, 0.0  ;;  %v2192_v48 = vpop.f32.mrb[20].mxu0  ;;  %v1053_v49 = vpop.f32.mrb[21].mxu1 }
 0x27b   : > { %v1899_v50 = vpack.c.bf16 %v1463_v44, %v1462_v43  ;;  %v1367_v51 = vadd.f32 %v2192_v48, %v2144_v45  ;;  %v1358_v52 = vpop.f32.mrb[21].mxu0  ;;  %v2145_v53 = vpop.f32.mrb[22].mxu1 }
 0x27c   : > { %v1894_v54 = vpack.c.bf16 %v1461_v47, %v1460_v46  ;;  %v1359_v55 = vadd.f32 %v1358_v52, %v1053_v49  ;;  %v2193_v56 = vpop.f32.mrb[22].mxu0  ;;  %v1056_v57 = vpop.f32.mrb[23].mxu1 }
 0x27d   : > { %1939 = vst [vmem:[%s2528_s8 + $0x48] sm:$0xff] %v1899_v50   ;;  %v1434_v58 = vadd.f32 %v2653_v3, %v1367_v51  ;;  %v1370_v59 = vadd.f32 %v2193_v56, %v2145_v53  ;;  %v1361_v60 = vpop.f32.mrb[23].mxu0 }
 0x27e   : > { %1938 = vst [vmem:[%s2528_s8 + $0x40] sm:$0xff] %v1894_v54   ;;  %v1432_v61 = vadd.f32 %v2653_v3, %v1359_v55  ;;  %v1362_v62 = vadd.f32 %v1361_v60, %v1056_v57 }
 0x27f   : > { %v1435_v63 = vadd.f32 %v2653_v3, %v1370_v59  ;;  %v1466_v1 = vmax.f32 %v1434_v58, 0.0 }
 0x280   : > { %v1433_v0 = vadd.f32 %v2653_v3, %v1362_v62  ;;  %v1464_v5 = vmax.f32 %v1432_v61, 0.0 }
 0x281   : > { %v1467_v2 = vmax.f32 %v1435_v63, 0.0  ;;  %v2148_v4 = vpop.f32.mrb[24].mxu1 }
 0x282   : > { %v1465_v6 = vmax.f32 %v1433_v0, 0.0  ;;  %v2196_v7 = vpop.f32.mrb[24].mxu0  ;;  %v1069_v8 = vpop.f32.mrb[25].mxu1 }
 0x283   : > { %v1909_v9 = vpack.c.bf16 %v1467_v2, %v1466_v1  ;;  %v1383_v10 = vadd.f32 %v2196_v7, %v2148_v4  ;;  %v1374_v11 = vpop.f32.mrb[25].mxu0  ;;  %v2149_v12 = vpop.f32.mrb[26].mxu1 }
 0x284   : > { %v1904_v13 = vpack.c.bf16 %v1465_v6, %v1464_v5  ;;  %v1375_v14 = vadd.f32 %v1374_v11, %v1069_v8  ;;  %v2197_v15 = vpop.f32.mrb[26].mxu0  ;;  %v1072_v16 = vpop.f32.mrb[27].mxu1 }
 0x285   : > { %1941 = vst [vmem:[%s2528_s8 + $0x58] sm:$0xff] %v1909_v9   ;;  %v1438_v17 = vadd.f32 %v2653_v3, %v1383_v10  ;;  %v1386_v18 = vadd.f32 %v2197_v15, %v2149_v12  ;;  %v1377_v19 = vpop.f32.mrb[27].mxu0 }
 0x286   : > { %1940 = vst [vmem:[%s2528_s8 + $0x50] sm:$0xff] %v1904_v13   ;;  %v1436_v20 = vadd.f32 %v2653_v3, %v1375_v14  ;;  %v1378_v21 = vadd.f32 %v1377_v19, %v1072_v16 }
 0x287   : > { %v1439_v22 = vadd.f32 %v2653_v3, %v1386_v18  ;;  %v1470_v24 = vmax.f32 %v1438_v17, 0.0 }
 0x288   : > { %v1437_v23 = vadd.f32 %v2653_v3, %v1378_v21  ;;  %v1468_v27 = vmax.f32 %v1436_v20, 0.0 }
 0x289   : > { %v1471_v25 = vmax.f32 %v1439_v22, 0.0  ;;  %v2152_v26 = vpop.f32.mrb[28].mxu1 }
 0x28a   : > { %v1469_v28 = vmax.f32 %v1437_v23, 0.0  ;;  %v2200_v29 = vpop.f32.mrb[28].mxu0  ;;  %v1085_v30 = vpop.f32.mrb[29].mxu1 }
 0x28b   : > { %v1919_v31 = vpack.c.bf16 %v1471_v25, %v1470_v24  ;;  %v1399_v32 = vadd.f32 %v2200_v29, %v2152_v26  ;;  %v1390_v33 = vpop.f32.mrb[29].mxu0  ;;  %v2153_v34 = vpop.f32.mrb[30].mxu1 }
 0x28c   : > { %v1914_v35 = vpack.c.bf16 %v1469_v28, %v1468_v27  ;;  %v1391_v36 = vadd.f32 %v1390_v33, %v1085_v30  ;;  %v2201_v37 = vpop.f32.mrb[30].mxu0  ;;  %v1088_v38 = vpop.f32.mrb[31].mxu1 }
 0x28d   : > { %1943 = vst [vmem:[%s2528_s8 + $0x68] sm:$0xff] %v1919_v31   ;;  %v1442_v39 = vadd.f32 %v2653_v3, %v1399_v32  ;;  %v1402_v40 = vadd.f32 %v2201_v37, %v2153_v34  ;;  %v1393_v41 = vpop.f32.mrb[31].mxu0 }
 0x28e   : > { %1942 = vst [vmem:[%s2528_s8 + $0x60] sm:$0xff] %v1914_v35   ;;  %v1440_v42 = vadd.f32 %v2653_v3, %v1391_v36  ;;  %v1394_v43 = vadd.f32 %v1393_v41, %v1088_v38 }
 0x28f   : > { %v1443_v44 = vadd.f32 %v2653_v3, %v1402_v40  ;;  %v1474_v46 = vmax.f32 %v1442_v39, 0.0 }
 0x290   : > { %v1441_v45 = vadd.f32 %v2653_v3, %v1394_v43  ;;  %v1472_v48 = vmax.f32 %v1440_v42, 0.0 }
 0x291   : > { %v1475_v47 = vmax.f32 %v1443_v44, 0.0 }
 0x292   : > { %v1473_v49 = vmax.f32 %v1441_v45, 0.0 }
 0x293   : > { %v1929_v50 = vpack.c.bf16 %v1475_v47, %v1474_v46 }
 0x294   : > { %v1924_v51 = vpack.c.bf16 %v1473_v49, %v1472_v48 }
 0x295   : > { %1945 = vst [vmem:[%s2528_s8 + $0x78] sm:$0xff] %v1929_v50  }
 0x296   : > { %1944 = vst [vmem:[%s2528_s8 + $0x70] sm:$0xff] %v1924_v51  }
 0x297 PF: > { %s15_s24 = sadd.s32 1, %s2410_s24   ;;  %s2730_s18 = smov %s2390_s19 }
 0x298   : > { %p12_p13 = scmp.ge.s32.totalorder %s15_s24, 11   ;;  %s2731_s19 = smov %s2494_s6 }
 0x299   : > { %s2732_s20 = smov %s2402_s22  ;;  %s2733_s21 = smov %s2406_s23 }
 0x29a   : > { %s2734_s22 = smov %s2737_s25  ;;  %s2735_s23 = smov %s2741_s26 }
 0x29b   :  { %14 = sbr.rel (!%p12_p13) target bundleno = 4 (0x4), region = 108 }

// kernel: gcn_forward.6
= control target key start
LH: loop header
LB: loop body
LE: loop exit
PB: predicated region body
PF: predicated region fallthrough
CT: control target
= control target key end

     0   :  { %s2411_s18 = smov 0   ;;  %s2413_s19 = smov 0   ;;  %s2692_s0 = inlined_call_operand.vmem [shape: s8[768,768], index: 0, kind: input, shape index: {}]   ;;  %s2693_s1 = inlined_call_operand.vmem [shape: bf16[768,128], index: 1, kind: input, shape index: {}]   ;;  %s2694_s2 = inlined_call_operand.vmem [shape: bf16[128,128], index: 2, kind: input, shape index: {}]   ;;  %s2695_s3 = inlined_call_operand.vmem [shape: bf16[128,128], index: 3, kind: input, shape index: {}]   ;;  %s2696_s4 = inlined_call_operand.vmem [shape: f32[1,128], index: 4, kind: input, shape index: {}]   ;;  %s2697_s5 = inlined_call_operand.vmem [shape: bf16[768,128], index: 5, kind: output, shape index: {}]  }
   0x1   :  { %s2415_s20 = smov 0   ;;  %s2417_s21 = smov 0  }
   0x2   :  { %s2419_s22 = smov 0   ;;  %s2421_s23 = smov 0  }
   0x3   :  { %s2423_s24 = smov 0  }
   0x4 LB: > { %s24_s25 = sadd.s32 1, %s2370_s22  ;;  %s27_s26 = sadd.s32 1, %s2374_s23  ;;  %s2378_s24 = sphi %s2423_s24, %s15_s24   ;;  %s2374_s23 = sphi %s2421_s23, %s2703_s23   ;;  %s2370_s22 = sphi %s2419_s22, %s2702_s22   ;;  %s2366_s21 = sphi %s2417_s21, %s2701_s21   ;;  %s2362_s20 = sphi %s2415_s20, %s2700_s20   ;;  %s2358_s19 = sphi %s2413_s19, %s2699_s19   ;;  %s2354_s18 = sphi %s2411_s18, %s2698_s18  }
   0x5   : > { %p25_p0 = scmp.ge.s32.totalorder %s24_s25, 3  ;;  %p43_p1 = scmp.ne.s32.totalorder %s2358_s19, %s2354_s18 }
   0x6   : > { %p44_p2 = scmp.eq.s32.totalorder %s2378_s24, 0  ;;  %s36_s30 = sadd.s32 1, %s2358_s19 }
   0x7   : > { %s2705_s25 = smov (%p25_p0, %s24_s25), 0  ;;  %s2707_s26 = smov (!%p25_p0, %s27_s26), %s2374_s23 }
   0x8   : > { %p45_p3 = por %p44_p2, %p43_p1  ;;  %p29_p4 = scmp.ge.s32.totalorder %s2707_s26, 3 }
   0x9   : > { %s32_s27 = ssub.s32 %s2370_s22, %s2705_s25  ;;  %p1688_p6 = scmp.ge.s32.totalorder %s2378_s24, 9 }
   0xa   : > { %s2709_s26 = smov (%p29_p4, %s2707_s26), 0 }
   0xb   : > { %s31_s28 = ssub.s32 %s2374_s23, %s2709_s26  ;;  %191 = sbr.rel (%p1688_p6) target bundleno = 34 (0x22), region = 32 }
   0xc   : > { %s33_s29 = sor.u32 %s32_s27, %s31_s28 }
   0xd   : > { %p34_p5 = scmp.eq.s32.totalorder %s33_s29, 0 }
   0xf   : > { %s2462_s6 = scalar_select %p34_p5, %s2358_s19, %s36_s30  }
  0x12   : > { %194 = sbr.rel (!%p45_p3) target bundleno = 34 (0x22), region = 36  ;;  %s196_s7 = sand.u32 (%p45_p3), 1, %s2358_s19  }
  0x13   : > { %s1691_s8 = sshll.u32 (%p45_p3), %s2370_s22, 1  ;;  %s1689_s9 = sshll.u32 (%p45_p3), %s196_s7, 7 }
  0x14   : > { %s2218_s10 = smul.u32 (%p45_p3), 48, %s2374_s23  ;;  %s198_s16 = scalar_lea.vmem (%p45_p3), [#allocation3], %s1689_s9 }
  0x16   : > { %s202_s11 = sadd.s32 (%p45_p3), %s2218_s10, %s1691_s8 }
  0x17   : > { %s1693_s12 = sshll.u32 (%p45_p3), %s202_s11, 3 }
  0x18   : > { %s2471_s15 = scalar_lea.vmem (%p45_p3), %s2692_s0, %s1693_s12 }
  0x19   : > { %v217_v0 = vld [vmem:[%s2471_s15] sm:$0xff]  ;;  %v219_v1 = vld [vmem:[%s2471_s15 + $0x8] sm:$0xff]  ;;  %v221_v2 = vld [vmem:[%s2471_s15 + $0x30] sm:$0xff] }
  0x1a   : > { %218 = vst [vmem:[%s198_s16] sm:$0xff] %v217_v0  ;;  %220 = vst [vmem:[%s198_s16 + $0x8] sm:$0xff] %v219_v1  ;;  %v223_v3 = vld [vmem:[%s2471_s15 + $0x38] sm:$0xff]  ;;  %v225_v4 = vld [vmem:[%s2471_s15 + $0x60] sm:$0xff] }
  0x1b   : > { %222 = vst [vmem:[%s198_s16 + $0x10] sm:$0xff] %v221_v2  ;;  %v227_v5 = vld [vmem:[%s2471_s15 + $0x68] sm:$0xff]  ;;  %224 = vst [vmem:[%s198_s16 + $0x18] sm:$0xff] %v223_v3  ;;  %v229_v6 = vld [vmem:[%s2471_s15 + $0x90] sm:$0xff] }
  0x1c   : > { %226 = vst [vmem:[%s198_s16 + $0x20] sm:$0xff] %v225_v4  ;;  %228 = vst [vmem:[%s198_s16 + $0x28] sm:$0xff] %v227_v5  ;;  %v231_v7 = vld [vmem:[%s2471_s15 + $0x98] sm:$0xff]  ;;  %v233_v8 = vld [vmem:[%s2471_s15 + $0xc0] sm:$0xff] }
  0x1d   : > { %230 = vst [vmem:[%s198_s16 + $0x30] sm:$0xff] %v229_v6  ;;  %232 = vst [vmem:[%s198_s16 + $0x38] sm:$0xff] %v231_v7  ;;  %v235_v9 = vld [vmem:[%s2471_s15 + $0xc8] sm:$0xff]  ;;  %v237_v10 = vld [vmem:[%s2471_s15 + $0xf0] sm:$0xff] }
  0x1e   : > { %234 = vst [vmem:[%s198_s16 + $0x40] sm:$0xff] %v233_v8  ;;  %v239_v11 = vld [vmem:[%s2471_s15 + $0xf8] sm:$0xff]  ;;  %236 = vst [vmem:[%s198_s16 + $0x48] sm:$0xff] %v235_v9  ;;  %v241_v12 = vld [vmem:[%s2471_s15 + $0x120] sm:$0xff] }
  0x1f   : > { %238 = vst [vmem:[%s198_s16 + $0x50] sm:$0xff] %v237_v10  ;;  %240 = vst [vmem:[%s198_s16 + $0x58] sm:$0xff] %v239_v11  ;;  %v243_v13 = vld [vmem:[%s2471_s15 + $0x128] sm:$0xff]  ;;  %v245_v14 = vld [vmem:[%s2471_s15 + $0x150] sm:$0xff] }
  0x20   : > { %242 = vst [vmem:[%s198_s16 + $0x60] sm:$0xff] %v241_v12  ;;  %244 = vst [vmem:[%s198_s16 + $0x68] sm:$0xff] %v243_v13  ;;  %v247_v15 = vld [vmem:[%s2471_s15 + $0x158] sm:$0xff] }
  0x21   : > { %246 = vst [vmem:[%s198_s16 + $0x70] sm:$0xff] %v245_v14  ;;  %248 = vst [vmem:[%s198_s16 + $0x78] sm:$0xff] %v247_v15 }
  0x22 PF: > { %p1694_p7 = scmp.ge.s32.totalorder %s2378_s24, 1  ;;  %p253_p8 = scmp.lt.s32.totalorder %s2378_s24, 10 }
  0x24   : > { %p254_p9 = pnand %p1694_p7, %p253_p8 }
  0x25   : > { %s260_s17 = sand.u32 (!%p254_p9), 1, %s2354_s18   ;;  %s1696_s27 = sshll.u32 (!%p254_p9), %s2366_s21, 5 }
  0x26   : > { %257 = sbr.rel (%p254_p9) target bundleno = 661 (0x295), region = 59  ;;  %s1695_s28 = sshll.u32 (!%p254_p9), %s260_s17, 7 }
  0x27   : > { %p290_p10 = scmp.lt.s32.totalorder (!%p254_p9), %s1696_s27, 95  ;;  %s2498_s9 = scalar_lea.vmem (!%p254_p9), [#allocation3], %s1695_s28 }
  0x28   : > { %p1698_p11 = scmp.ne.s32.totalorder (!%p254_p9), %s2362_s20, 0 }
  0x2d   : > { %s2711_s27 = smov (!%p290_p10, %s1696_s27), 95  ;;  %299 = sbr.rel (%p1698_p11) target bundleno = 63 (0x3f), region = 67 }
  0x2e   : > { %s1697_s29 = sshll.u32 %s2711_s27, 2  ;;  %v2380_v16 = vmov (!%p1698_p11), 0.0  }
  0x2f   : > { %s2496_s8 = scalar_lea.vmem %s2697_s5, %s1697_s29  ;;  %300 = vst [vmem:[#allocation2] sm:$0xff] (!%p1698_p11), %v2380_v16  ;;  %301 = vst [vmem:[#allocation2 + $0x8] sm:$0xff] (!%p1698_p11), %v2380_v16 }
  0x30   : > { %302 = vst [vmem:[#allocation2 + $0x10] sm:$0xff] (!%p1698_p11), %v2380_v16  ;;  %303 = vst [vmem:[#allocation2 + $0x18] sm:$0xff] (!%p1698_p11), %v2380_v16 }
  0x31   : > { %304 = vst [vmem:[#allocation2 + $0x20] sm:$0xff] (!%p1698_p11), %v2380_v16  ;;  %305 = vst [vmem:[#allocation2 + $0x28] sm:$0xff] (!%p1698_p11), %v2380_v16 }
  0x32   : > { %306 = vst [vmem:[#allocation2 + $0x30] sm:$0xff] (!%p1698_p11), %v2380_v16  ;;  %307 = vst [vmem:[#allocation2 + $0x38] sm:$0xff] (!%p1698_p11), %v2380_v16 }
  0x33   : > { %308 = vst [vmem:[#allocation2 + $0x40] sm:$0xff] (!%p1698_p11), %v2380_v16  ;;  %309 = vst [vmem:[#allocation2 + $0x48] sm:$0xff] (!%p1698_p11), %v2380_v16 }
  0x34   : > { %310 = vst [vmem:[#allocation2 + $0x50] sm:$0xff] %v2380_v16  ;;  %311 = vst [vmem:[#allocation2 + $0x58] sm:$0xff] %v2380_v16 }
  0x35   : > { %312 = vst [vmem:[#allocation2 + $0x60] sm:$0xff] %v2380_v16  ;;  %313 = vst [vmem:[#allocation2 + $0x68] sm:$0xff] %v2380_v16 }
  0x36   : > { %314 = vst [vmem:[#allocation2 + $0x70] sm:$0xff] %v2380_v16  ;;  %315 = vst [vmem:[#allocation2 + $0x78] sm:$0xff] %v2380_v16 }
  0x37   : > { %316 = vst [vmem:[#allocation2 + $0x80] sm:$0xff] %v2380_v16  ;;  %317 = vst [vmem:[#allocation2 + $0x88] sm:$0xff] %v2380_v16 }
  0x38   : > { %318 = vst [vmem:[#allocation2 + $0x90] sm:$0xff] %v2380_v16  ;;  %319 = vst [vmem:[#allocation2 + $0x98] sm:$0xff] %v2380_v16 }
  0x39   : > { %320 = vst [vmem:[#allocation2 + $0xa0] sm:$0xff] %v2380_v16  ;;  %321 = vst [vmem:[#allocation2 + $0xa8] sm:$0xff] %v2380_v16 }
  0x3a   : > { %322 = vst [vmem:[#allocation2 + $0xb0] sm:$0xff] %v2380_v16  ;;  %323 = vst [vmem:[#allocation2 + $0xb8] sm:$0xff] %v2380_v16 }
  0x3b   : > { %324 = vst [vmem:[#allocation2 + $0xc0] sm:$0xff] %v2380_v16  ;;  %325 = vst [vmem:[#allocation2 + $0xc8] sm:$0xff] %v2380_v16 }
  0x3c   : > { %326 = vst [vmem:[#allocation2 + $0xd0] sm:$0xff] %v2380_v16  ;;  %327 = vst [vmem:[#allocation2 + $0xd8] sm:$0xff] %v2380_v16 }
  0x3d   : > { %328 = vst [vmem:[#allocation2 + $0xe0] sm:$0xff] %v2380_v16  ;;  %329 = vst [vmem:[#allocation2 + $0xe8] sm:$0xff] %v2380_v16 }
  0x3e   : > { %330 = vst [vmem:[#allocation2 + $0xf0] sm:$0xff] %v2380_v16  ;;  %331 = vst [vmem:[#allocation2 + $0xf8] sm:$0xff] %v2380_v16 }
  0x3f PF: > { %s1699_s18 = sshll.u32 %s2362_s20, 8  ;;  %v2503_v17 = vld [vmem:[%s2498_s9 + $0x8] sm:$0xff]  ;;  %v332_v37 = vld [vmem:[%s2498_s9] sm:$0xff]  ;;  %v335_v43 = vld [vmem:[%s2498_s9 + $0x18] sm:$0xff]  ;;  %p1717_p12 = scmp.ne.s32.totalorder %s2362_s20, 2 }
  0x40   : > { %v2506_v18 = vld [vmem:[%s2498_s9 + $0x48] sm:$0xff]  ;;  %s381_s10 = sshra.s32 %s1699_s18, 3  ;;  %v349_v19 = vunpack.c.l.s8.bf16 %v2503_v17  ;;  %v340_v38 = vld [vmem:[%s2498_s9 + $0x40] sm:$0xff]  ;;  %v348_v39 = vunpack.c.l.s8.bf16 %v332_v37  ;;  %v351_v41 = vunpack.c.h.s8.bf16 %v2503_v17  ;;  %v343_v44 = vld [vmem:[%s2498_s9 + $0x58] sm:$0xff]  ;;  %v350_v45 = vunpack.c.h.s8.bf16 %v332_v37 }
  0x41   : > { %v365_v20 = vunpack.c.l.s8.bf16 %v2506_v18  ;;  %s1700_s11 = sshll.u32 %s381_s10, 2  ;;  %v364_v40 = vunpack.c.l.s8.bf16 %v340_v38  ;;  %v367_v42 = vunpack.c.h.s8.bf16 %v2506_v18  ;;  %v366_v46 = vunpack.c.h.s8.bf16 %v340_v38  ;;  %v334_v49 = vld [vmem:[%s2498_s9 + $0x10] sm:$0xff]  ;;  %v337_v55 = vld [vmem:[%s2498_s9 + $0x28] sm:$0xff]  ;;  %v336_v61 = vld [vmem:[%s2498_s9 + $0x20] sm:$0xff] }
  0x42   : > { %s2513_s14 = scalar_lea.vmem %s2693_s1, %s1700_s11  ;;  %577 = vmatprep.mubr.bf16.mxu0 %v349_v19  ;;  %v353_v47 = vunpack.c.l.s8.bf16 %v335_v43  ;;  %v369_v48 = vunpack.c.l.s8.bf16 %v343_v44  ;;  %v342_v50 = vld [vmem:[%s2498_s9 + $0x50] sm:$0xff]  ;;  %v352_v51 = vunpack.c.l.s8.bf16 %v334_v49  ;;  %v355_v53 = vunpack.c.h.s8.bf16 %v335_v43  ;;  %v345_v56 = vld [vmem:[%s2498_s9 + $0x68] sm:$0xff]  ;;  %v344_v62 = vld [vmem:[%s2498_s9 + $0x60] sm:$0xff]  ;;  %s1718_s11 = sshll.u32 (!%p1717_p12), %s2366_s21, 8 }
  0x43   : > { %641 = vmatprep.mubr.bf16.mxu1 %v365_v20  ;;  %v2276_v21 = vld [vmem:[%s2513_s14 + $0x40] sm:$0xff]   ;;  %v2278_v23 = vld [vmem:[%s2513_s14 + $0x48] sm:$0xff]   ;;  %v2280_v25 = vld [vmem:[%s2513_s14 + $0x50] sm:$0xff]   ;;  %v368_v52 = vunpack.c.l.s8.bf16 %v342_v50  ;;  %v371_v54 = vunpack.c.h.s8.bf16 %v343_v44  ;;  %v354_v57 = vunpack.c.h.s8.bf16 %v334_v49  ;;  %v370_v58 = vunpack.c.h.s8.bf16 %v342_v50 }
  0x44   : > { %v2277_v22 = vld [vmem:[%s2513_s14] sm:$0xff]   ;;  %1914 = vmatprep.subr.bf16.mxu0 %v2276_v21  ;;  %2170 = vmatprep.subr.bf16.mxu1 %v2276_v21  ;;  %v2279_v24 = vld [vmem:[%s2513_s14 + $0x8] sm:$0xff]   ;;  %v2281_v26 = vld [vmem:[%s2513_s14 + $0x10] sm:$0xff]   ;;  %v357_v59 = vunpack.c.l.s8.bf16 %v337_v55  ;;  %v373_v60 = vunpack.c.l.s8.bf16 %v345_v56  ;;  %v356_v63 = vunpack.c.l.s8.bf16 %v336_v61  ;;  %v372_v0 = vunpack.c.l.s8.bf16 %v344_v62 }
  0x45   : > { %1915 = vmatpush3.bf16.msra.mxu0 %v2277_v22  ;;  %2178 = vmatpush3.bf16.msra.mxu1 %v2277_v22  ;;  %v2282_v27 = vld [vmem:[%s2513_s14 + $0x58] sm:$0xff]   ;;  %v2284_v29 = vld [vmem:[%s2513_s14 + $0x60] sm:$0xff]   ;;  %v2286_v31 = vld [vmem:[%s2513_s14 + $0x68] sm:$0xff]   ;;  %v359_v1 = vunpack.c.h.s8.bf16 %v337_v55  ;;  %v375_v2 = vunpack.c.h.s8.bf16 %v345_v56  ;;  %v358_v5 = vunpack.c.h.s8.bf16 %v336_v61  ;;  %v374_v6 = vunpack.c.h.s8.bf16 %v344_v62 }
  0x46   : > { %1916 = vmatprep.subr.bf16.mxu0 %v2278_v23  ;;  %2171 = vmatprep.subr.bf16.mxu1 %v2278_v23  ;;  %v2283_v28 = vld [vmem:[%s2513_s14 + $0x18] sm:$0xff]   ;;  %v2285_v30 = vld [vmem:[%s2513_s14 + $0x20] sm:$0xff]   ;;  %v2287_v32 = vld [vmem:[%s2513_s14 + $0x28] sm:$0xff]  }
  0x47   : > { %v2288_v33 = vld [vmem:[%s2513_s14 + $0x70] sm:$0xff]   ;;  %v2290_v35 = vld [vmem:[%s2513_s14 + $0x78] sm:$0xff]   ;;  %v417_v19 = vld [vmem:[#allocation2] sm:$0xff] }
  0x48   : > { %v2289_v34 = vld [vmem:[%s2513_s14 + $0x30] sm:$0xff]   ;;  %v2291_v36 = vld [vmem:[%s2513_s14 + $0x38] sm:$0xff]   ;;  %v433_v21 = vld [vmem:[#allocation2 + $0x80] sm:$0xff]  ;;  %s775_s14 = sshra.s32 (!%p1717_p12), %s1718_s11, 3 }
  0x49   : > { %1917 = vmatpush3.bf16.msra.mxu0 %v2279_v24  ;;  %2179 = vmatpush3.bf16.msra.mxu1 %v2279_v24  ;;  %v339_v3 = vld [vmem:[%s2498_s9 + $0x38] sm:$0xff]  ;;  %v338_v9 = vld [vmem:[%s2498_s9 + $0x30] sm:$0xff]  ;;  %v437_v61 = vld [vmem:[#allocation2 + $0xa0] sm:$0xff]  ;;  %s1719_s17 = sshll.u32 (!%p1717_p12), %s775_s14, 2 }
  0x4a   : > { %1918 = vmatprep.subr.bf16.mxu0 %v2280_v25  ;;  %2172 = vmatprep.subr.bf16.mxu1 %v2280_v25  ;;  %v347_v4 = vld [vmem:[%s2498_s9 + $0x78] sm:$0xff]  ;;  %v361_v7 = vunpack.c.l.s8.bf16 %v339_v3  ;;  %v346_v10 = vld [vmem:[%s2498_s9 + $0x70] sm:$0xff]  ;;  %v360_v11 = vunpack.c.l.s8.bf16 %v338_v9  ;;  %v363_v13 = vunpack.c.h.s8.bf16 %v339_v3  ;;  %v362_v15 = vunpack.c.h.s8.bf16 %v338_v9  ;;  %v422_v3 = vld [vmem:[#allocation2 + $0x28] sm:$0xff]  ;;  %s2582_s20 = scalar_lea.vmem (!%p1717_p12), %s2693_s1, %s1719_s17 }
  0x4b   : > { %v377_v8 = vunpack.c.l.s8.bf16 %v347_v4  ;;  %v376_v12 = vunpack.c.l.s8.bf16 %v346_v10  ;;  %v379_v14 = vunpack.c.h.s8.bf16 %v347_v4  ;;  %v378_v16 = vunpack.c.h.s8.bf16 %v346_v10  ;;  %v436_v49 = vld [vmem:[#allocation2 + $0x98] sm:$0xff] }
  0x4d   : > { %1919 = vmatpush3.bf16.msra.mxu0 %v2281_v26  ;;  %2180 = vmatpush3.bf16.msra.mxu1 %v2281_v26 }
  0x4e   : > { %1920 = vmatprep.subr.bf16.mxu0 %v2282_v27  ;;  %2173 = vmatprep.subr.bf16.mxu1 %v2282_v27  ;;  %v418_v27 = vld [vmem:[#allocation2 + $0x8] sm:$0xff] }
  0x51   : > { %1921 = vmatpush3.bf16.msra.mxu0 %v2283_v28  ;;  %2181 = vmatpush3.bf16.msra.mxu1 %v2283_v28 }
  0x52   : > { %1922 = vmatprep.subr.bf16.mxu0 %v2284_v29  ;;  %2174 = vmatprep.subr.bf16.mxu1 %v2284_v29  ;;  %v434_v29 = vld [vmem:[#allocation2 + $0x88] sm:$0xff] }
  0x55   : > { %1923 = vmatpush3.bf16.msra.mxu0 %v2285_v30  ;;  %2182 = vmatpush3.bf16.msra.mxu1 %v2285_v30 }
  0x56   : > { %1924 = vmatprep.subr.bf16.mxu0 %v2286_v31  ;;  %2175 = vmatprep.subr.bf16.mxu1 %v2286_v31 }
  0x59   : > { %1925 = vmatpush3.bf16.msra.mxu0 %v2287_v32  ;;  %2183 = vmatpush3.bf16.msra.mxu1 %v2287_v32 }
  0x5a   : > { %1926 = vmatprep.subr.bf16.mxu0 %v2288_v33  ;;  %2176 = vmatprep.subr.bf16.mxu1 %v2288_v33 }
  0x5d   : > { %1927 = vmatpush3.bf16.msra.mxu0 %v2289_v34  ;;  %2184 = vmatpush3.bf16.msra.mxu1 %v2289_v34 }
  0x5e   : > { %1928 = vmatprep.subr.bf16.mxu0 %v2290_v35  ;;  %2177 = vmatprep.subr.bf16.mxu1 %v2290_v35 }
  0x61   : > { %1929 = vmatpush3.bf16.msra.mxu0 %v2291_v36  ;;  %2185 = vmatpush3.bf16.msra.mxu1 %v2291_v36 }
  0x64   : > { %578 = vmatmul.mubr.bf16.vlgmr.msra.gmra.mrb[0].mxu0 %v348_v39  ;;  %642 = vmatmul.mubr.bf16.vlgmr.msra.gmra.mrb[0].mxu1 %v364_v40  ;;  %v419_v39 = vld [vmem:[#allocation2 + $0x10] sm:$0xff] }
  0x65   : > { %585 = vmatprep.mubr.bf16.mxu0 %v351_v41  ;;  %649 = vmatprep.mubr.bf16.mxu1 %v367_v42  ;;  %v435_v41 = vld [vmem:[#allocation2 + $0x90] sm:$0xff] }
  0x6c   : > { %586 = vmatmul.mubr.bf16.gmra.mrb[4].mxu0 %v350_v45  ;;  %650 = vmatmul.mubr.bf16.gmra.mrb[4].mxu1 %v366_v46 }
  0x6d   : > { %593 = vmatprep.mubr.bf16.mxu0 %v353_v47  ;;  %657 = vmatprep.mubr.bf16.mxu1 %v369_v48  ;;  %v420_v47 = vld [vmem:[#allocation2 + $0x18] sm:$0xff] }
  0x74   : > { %594 = vmatmul.mubr.bf16.gmra.mrb[8].mxu0 %v352_v51  ;;  %658 = vmatmul.mubr.bf16.gmra.mrb[8].mxu1 %v368_v52 }
  0x75   : > { %601 = vmatprep.mubr.bf16.mxu0 %v355_v53  ;;  %665 = vmatprep.mubr.bf16.mxu1 %v371_v54 }
  0x7c   : > { %602 = vmatmul.mubr.bf16.gmra.mrb[12].mxu0 %v354_v57  ;;  %666 = vmatmul.mubr.bf16.gmra.mrb[12].mxu1 %v370_v58 }
  0x7d   : > { %609 = vmatprep.mubr.bf16.mxu0 %v357_v59  ;;  %673 = vmatprep.mubr.bf16.mxu1 %v373_v60  ;;  %v421_v59 = vld [vmem:[#allocation2 + $0x20] sm:$0xff] }
  0x84   : > { %610 = vmatmul.mubr.bf16.gmra.mrb[16].mxu0 %v356_v63  ;;  %674 = vmatmul.mubr.bf16.gmra.mrb[16].mxu1 %v372_v0 }
  0x85   : > { %617 = vmatprep.mubr.bf16.mxu0 %v359_v1  ;;  %681 = vmatprep.mubr.bf16.mxu1 %v375_v2 }
  0x8c   : > { %618 = vmatmul.mubr.bf16.gmra.mrb[20].mxu0 %v358_v5  ;;  %682 = vmatmul.mubr.bf16.gmra.mrb[20].mxu1 %v374_v6  ;;  %v438_v5 = vld [vmem:[#allocation2 + $0xa8] sm:$0xff] }
  0x8d   : > { %625 = vmatprep.mubr.bf16.mxu0 %v361_v7  ;;  %689 = vmatprep.mubr.bf16.mxu1 %v377_v8 }
  0x94   : > { %626 = vmatmul.mubr.bf16.gmra.mrb[24].mxu0 %v360_v11  ;;  %690 = vmatmul.mubr.bf16.gmra.mrb[24].mxu1 %v376_v12 }
  0x95   : > { %633 = vmatprep.mubr.bf16.mxu0 %v363_v13  ;;  %697 = vmatprep.mubr.bf16.mxu1 %v379_v14 }
  0x9c   : > { %634 = vmatmul.mubr.bf16.gmra.mrb[28].mxu0 %v362_v15  ;;  %698 = vmatmul.mubr.bf16.gmra.mrb[28].mxu1 %v378_v16  ;;  %v423_v15 = vld [vmem:[#allocation2 + $0x30] sm:$0xff] }
 0x137   : > { %v1930_v17 = vpop.f32.mrb[0].mxu0  ;;  %v1978_v18 = vpop.f32.mrb[0].mxu1 }
 0x138   : > { %v1931_v20 = vpop.f32.mrb[1].mxu0  ;;  %v1979_v22 = vpop.f32.mrb[1].mxu1 }
 0x139   : > { %v1932_v23 = vadd.f32 %v1931_v20, %v1930_v17  ;;  %v1980_v24 = vadd.f32 %v1979_v22, %v1978_v18  ;;  %v1933_v25 = vpop.f32.mrb[2].mxu0  ;;  %v1981_v26 = vpop.f32.mrb[2].mxu1  ;;  %v439_v17 = vld [vmem:[#allocation2 + $0xb0] sm:$0xff] }
 0x13a   : > { %v1934_v28 = vpop.f32.mrb[3].mxu0  ;;  %v1982_v30 = vpop.f32.mrb[3].mxu1 }
 0x13b   : > { %v706_v31 = vadd.f32 %v1932_v23, %v417_v19  ;;  %v722_v32 = vadd.f32 %v1980_v24, %v433_v21  ;;  %v1935_v33 = vadd.f32 %v1934_v28, %v1933_v25  ;;  %v1983_v34 = vadd.f32 %v1982_v30, %v1981_v26  ;;  %v424_v23 = vld [vmem:[#allocation2 + $0x38] sm:$0xff] }
 0x13c   : > { %v440_v25 = vld [vmem:[#allocation2 + $0xb8] sm:$0xff] }
 0x13d   : > { %738 = vst [vmem:[#allocation2] sm:$0xff] %v706_v31  ;;  %754 = vst [vmem:[#allocation2 + $0x80] sm:$0xff] %v722_v32  ;;  %v707_v35 = vadd.f32 %v1935_v33, %v418_v27  ;;  %v723_v36 = vadd.f32 %v1983_v34, %v434_v29 }
 0x13f   : > { %739 = vst [vmem:[#allocation2 + $0x8] sm:$0xff] %v707_v35  ;;  %755 = vst [vmem:[#allocation2 + $0x88] sm:$0xff] %v723_v36  ;;  %v1936_v37 = vpop.f32.mrb[4].mxu0  ;;  %v1984_v38 = vpop.f32.mrb[4].mxu1  ;;  %v425_v35 = vld [vmem:[#allocation2 + $0x40] sm:$0xff] }
 0x140   : > { %v1937_v40 = vpop.f32.mrb[5].mxu0  ;;  %v1985_v42 = vpop.f32.mrb[5].mxu1 }
 0x141   : > { %v1938_v43 = vadd.f32 %v1937_v40, %v1936_v37  ;;  %v1986_v44 = vadd.f32 %v1985_v42, %v1984_v38  ;;  %v1939_v45 = vpop.f32.mrb[6].mxu0  ;;  %v1987_v46 = vpop.f32.mrb[6].mxu1  ;;  %v441_v37 = vld [vmem:[#allocation2 + $0xc0] sm:$0xff] }
 0x142   : > { %v1940_v48 = vpop.f32.mrb[7].mxu0  ;;  %v1988_v50 = vpop.f32.mrb[7].mxu1 }
 0x143   : > { %v708_v51 = vadd.f32 %v1938_v43, %v419_v39  ;;  %v724_v52 = vadd.f32 %v1986_v44, %v435_v41  ;;  %v1941_v53 = vadd.f32 %v1940_v48, %v1939_v45  ;;  %v1989_v54 = vadd.f32 %v1988_v50, %v1987_v46  ;;  %v426_v43 = vld [vmem:[#allocation2 + $0x48] sm:$0xff] }
 0x144   : > { %v442_v45 = vld [vmem:[#allocation2 + $0xc8] sm:$0xff] }
 0x145   : > { %740 = vst [vmem:[#allocation2 + $0x10] sm:$0xff] %v708_v51  ;;  %756 = vst [vmem:[#allocation2 + $0x90] sm:$0xff] %v724_v52  ;;  %v709_v55 = vadd.f32 %v1941_v53, %v420_v47  ;;  %v725_v56 = vadd.f32 %v1989_v54, %v436_v49 }
 0x147   : > { %741 = vst [vmem:[#allocation2 + $0x18] sm:$0xff] %v709_v55  ;;  %757 = vst [vmem:[#allocation2 + $0x98] sm:$0xff] %v725_v56  ;;  %v1942_v57 = vpop.f32.mrb[8].mxu0  ;;  %v1990_v58 = vpop.f32.mrb[8].mxu1  ;;  %v427_v55 = vld [vmem:[#allocation2 + $0x50] sm:$0xff] }
 0x148   : > { %v1943_v60 = vpop.f32.mrb[9].mxu0  ;;  %v1991_v62 = vpop.f32.mrb[9].mxu1 }
 0x149   : > { %v1944_v63 = vadd.f32 %v1943_v60, %v1942_v57  ;;  %v1992_v0 = vadd.f32 %v1991_v62, %v1990_v58  ;;  %v1945_v1 = vpop.f32.mrb[10].mxu0  ;;  %v1993_v2 = vpop.f32.mrb[10].mxu1  ;;  %v443_v57 = vld [vmem:[#allocation2 + $0xd0] sm:$0xff] }
 0x14a   : > { %v1946_v4 = vpop.f32.mrb[11].mxu0  ;;  %v1994_v6 = vpop.f32.mrb[11].mxu1 }
 0x14b   : > { %v710_v7 = vadd.f32 %v1944_v63, %v421_v59  ;;  %v726_v8 = vadd.f32 %v1992_v0, %v437_v61  ;;  %v1947_v9 = vadd.f32 %v1946_v4, %v1945_v1  ;;  %v1995_v10 = vadd.f32 %v1994_v6, %v1993_v2  ;;  %v428_v63 = vld [vmem:[#allocation2 + $0x58] sm:$0xff] }
 0x14c   : > { %v444_v1 = vld [vmem:[#allocation2 + $0xd8] sm:$0xff] }
 0x14d   : > { %742 = vst [vmem:[#allocation2 + $0x20] sm:$0xff] %v710_v7  ;;  %758 = vst [vmem:[#allocation2 + $0xa0] sm:$0xff] %v726_v8  ;;  %v711_v11 = vadd.f32 %v1947_v9, %v422_v3  ;;  %v727_v12 = vadd.f32 %v1995_v10, %v438_v5 }
 0x14f   : > { %743 = vst [vmem:[#allocation2 + $0x28] sm:$0xff] %v711_v11  ;;  %759 = vst [vmem:[#allocation2 + $0xa8] sm:$0xff] %v727_v12  ;;  %v1948_v13 = vpop.f32.mrb[12].mxu0  ;;  %v1996_v14 = vpop.f32.mrb[12].mxu1  ;;  %v429_v11 = vld [vmem:[#allocation2 + $0x60] sm:$0xff] }
 0x150   : > { %v1949_v16 = vpop.f32.mrb[13].mxu0  ;;  %v1997_v18 = vpop.f32.mrb[13].mxu1 }
 0x151   : > { %v1950_v19 = vadd.f32 %v1949_v16, %v1948_v13  ;;  %v1998_v20 = vadd.f32 %v1997_v18, %v1996_v14  ;;  %v1951_v21 = vpop.f32.mrb[14].mxu0  ;;  %v1999_v22 = vpop.f32.mrb[14].mxu1  ;;  %v445_v13 = vld [vmem:[#allocation2 + $0xe0] sm:$0xff] }
 0x152   : > { %v1952_v24 = vpop.f32.mrb[15].mxu0  ;;  %v2000_v26 = vpop.f32.mrb[15].mxu1 }
 0x153   : > { %v712_v27 = vadd.f32 %v1950_v19, %v423_v15  ;;  %v728_v28 = vadd.f32 %v1998_v20, %v439_v17  ;;  %v1953_v29 = vadd.f32 %v1952_v24, %v1951_v21  ;;  %v2001_v30 = vadd.f32 %v2000_v26, %v1999_v22  ;;  %v430_v19 = vld [vmem:[#allocation2 + $0x68] sm:$0xff] }
 0x154   : > { %v446_v21 = vld [vmem:[#allocation2 + $0xe8] sm:$0xff] }
 0x155   : > { %744 = vst [vmem:[#allocation2 + $0x30] sm:$0xff] %v712_v27  ;;  %760 = vst [vmem:[#allocation2 + $0xb0] sm:$0xff] %v728_v28  ;;  %v713_v31 = vadd.f32 %v1953_v29, %v424_v23  ;;  %v729_v32 = vadd.f32 %v2001_v30, %v440_v25 }
 0x157   : > { %745 = vst [vmem:[#allocation2 + $0x38] sm:$0xff] %v713_v31  ;;  %761 = vst [vmem:[#allocation2 + $0xb8] sm:$0xff] %v729_v32  ;;  %v1954_v33 = vpop.f32.mrb[16].mxu0  ;;  %v2002_v34 = vpop.f32.mrb[16].mxu1  ;;  %v431_v31 = vld [vmem:[#allocation2 + $0x70] sm:$0xff] }
 0x158   : > { %v1955_v36 = vpop.f32.mrb[17].mxu0  ;;  %v2003_v38 = vpop.f32.mrb[17].mxu1 }
 0x159   : > { %v1956_v39 = vadd.f32 %v1955_v36, %v1954_v33  ;;  %v2004_v40 = vadd.f32 %v2003_v38, %v2002_v34  ;;  %v1957_v41 = vpop.f32.mrb[18].mxu0  ;;  %v2005_v42 = vpop.f32.mrb[18].mxu1  ;;  %v447_v33 = vld [vmem:[#allocation2 + $0xf0] sm:$0xff] }
 0x15a   : > { %v1958_v44 = vpop.f32.mrb[19].mxu0  ;;  %v2006_v46 = vpop.f32.mrb[19].mxu1 }
 0x15b   : > { %v714_v47 = vadd.f32 %v1956_v39, %v425_v35  ;;  %v730_v48 = vadd.f32 %v2004_v40, %v441_v37  ;;  %v1959_v49 = vadd.f32 %v1958_v44, %v1957_v41  ;;  %v2007_v50 = vadd.f32 %v2006_v46, %v2005_v42  ;;  %v432_v39 = vld [vmem:[#allocation2 + $0x78] sm:$0xff] }
 0x15c   : > { %v448_v41 = vld [vmem:[#allocation2 + $0xf8] sm:$0xff] }
 0x15d   : > { %746 = vst [vmem:[#allocation2 + $0x40] sm:$0xff] %v714_v47  ;;  %762 = vst [vmem:[#allocation2 + $0xc0] sm:$0xff] %v730_v48  ;;  %v715_v51 = vadd.f32 %v1959_v49, %v426_v43  ;;  %v731_v52 = vadd.f32 %v2007_v50, %v442_v45  ;;  %v2292_v49 = vld [vmem:[%s2695_s3] sm:$0xff] (!%p1717_p12)  }
 0x15e   : > { %v2293_v50 = vld [vmem:[%s2694_s2] sm:$0xff] (!%p1717_p12)   ;;  %2074 = vmatprep.subr.bf16.mxu1 (!%p1717_p12), %v2292_v49 }
 0x15f   : > { %747 = vst [vmem:[#allocation2 + $0x48] sm:$0xff] %v715_v51  ;;  %763 = vst [vmem:[#allocation2 + $0xc8] sm:$0xff] %v731_v52  ;;  %v1960_v53 = vpop.f32.mrb[20].mxu0  ;;  %v2008_v54 = vpop.f32.mrb[20].mxu1  ;;  %v2294_v51 = vld [vmem:[%s2695_s3 + $0x8] sm:$0xff] (!%p1717_p12)   ;;  %2122 = vmatprep.subr.bf16.mxu0 (!%p1717_p12), %v2293_v50  ;;  %2075 = vmatpush3.bf16.msra.mxu1 (!%p1717_p12), %v2292_v49 }
 0x160   : > { %v1961_v56 = vpop.f32.mrb[21].mxu0  ;;  %v2009_v58 = vpop.f32.mrb[21].mxu1  ;;  %v2295_v52 = vld [vmem:[%s2694_s2 + $0x8] sm:$0xff] (!%p1717_p12)   ;;  %2123 = vmatpush3.bf16.msra.mxu0 (!%p1717_p12), %v2293_v50  ;;  %2076 = vmatprep.subr.bf16.mxu1 (!%p1717_p12), %v2294_v51  ;;  %v2319_v50 = vld [vmem:[%s2582_s20 + $0x58] sm:$0xff] (!%p1717_p12)  }
 0x161   : > { %v1962_v59 = vadd.f32 %v1961_v56, %v1960_v53  ;;  %v2010_v60 = vadd.f32 %v2009_v58, %v2008_v54  ;;  %v1963_v61 = vpop.f32.mrb[22].mxu0  ;;  %v2011_v62 = vpop.f32.mrb[22].mxu1  ;;  %v2296_v53 = vld [vmem:[%s2695_s3 + $0x10] sm:$0xff] (!%p1717_p12)   ;;  %2124 = vmatprep.subr.bf16.mxu0 (!%p1717_p12), %v2295_v52  ;;  %v2299_v56 = vld [vmem:[%s2694_s2 + $0x18] sm:$0xff] (!%p1717_p12)   ;;  %v2301_v58 = vld [vmem:[%s2694_s2 + $0x20] sm:$0xff] (!%p1717_p12)  }
 0x162   : > { %v1964_v0 = vpop.f32.mrb[23].mxu0  ;;  %v2012_v2 = vpop.f32.mrb[23].mxu1  ;;  %v2297_v54 = vld [vmem:[%s2694_s2 + $0x10] sm:$0xff] (!%p1717_p12)  }
 0x163   : > { %v716_v3 = vadd.f32 %v1962_v59, %v427_v55  ;;  %v732_v4 = vadd.f32 %v2010_v60, %v443_v57  ;;  %v1965_v5 = vadd.f32 %v1964_v0, %v1963_v61  ;;  %v2013_v6 = vadd.f32 %v2012_v2, %v2011_v62  ;;  %2077 = vmatpush3.bf16.msra.mxu1 (!%p1717_p12), %v2294_v51  ;;  %v2298_v55 = vld [vmem:[%s2695_s3 + $0x18] sm:$0xff] (!%p1717_p12)   ;;  %v2300_v57 = vld [vmem:[%s2695_s3 + $0x20] sm:$0xff] (!%p1717_p12)   ;;  %v2302_v59 = vld [vmem:[%s2695_s3 + $0x28] sm:$0xff] (!%p1717_p12)  }
 0x164   : > { %2125 = vmatpush3.bf16.msra.mxu0 (!%p1717_p12), %v2295_v52  ;;  %2078 = vmatprep.subr.bf16.mxu1 (!%p1717_p12), %v2296_v53  ;;  %v811_v60 = vld [vmem:[#allocation2] sm:$0xff] (!%p1717_p12)  ;;  %v812_v61 = vld [vmem:[#allocation2 + $0x8] sm:$0xff] (!%p1717_p12)  ;;  %v2305_v2 = vld [vmem:[%s2694_s2 + $0x30] sm:$0xff] (!%p1717_p12)  }
 0x165   : > { %748 = vst [vmem:[#allocation2 + $0x50] sm:$0xff] %v716_v3  ;;  %764 = vst [vmem:[#allocation2 + $0xd0] sm:$0xff] %v732_v4  ;;  %v717_v7 = vadd.f32 %v1965_v5, %v428_v63  ;;  %v733_v8 = vadd.f32 %v2013_v6, %v444_v1  ;;  %2126 = vmatprep.subr.bf16.mxu0 (!%p1717_p12), %v2297_v54  ;;  %v2303_v62 = vld [vmem:[%s2694_s2 + $0x28] sm:$0xff] (!%p1717_p12)   ;;  %v843_v63 = vpack.c.bf16 (!%p1717_p12), %v812_v61, %v811_v60  ;;  %v2308_v0 = vld [vmem:[%s2582_s20] sm:$0xff] (!%p1717_p12)  }
 0x166   : > { %v2304_v1 = vld [vmem:[%s2695_s3 + $0x30] sm:$0xff] (!%p1717_p12)   ;;  %2138 = vmatprep.mubr.bf16.mxu0 (!%p1717_p12), %v2308_v0  ;;  %v2306_v3 = vld [vmem:[%s2695_s3 + $0x38] sm:$0xff] (!%p1717_p12)   ;;  %v2320_v52 = vld [vmem:[%s2582_s20 + $0x60] sm:$0xff] (!%p1717_p12)  }
 0x167   : > { %749 = vst [vmem:[#allocation2 + $0x58] sm:$0xff] %v717_v7  ;;  %765 = vst [vmem:[#allocation2 + $0xd8] sm:$0xff] %v733_v8  ;;  %v1966_v9 = vpop.f32.mrb[24].mxu0  ;;  %v2014_v10 = vpop.f32.mrb[24].mxu1  ;;  %2079 = vmatpush3.bf16.msra.mxu1 (!%p1717_p12), %v2296_v53  ;;  %2090 = vmatprep.mubr.bf16.mxu1 (!%p1717_p12), %v843_v63  ;;  %v2307_v4 = vld [vmem:[%s2694_s2 + $0x38] sm:$0xff] (!%p1717_p12)   ;;  %v813_v5 = vld [vmem:[#allocation2 + $0x10] sm:$0xff] (!%p1717_p12) }
 0x168   : > { %v1967_v12 = vpop.f32.mrb[25].mxu0  ;;  %v2015_v14 = vpop.f32.mrb[25].mxu1  ;;  %2127 = vmatpush3.bf16.msra.mxu0 (!%p1717_p12), %v2297_v54  ;;  %2080 = vmatprep.subr.bf16.mxu1 (!%p1717_p12), %v2298_v55  ;;  %v814_v6 = vld [vmem:[#allocation2 + $0x18] sm:$0xff] (!%p1717_p12)  ;;  %v815_v7 = vld [vmem:[#allocation2 + $0x20] sm:$0xff] (!%p1717_p12)  ;;  %v816_v8 = vld [vmem:[#allocation2 + $0x28] sm:$0xff] (!%p1717_p12) }
 0x169   : > { %v1968_v15 = vadd.f32 %v1967_v12, %v1966_v9  ;;  %v2016_v16 = vadd.f32 %v2015_v14, %v2014_v10  ;;  %v1969_v17 = vpop.f32.mrb[26].mxu0  ;;  %v2017_v18 = vpop.f32.mrb[26].mxu1  ;;  %2128 = vmatprep.subr.bf16.mxu0 (!%p1717_p12), %v2299_v56  ;;  %v844_v9 = vpack.c.bf16 (!%p1717_p12), %v814_v6, %v813_v5  ;;  %v2309_v10 = vld [vmem:[%s2582_s20 + $0x8] sm:$0xff] (!%p1717_p12)   ;;  %v2310_v12 = vld [vmem:[%s2582_s20 + $0x10] sm:$0xff] (!%p1717_p12)   ;;  %v818_v14 = vld [vmem:[#allocation2 + $0x38] sm:$0xff] (!%p1717_p12) }
 0x16a   : > { %v1970_v20 = vpop.f32.mrb[27].mxu0  ;;  %v2018_v22 = vpop.f32.mrb[27].mxu1  ;;  %v2322_v60 = vld [vmem:[%s2582_s20 + $0x70] sm:$0xff] (!%p1717_p12)   ;;  %v2323_v0 = vld [vmem:[%s2582_s20 + $0x78] sm:$0xff] (!%p1717_p12)  }
 0x16b   : > { %v718_v23 = vadd.f32 %v1968_v15, %v429_v11  ;;  %v734_v24 = vadd.f32 %v2016_v16, %v445_v13  ;;  %v1971_v25 = vadd.f32 %v1970_v20, %v1969_v17  ;;  %v2019_v26 = vadd.f32 %v2018_v22, %v2017_v18  ;;  %2081 = vmatpush3.bf16.msra.mxu1 (!%p1717_p12), %v2298_v55  ;;  %v817_v13 = vld [vmem:[#allocation2 + $0x30] sm:$0xff] (!%p1717_p12)  ;;  %v819_v15 = vld [vmem:[#allocation2 + $0x40] sm:$0xff] (!%p1717_p12)  ;;  %v820_v16 = vld [vmem:[#allocation2 + $0x48] sm:$0xff] (!%p1717_p12) }
 0x16c   : > { %2129 = vmatpush3.bf16.msra.mxu0 (!%p1717_p12), %v2299_v56  ;;  %2082 = vmatprep.subr.bf16.mxu1 (!%p1717_p12), %v2300_v57  ;;  %v845_v11 = vpack.c.bf16 (!%p1717_p12), %v816_v8, %v815_v7  ;;  %v846_v17 = vpack.c.bf16 (!%p1717_p12), %v818_v14, %v817_v13  ;;  %v2311_v18 = vld [vmem:[%s2582_s20 + $0x18] sm:$0xff] (!%p1717_p12)   ;;  %v2312_v20 = vld [vmem:[%s2582_s20 + $0x20] sm:$0xff] (!%p1717_p12)   ;;  %v837_v53 = vld [vmem:[#allocation2 + $0xd0] sm:$0xff] (!%p1717_p12) }
 0x16d   : > { %750 = vst [vmem:[#allocation2 + $0x60] sm:$0xff] %v718_v23  ;;  %766 = vst [vmem:[#allocation2 + $0xe0] sm:$0xff] %v734_v24  ;;  %v719_v27 = vadd.f32 %v1971_v25, %v430_v19  ;;  %v735_v28 = vadd.f32 %v2019_v26, %v446_v21  ;;  %2130 = vmatprep.subr.bf16.mxu0 (!%p1717_p12), %v2301_v58  ;;  %v847_v19 = vpack.c.bf16 (!%p1717_p12), %v820_v16, %v819_v15  ;;  %v821_v21 = vld [vmem:[#allocation2 + $0x50] sm:$0xff] (!%p1717_p12)  ;;  %v2313_v26 = vld [vmem:[%s2582_s20 + $0x28] sm:$0xff] (!%p1717_p12)  }
 0x16e   : > { %v822_v22 = vld [vmem:[#allocation2 + $0x58] sm:$0xff] (!%p1717_p12)  ;;  %v2621_v7 = vld [vmem:[%s2696_s4] ss:$0 sm:$0xff] (!%p1717_p12) }
 0x16f   : > { %751 = vst [vmem:[#allocation2 + $0x68] sm:$0xff] %v719_v27  ;;  %767 = vst [vmem:[#allocation2 + $0xe8] sm:$0xff] %v735_v28  ;;  %v1972_v29 = vpop.f32.mrb[28].mxu0  ;;  %v2020_v30 = vpop.f32.mrb[28].mxu1  ;;  %2083 = vmatpush3.bf16.msra.mxu1 (!%p1717_p12), %v2300_v57  ;;  %v848_v25 = vpack.c.bf16 (!%p1717_p12), %v822_v22, %v821_v21  ;;  %v2314_v28 = vld [vmem:[%s2582_s20 + $0x30] sm:$0xff] (!%p1717_p12)   ;;  %v838_v54 = vld [vmem:[#allocation2 + $0xd8] sm:$0xff] (!%p1717_p12) }
 0x170   : > { %v1973_v32 = vpop.f32.mrb[29].mxu0  ;;  %v2021_v34 = vpop.f32.mrb[29].mxu1  ;;  %2131 = vmatpush3.bf16.msra.mxu0 (!%p1717_p12), %v2301_v58  ;;  %2084 = vmatprep.subr.bf16.mxu1 (!%p1717_p12), %v2302_v59  ;;  %v856_v57 = vpack.c.bf16 (!%p1717_p12), %v838_v54, %v837_v53  ;;  %v2321_v58 = vld [vmem:[%s2582_s20 + $0x68] sm:$0xff] (!%p1717_p12)  }
 0x171   : > { %v1974_v35 = vadd.f32 %v1973_v32, %v1972_v29  ;;  %v2022_v36 = vadd.f32 %v2021_v34, %v2020_v30  ;;  %v1975_v37 = vpop.f32.mrb[30].mxu0  ;;  %v2023_v38 = vpop.f32.mrb[30].mxu1  ;;  %773 = sbr.rel (%p1717_p12) target bundleno = 661 (0x295), region = 71  ;;  %2132 = vmatprep.subr.bf16.mxu0 (!%p1717_p12), %v2303_v62  ;;  %v828_v32 = vld [vmem:[#allocation2 + $0x88] sm:$0xff] (!%p1717_p12)  ;;  %v2315_v34 = vld [vmem:[%s2582_s20 + $0x38] sm:$0xff] (!%p1717_p12)  }
 0x172   : > { %v1976_v40 = vpop.f32.mrb[31].mxu0  ;;  %v2024_v42 = vpop.f32.mrb[31].mxu1 }
 0x173   : > { %v720_v43 = vadd.f32 %v1974_v35, %v431_v31  ;;  %v736_v44 = vadd.f32 %v2022_v36, %v447_v33  ;;  %v1977_v45 = vadd.f32 %v1976_v40, %v1975_v37  ;;  %v2025_v46 = vadd.f32 %v2024_v42, %v2023_v38  ;;  %2085 = vmatpush3.bf16.msra.mxu1 (!%p1717_p12), %v2302_v59  ;;  %v827_v31 = vld [vmem:[#allocation2 + $0x80] sm:$0xff] (!%p1717_p12)  ;;  %v829_v37 = vld [vmem:[#allocation2 + $0x90] sm:$0xff] (!%p1717_p12)  ;;  %v830_v38 = vld [vmem:[#allocation2 + $0x98] sm:$0xff] (!%p1717_p12) }
 0x174   : > { %2133 = vmatpush3.bf16.msra.mxu0 (!%p1717_p12), %v2303_v62  ;;  %2086 = vmatprep.subr.bf16.mxu1 (!%p1717_p12), %v2304_v1  ;;  %v823_v23 = vld [vmem:[#allocation2 + $0x60] sm:$0xff] (!%p1717_p12)  ;;  %v851_v35 = vpack.c.bf16 (!%p1717_p12), %v828_v32, %v827_v31  ;;  %v832_v40 = vld [vmem:[#allocation2 + $0xa8] sm:$0xff] (!%p1717_p12) }
 0x175   : > { %752 = vst [vmem:[#allocation2 + $0x70] sm:$0xff] %v720_v43  ;;  %768 = vst [vmem:[#allocation2 + $0xf0] sm:$0xff] %v736_v44  ;;  %v721_v47 = vadd.f32 %v1977_v45, %v432_v39  ;;  %v737_v48 = vadd.f32 %v2025_v46, %v448_v41  ;;  %2134 = vmatprep.subr.bf16.mxu0 (!%p1717_p12), %v2305_v2  ;;  %v2316_v36 = vld [vmem:[%s2582_s20 + $0x40] sm:$0xff] (!%p1717_p12)   ;;  %v852_v41 = vpack.c.bf16 (!%p1717_p12), %v830_v38, %v829_v37  ;;  %v2317_v42 = vld [vmem:[%s2582_s20 + $0x48] sm:$0xff] (!%p1717_p12)  }
 0x176   : > { %v824_v24 = vld [vmem:[#allocation2 + $0x68] sm:$0xff] (!%p1717_p12)  ;;  %v831_v39 = vld [vmem:[#allocation2 + $0xa0] sm:$0xff] (!%p1717_p12)  ;;  %v2318_v44 = vld [vmem:[%s2582_s20 + $0x50] sm:$0xff] (!%p1717_p12)  }
 0x177   : > { %753 = vst [vmem:[#allocation2 + $0x78] sm:$0xff] %v721_v47  ;;  %769 = vst [vmem:[#allocation2 + $0xf8] sm:$0xff] %v737_v48  ;;  %2087 = vmatpush3.bf16.msra.mxu1 (!%p1717_p12), %v2304_v1  ;;  %v849_v27 = vpack.c.bf16 (!%p1717_p12), %v824_v24, %v823_v23  ;;  %v853_v43 = vpack.c.bf16 (!%p1717_p12), %v832_v40, %v831_v39  ;;  %v833_v45 = vld [vmem:[#allocation2 + $0xb0] sm:$0xff] (!%p1717_p12)  ;;  %v834_v46 = vld [vmem:[#allocation2 + $0xb8] sm:$0xff] (!%p1717_p12) }
 0x178   : > { %2135 = vmatpush3.bf16.msra.mxu0 %v2305_v2  ;;  %2088 = vmatprep.subr.bf16.mxu1 %v2306_v3  ;;  %v835_v47 = vld [vmem:[#allocation2 + $0xc0] sm:$0xff]  ;;  %v836_v48 = vld [vmem:[#allocation2 + $0xc8] sm:$0xff]  ;;  %v854_v49 = vpack.c.bf16 %v834_v46, %v833_v45 }
 0x179   : > { %2136 = vmatprep.subr.bf16.mxu0 %v2307_v4  ;;  %v855_v51 = vpack.c.bf16 %v836_v48, %v835_v47  ;;  %v839_v55 = vld [vmem:[#allocation2 + $0xe0] sm:$0xff]  ;;  %v840_v56 = vld [vmem:[#allocation2 + $0xe8] sm:$0xff] }
 0x17a   : > { %v857_v59 = vpack.c.bf16 %v840_v56, %v839_v55 }
 0x17b   : > { %2089 = vmatpush3.bf16.msra.mxu1 %v2306_v3 }
 0x17c   : > { %2137 = vmatpush3.bf16.msra.mxu0 %v2307_v4  ;;  %v825_v29 = vld [vmem:[#allocation2 + $0x70] sm:$0xff] }
 0x17d   : > { %v841_v61 = vld [vmem:[#allocation2 + $0xf0] sm:$0xff] }
 0x17e   : > { %2091 = vmatmul.mubr.bf16.vlgmr.msra.gmra.mrb[0].mxu1 %v844_v9  ;;  %v826_v30 = vld [vmem:[#allocation2 + $0x78] sm:$0xff] }
 0x17f   : > { %2139 = vmatmul.mubr.bf16.vlgmr.msra.gmra.mrb[0].mxu0 %v2309_v10  ;;  %2094 = vmatprep.mubr.bf16.mxu1 %v845_v11  ;;  %v850_v33 = vpack.c.bf16 %v826_v30, %v825_v29  ;;  %v842_v62 = vld [vmem:[#allocation2 + $0xf8] sm:$0xff] }
 0x180   : > { %2142 = vmatprep.mubr.bf16.mxu0 %v2310_v12  ;;  %v858_v63 = vpack.c.bf16 %v842_v62, %v841_v61 }
 0x186   : > { %2095 = vmatmul.mubr.bf16.gmra.mrb[4].mxu1 %v846_v17 }
 0x187   : > { %2143 = vmatmul.mubr.bf16.gmra.mrb[4].mxu0 %v2311_v18  ;;  %2098 = vmatprep.mubr.bf16.mxu1 %v847_v19 }
 0x188   : > { %2146 = vmatprep.mubr.bf16.mxu0 %v2312_v20 }
 0x18e   : > { %2099 = vmatmul.mubr.bf16.gmra.mrb[8].mxu1 %v848_v25 }
 0x18f   : > { %2147 = vmatmul.mubr.bf16.gmra.mrb[8].mxu0 %v2313_v26  ;;  %2102 = vmatprep.mubr.bf16.mxu1 %v849_v27 }
 0x190   : > { %2150 = vmatprep.mubr.bf16.mxu0 %v2314_v28 }
 0x196   : > { %2103 = vmatmul.mubr.bf16.gmra.mrb[12].mxu1 %v850_v33 }
 0x197   : > { %2151 = vmatmul.mubr.bf16.gmra.mrb[12].mxu0 %v2315_v34  ;;  %2106 = vmatprep.mubr.bf16.mxu1 %v851_v35 }
 0x198   : > { %2154 = vmatprep.mubr.bf16.mxu0 %v2316_v36 }
 0x19e   : > { %2107 = vmatmul.mubr.bf16.gmra.mrb[16].mxu1 %v852_v41 }
 0x19f   : > { %2155 = vmatmul.mubr.bf16.gmra.mrb[16].mxu0 %v2317_v42  ;;  %2110 = vmatprep.mubr.bf16.mxu1 %v853_v43 }
 0x1a0   : > { %2158 = vmatprep.mubr.bf16.mxu0 %v2318_v44 }
 0x1a6   : > { %2111 = vmatmul.mubr.bf16.gmra.mrb[20].mxu1 %v854_v49 }
 0x1a7   : > { %2159 = vmatmul.mubr.bf16.gmra.mrb[20].mxu0 %v2319_v50  ;;  %2114 = vmatprep.mubr.bf16.mxu1 %v855_v51 }
 0x1a8   : > { %2162 = vmatprep.mubr.bf16.mxu0 %v2320_v52 }
 0x1ae   : > { %2115 = vmatmul.mubr.bf16.gmra.mrb[24].mxu1 %v856_v57 }
 0x1af   : > { %2163 = vmatmul.mubr.bf16.gmra.mrb[24].mxu0 %v2321_v58  ;;  %2118 = vmatprep.mubr.bf16.mxu1 %v857_v59 }
 0x1b0   : > { %2166 = vmatprep.mubr.bf16.mxu0 %v2322_v60 }
 0x1b6   : > { %2119 = vmatmul.mubr.bf16.gmra.mrb[28].mxu1 %v858_v63 }
 0x1b7   : > { %2167 = vmatmul.mubr.bf16.gmra.mrb[28].mxu0 %v2323_v0 }
 0x251   : > { %v2092_v1 = vpop.f32.mrb[0].mxu1 }
 0x252   : > { %v2140_v2 = vpop.f32.mrb[0].mxu0  ;;  %v973_v3 = vpop.f32.mrb[1].mxu1 }
 0x253   : > { %v1287_v4 = vadd.f32 %v2140_v2, %v2092_v1  ;;  %v1278_v5 = vpop.f32.mrb[1].mxu0  ;;  %v2093_v6 = vpop.f32.mrb[2].mxu1 }
 0x254   : > { %v1279_v8 = vadd.f32 %v1278_v5, %v973_v3  ;;  %v2141_v9 = vpop.f32.mrb[2].mxu0  ;;  %v976_v10 = vpop.f32.mrb[3].mxu1 }
 0x255   : > { %v1290_v11 = vadd.f32 %v2141_v9, %v2093_v6  ;;  %v1281_v12 = vpop.f32.mrb[3].mxu0  ;;  %v1414_v14 = vadd.f32 %v2621_v7, %v1287_v4 }
 0x256   : > { %v1282_v13 = vadd.f32 %v1281_v12, %v976_v10  ;;  %v1412_v16 = vadd.f32 %v2621_v7, %v1279_v8 }
 0x257   : > { %v1415_v15 = vadd.f32 %v2621_v7, %v1290_v11 }
 0x258   : > { %v1413_v17 = vadd.f32 %v2621_v7, %v1282_v13 }
 0x259   : > { %v1827_v18 = vpack.c.bf16 %v1415_v15, %v1414_v14  ;;  %v2096_v19 = vpop.f32.mrb[4].mxu1 }
 0x25a   : > { %v1822_v20 = vpack.c.bf16 %v1413_v17, %v1412_v16  ;;  %v2144_v21 = vpop.f32.mrb[4].mxu0  ;;  %v989_v22 = vpop.f32.mrb[5].mxu1 }
 0x25b   : > { %1899 = vst [vmem:[%s2496_s8 + $0x8] sm:$0xff] %v1827_v18   ;;  %v1303_v23 = vadd.f32 %v2144_v21, %v2096_v19  ;;  %v1294_v24 = vpop.f32.mrb[5].mxu0  ;;  %v2097_v25 = vpop.f32.mrb[6].mxu1 }
 0x25c   : > { %1823 = vst [vmem:[%s2496_s8] sm:$0xff] %v1822_v20   ;;  %v1295_v26 = vadd.f32 %v1294_v24, %v989_v22  ;;  %v2145_v27 = vpop.f32.mrb[6].mxu0  ;;  %v992_v28 = vpop.f32.mrb[7].mxu1 }
 0x25d   : > { %v1306_v29 = vadd.f32 %v2145_v27, %v2097_v25  ;;  %v1297_v30 = vpop.f32.mrb[7].mxu0  ;;  %v1418_v32 = vadd.f32 %v2621_v7, %v1303_v23 }
 0x25e   : > { %v1298_v31 = vadd.f32 %v1297_v30, %v992_v28  ;;  %v1416_v34 = vadd.f32 %v2621_v7, %v1295_v26 }
 0x25f   : > { %v1419_v33 = vadd.f32 %v2621_v7, %v1306_v29 }
 0x260   : > { %v1417_v35 = vadd.f32 %v2621_v7, %v1298_v31 }
 0x261   : > { %v1837_v36 = vpack.c.bf16 %v1419_v33, %v1418_v32  ;;  %v2100_v37 = vpop.f32.mrb[8].mxu1 }
 0x262   : > { %v1832_v38 = vpack.c.bf16 %v1417_v35, %v1416_v34  ;;  %v2148_v39 = vpop.f32.mrb[8].mxu0  ;;  %v1005_v40 = vpop.f32.mrb[9].mxu1 }
 0x263   : > { %1901 = vst [vmem:[%s2496_s8 + $0x18] sm:$0xff] %v1837_v36   ;;  %v1319_v41 = vadd.f32 %v2148_v39, %v2100_v37  ;;  %v1310_v42 = vpop.f32.mrb[9].mxu0  ;;  %v2101_v43 = vpop.f32.mrb[10].mxu1 }
 0x264   : > { %1900 = vst [vmem:[%s2496_s8 + $0x10] sm:$0xff] %v1832_v38   ;;  %v1311_v44 = vadd.f32 %v1310_v42, %v1005_v40  ;;  %v2149_v45 = vpop.f32.mrb[10].mxu0  ;;  %v1008_v46 = vpop.f32.mrb[11].mxu1 }
 0x265   : > { %v1322_v47 = vadd.f32 %v2149_v45, %v2101_v43  ;;  %v1313_v48 = vpop.f32.mrb[11].mxu0  ;;  %v1422_v50 = vadd.f32 %v2621_v7, %v1319_v41 }
 0x266   : > { %v1314_v49 = vadd.f32 %v1313_v48, %v1008_v46  ;;  %v1420_v52 = vadd.f32 %v2621_v7, %v1311_v44 }
 0x267   : > { %v1423_v51 = vadd.f32 %v2621_v7, %v1322_v47 }
 0x268   : > { %v1421_v53 = vadd.f32 %v2621_v7, %v1314_v49 }
 0x269   : > { %v1847_v54 = vpack.c.bf16 %v1423_v51, %v1422_v50  ;;  %v2104_v55 = vpop.f32.mrb[12].mxu1 }
 0x26a   : > { %v1842_v56 = vpack.c.bf16 %v1421_v53, %v1420_v52  ;;  %v2152_v57 = vpop.f32.mrb[12].mxu0  ;;  %v1021_v58 = vpop.f32.mrb[13].mxu1 }
 0x26b   : > { %1903 = vst [vmem:[%s2496_s8 + $0x28] sm:$0xff] %v1847_v54   ;;  %v1335_v59 = vadd.f32 %v2152_v57, %v2104_v55  ;;  %v1326_v60 = vpop.f32.mrb[13].mxu0  ;;  %v2105_v61 = vpop.f32.mrb[14].mxu1 }
 0x26c   : > { %1902 = vst [vmem:[%s2496_s8 + $0x20] sm:$0xff] %v1842_v56   ;;  %v1327_v62 = vadd.f32 %v1326_v60, %v1021_v58  ;;  %v2153_v63 = vpop.f32.mrb[14].mxu0  ;;  %v1024_v0 = vpop.f32.mrb[15].mxu1 }
 0x26d   : > { %v1338_v1 = vadd.f32 %v2153_v63, %v2105_v61  ;;  %v1329_v2 = vpop.f32.mrb[15].mxu0  ;;  %v1426_v4 = vadd.f32 %v2621_v7, %v1335_v59 }
 0x26e   : > { %v1330_v3 = vadd.f32 %v1329_v2, %v1024_v0  ;;  %v1424_v6 = vadd.f32 %v2621_v7, %v1327_v62 }
 0x26f   : > { %v1427_v5 = vadd.f32 %v2621_v7, %v1338_v1 }
 0x270   : > { %v1425_v8 = vadd.f32 %v2621_v7, %v1330_v3 }
 0x271   : > { %v1857_v9 = vpack.c.bf16 %v1427_v5, %v1426_v4  ;;  %v2108_v10 = vpop.f32.mrb[16].mxu1 }
 0x272   : > { %v1852_v11 = vpack.c.bf16 %v1425_v8, %v1424_v6  ;;  %v2156_v12 = vpop.f32.mrb[16].mxu0  ;;  %v1037_v13 = vpop.f32.mrb[17].mxu1 }
 0x273   : > { %1905 = vst [vmem:[%s2496_s8 + $0x38] sm:$0xff] %v1857_v9   ;;  %v1351_v14 = vadd.f32 %v2156_v12, %v2108_v10  ;;  %v1342_v15 = vpop.f32.mrb[17].mxu0  ;;  %v2109_v16 = vpop.f32.mrb[18].mxu1 }
 0x274   : > { %1904 = vst [vmem:[%s2496_s8 + $0x30] sm:$0xff] %v1852_v11   ;;  %v1343_v17 = vadd.f32 %v1342_v15, %v1037_v13  ;;  %v2157_v18 = vpop.f32.mrb[18].mxu0  ;;  %v1040_v19 = vpop.f32.mrb[19].mxu1 }
 0x275   : > { %v1354_v20 = vadd.f32 %v2157_v18, %v2109_v16  ;;  %v1345_v21 = vpop.f32.mrb[19].mxu0  ;;  %v1430_v23 = vadd.f32 %v2621_v7, %v1351_v14 }
 0x276   : > { %v1346_v22 = vadd.f32 %v1345_v21, %v1040_v19  ;;  %v1428_v25 = vadd.f32 %v2621_v7, %v1343_v17 }
 0x277   : > { %v1431_v24 = vadd.f32 %v2621_v7, %v1354_v20 }
 0x278   : > { %v1429_v26 = vadd.f32 %v2621_v7, %v1346_v22 }
 0x279   : > { %v1867_v27 = vpack.c.bf16 %v1431_v24, %v1430_v23  ;;  %v2112_v28 = vpop.f32.mrb[20].mxu1 }
 0x27a   : > { %v1862_v29 = vpack.c.bf16 %v1429_v26, %v1428_v25  ;;  %v2160_v30 = vpop.f32.mrb[20].mxu0  ;;  %v1053_v31 = vpop.f32.mrb[21].mxu1 }
 0x27b   : > { %1907 = vst [vmem:[%s2496_s8 + $0x48] sm:$0xff] %v1867_v27   ;;  %v1367_v32 = vadd.f32 %v2160_v30, %v2112_v28  ;;  %v1358_v33 = vpop.f32.mrb[21].mxu0  ;;  %v2113_v34 = vpop.f32.mrb[22].mxu1 }
 0x27c   : > { %1906 = vst [vmem:[%s2496_s8 + $0x40] sm:$0xff] %v1862_v29   ;;  %v1359_v35 = vadd.f32 %v1358_v33, %v1053_v31  ;;  %v2161_v36 = vpop.f32.mrb[22].mxu0  ;;  %v1056_v37 = vpop.f32.mrb[23].mxu1 }
 0x27d   : > { %v1370_v38 = vadd.f32 %v2161_v36, %v2113_v34  ;;  %v1361_v39 = vpop.f32.mrb[23].mxu0  ;;  %v1434_v41 = vadd.f32 %v2621_v7, %v1367_v32 }
 0x27e   : > { %v1362_v40 = vadd.f32 %v1361_v39, %v1056_v37  ;;  %v1432_v43 = vadd.f32 %v2621_v7, %v1359_v35 }
 0x27f   : > { %v1435_v42 = vadd.f32 %v2621_v7, %v1370_v38 }
 0x280   : > { %v1433_v44 = vadd.f32 %v2621_v7, %v1362_v40 }
 0x281   : > { %v1877_v45 = vpack.c.bf16 %v1435_v42, %v1434_v41  ;;  %v2116_v46 = vpop.f32.mrb[24].mxu1 }
 0x282   : > { %v1872_v47 = vpack.c.bf16 %v1433_v44, %v1432_v43  ;;  %v2164_v48 = vpop.f32.mrb[24].mxu0  ;;  %v1069_v49 = vpop.f32.mrb[25].mxu1 }
 0x283   : > { %1909 = vst [vmem:[%s2496_s8 + $0x58] sm:$0xff] %v1877_v45   ;;  %v1383_v50 = vadd.f32 %v2164_v48, %v2116_v46  ;;  %v1374_v51 = vpop.f32.mrb[25].mxu0  ;;  %v2117_v52 = vpop.f32.mrb[26].mxu1 }
 0x284   : > { %1908 = vst [vmem:[%s2496_s8 + $0x50] sm:$0xff] %v1872_v47   ;;  %v1375_v53 = vadd.f32 %v1374_v51, %v1069_v49  ;;  %v2165_v54 = vpop.f32.mrb[26].mxu0  ;;  %v1072_v55 = vpop.f32.mrb[27].mxu1 }
 0x285   : > { %v1386_v56 = vadd.f32 %v2165_v54, %v2117_v52  ;;  %v1377_v57 = vpop.f32.mrb[27].mxu0  ;;  %v1438_v59 = vadd.f32 %v2621_v7, %v1383_v50 }
 0x286   : > { %v1378_v58 = vadd.f32 %v1377_v57, %v1072_v55  ;;  %v1436_v61 = vadd.f32 %v2621_v7, %v1375_v53 }
 0x287   : > { %v1439_v60 = vadd.f32 %v2621_v7, %v1386_v56 }
 0x288   : > { %v1437_v62 = vadd.f32 %v2621_v7, %v1378_v58 }
 0x289   : > { %v1887_v63 = vpack.c.bf16 %v1439_v60, %v1438_v59  ;;  %v2120_v0 = vpop.f32.mrb[28].mxu1 }
 0x28a   : > { %v1882_v1 = vpack.c.bf16 %v1437_v62, %v1436_v61  ;;  %v2168_v2 = vpop.f32.mrb[28].mxu0  ;;  %v1085_v3 = vpop.f32.mrb[29].mxu1 }
 0x28b   : > { %1911 = vst [vmem:[%s2496_s8 + $0x68] sm:$0xff] %v1887_v63   ;;  %v1399_v4 = vadd.f32 %v2168_v2, %v2120_v0  ;;  %v1390_v5 = vpop.f32.mrb[29].mxu0  ;;  %v2121_v6 = vpop.f32.mrb[30].mxu1 }
 0x28c   : > { %1910 = vst [vmem:[%s2496_s8 + $0x60] sm:$0xff] %v1882_v1   ;;  %v1391_v8 = vadd.f32 %v1390_v5, %v1085_v3  ;;  %v2169_v9 = vpop.f32.mrb[30].mxu0  ;;  %v1088_v10 = vpop.f32.mrb[31].mxu1 }
 0x28d   : > { %v1402_v11 = vadd.f32 %v2169_v9, %v2121_v6  ;;  %v1393_v12 = vpop.f32.mrb[31].mxu0  ;;  %v1442_v14 = vadd.f32 %v2621_v7, %v1399_v4 }
 0x28e   : > { %v1394_v13 = vadd.f32 %v1393_v12, %v1088_v10  ;;  %v1440_v16 = vadd.f32 %v2621_v7, %v1391_v8 }
 0x28f   : > { %v1443_v15 = vadd.f32 %v2621_v7, %v1402_v11 }
 0x290   : > { %v1441_v17 = vadd.f32 %v2621_v7, %v1394_v13 }
 0x291   : > { %v1897_v18 = vpack.c.bf16 %v1443_v15, %v1442_v14 }
 0x292   : > { %v1892_v19 = vpack.c.bf16 %v1441_v17, %v1440_v16 }
 0x293   : > { %1913 = vst [vmem:[%s2496_s8 + $0x78] sm:$0xff] %v1897_v18  }
 0x294   : > { %1912 = vst [vmem:[%s2496_s8 + $0x70] sm:$0xff] %v1892_v19  }
 0x295 PF: > { %s15_s24 = sadd.s32 1, %s2378_s24   ;;  %s2698_s18 = smov %s2358_s19 }
 0x296   : > { %p12_p13 = scmp.ge.s32.totalorder %s15_s24, 11   ;;  %s2699_s19 = smov %s2462_s6 }
 0x297   : > { %s2700_s20 = smov %s2370_s22  ;;  %s2701_s21 = smov %s2374_s23 }
 0x298   : > { %s2702_s22 = smov %s2705_s25  ;;  %s2703_s23 = smov %s2709_s26 }
 0x299   :  { %14 = sbr.rel (!%p12_p13) target bundleno = 4 (0x4), region = 108 }

// kernel: gcn_forward.7
= control target key start
LH: loop header
LB: loop body
LE: loop exit
PB: predicated region body
PF: predicated region fallthrough
CT: control target
= control target key end

     0   :  { %v662_v0 = vmov 0.0   ;;  %vm663_vm0 = vmmov 0   ;;  %s865_s3 = inlined_call_operand.vmem [shape: bf16[128,128], index: 3, kind: input, shape index: {}]   ;;  %s866_s2 = inlined_call_operand.vmem [shape: bf16[128,128], index: 2, kind: input, shape index: {}]   ;;  %s867_s1 = inlined_call_operand.vmem [shape: bf16[40,128], index: 1, kind: input, shape index: {}]   ;;  %s868_s0 = inlined_call_operand.vmem [shape: bf16[40,128], index: 0, kind: input, shape index: {}]   ;;  %s869_s5 = inlined_call_operand.vmem [shape: bf16[128,128], index: 5, kind: input, shape index: {}]   ;;  %s870_s4 = inlined_call_operand.vmem [shape: f32[1,128], index: 4, kind: input, shape index: {}]   ;;  %s871_s6 = inlined_call_operand.vmem [shape: f32[1,128], index: 6, kind: input, shape index: {}]   ;;  %s872_s7 = inlined_call_operand.vmem [shape: f32[40,128], index: 7, kind: output, shape index: {}]  }
   0x1   :  { %530 = vmatprep.subr.bf16.mxu0 %v662_v0  ;;  %558 = vmatprep.subr.bf16.mxu1 %v662_v0  ;;  %v632_v1 = vld [vmem:[%s865_s3] sm:$0xff]   ;;  %v634_v3 = vld [vmem:[%s865_s3 + $0x8] sm:$0xff]   ;;  %v636_v5 = vld [vmem:[%s865_s3 + $0x10] sm:$0xff]  }
   0x2   :  { %v633_v2 = vld [vmem:[%s866_s2] sm:$0xff]   ;;  %546 = vmatprep.mubr.msk.bf16.mxu0 %vm663_vm0, %v662_v0  ;;  %574 = vmatprep.mubr.msk.bf16.mxu1 %vm663_vm0, %v662_v0  ;;  %v635_v4 = vld [vmem:[%s866_s2 + $0x8] sm:$0xff]   ;;  %v637_v6 = vld [vmem:[%s866_s2 + $0x10] sm:$0xff]  }
   0x3   :  { %531 = vmatpush3.bf16.msra.mxu0 %v632_v1  ;;  %559 = vmatpush3.bf16.msra.mxu1 %v633_v2  ;;  %v638_v7 = vld [vmem:[%s865_s3 + $0x18] sm:$0xff]   ;;  %v640_v9 = vld [vmem:[%s865_s3 + $0x20] sm:$0xff]   ;;  %v642_v11 = vld [vmem:[%s865_s3 + $0x28] sm:$0xff]  }
   0x4   :  { %532 = vmatprep.subr.bf16.mxu0 %v662_v0  ;;  %560 = vmatprep.subr.bf16.mxu1 %v662_v0  ;;  %v639_v8 = vld [vmem:[%s866_s2 + $0x18] sm:$0xff]   ;;  %v641_v10 = vld [vmem:[%s866_s2 + $0x20] sm:$0xff]   ;;  %v643_v12 = vld [vmem:[%s866_s2 + $0x28] sm:$0xff]  }
   0x5   :  { %v644_v13 = vld [vmem:[%s865_s3 + $0x30] sm:$0xff]   ;;  %v646_v15 = vld [vmem:[%s865_s3 + $0x38] sm:$0xff]   ;;  %v648_v17 = vld [vmem:[%s867_s1] sm:$0xff]  }
   0x6   :  { %v645_v14 = vld [vmem:[%s866_s2 + $0x30] sm:$0xff]   ;;  %v647_v16 = vld [vmem:[%s866_s2 + $0x38] sm:$0xff]   ;;  %v649_v18 = vld [vmem:[%s868_s0] sm:$0xff]  }
   0x7   :  { %533 = vmatpush3.bf16.msra.mxu0 %v634_v3  ;;  %561 = vmatpush3.bf16.msra.mxu1 %v635_v4  ;;  %v654_v19 = vld [vmem:[%s869_s5] sm:$0xff]   ;;  %v655_v20 = vld [vmem:[%s869_s5 + $0x8] sm:$0xff]   ;;  %v656_v23 = vld [vmem:[%s869_s5 + $0x10] sm:$0xff]  }
   0x8   :  { %534 = vmatprep.subr.bf16.mxu0 %v662_v0  ;;  %562 = vmatprep.subr.bf16.mxu1 %v662_v0  ;;  %v650_v21 = vld [vmem:[%s867_s1 + $0x8] sm:$0xff]   ;;  %v657_v24 = vld [vmem:[%s869_s5 + $0x18] sm:$0xff]   ;;  %v652_v25 = vld [vmem:[%s867_s1 + $0x10] ss:$0 sps:$4 sm:$0xff]  }
   0x9   :  { %v651_v22 = vld [vmem:[%s868_s0 + $0x8] sm:$0xff]   ;;  %v653_v26 = vld [vmem:[%s868_s0 + $0x10] ss:$0 sps:$4 sm:$0xff]   ;;  %v658_v27 = vld [vmem:[%s869_s5 + $0x20] sm:$0xff]  }
   0xa   :  { %v659_v28 = vld [vmem:[%s869_s5 + $0x28] sm:$0xff]   ;;  %v660_v29 = vld [vmem:[%s869_s5 + $0x30] sm:$0xff]   ;;  %v661_v30 = vld [vmem:[%s869_s5 + $0x38] sm:$0xff]  }
   0xb   :  { %535 = vmatpush3.bf16.msra.mxu0 %v636_v5  ;;  %563 = vmatpush3.bf16.msra.mxu1 %v637_v6  ;;  %v487_v33 = vld [vmem:[%s870_s4] ss:$0 sm:$0xff] }
   0xc   :  { %536 = vmatprep.subr.bf16.mxu0 %v662_v0  ;;  %564 = vmatprep.subr.bf16.mxu1 %v662_v0 }
   0xf   :  { %537 = vmatpush3.bf16.msra.mxu0 %v638_v7  ;;  %565 = vmatpush3.bf16.msra.mxu1 %v639_v8 }
  0x10   :  { %538 = vmatprep.subr.bf16.mxu0 %v662_v0  ;;  %566 = vmatprep.subr.bf16.mxu1 %v662_v0 }
  0x13   :  { %539 = vmatpush3.bf16.msra.mxu0 %v640_v9  ;;  %567 = vmatpush3.bf16.msra.mxu1 %v641_v10 }
  0x14   :  { %540 = vmatprep.subr.bf16.mxu0 %v662_v0  ;;  %568 = vmatprep.subr.bf16.mxu1 %v662_v0 }
  0x17   :  { %541 = vmatpush3.bf16.msra.mxu0 %v642_v11  ;;  %569 = vmatpush3.bf16.msra.mxu1 %v643_v12  ;;  %v488_v11 = vld [vmem:[%s871_s6] ss:$0 sm:$0xff] }
  0x18   :  { %542 = vmatprep.subr.bf16.mxu0 %v662_v0  ;;  %570 = vmatprep.subr.bf16.mxu1 %v662_v0 }
  0x1b   :  { %543 = vmatpush3.bf16.msra.mxu0 %v644_v13  ;;  %571 = vmatpush3.bf16.msra.mxu1 %v645_v14 }
  0x1c   :  { %544 = vmatprep.subr.bf16.mxu0 %v662_v0  ;;  %572 = vmatprep.subr.bf16.mxu1 %v662_v0 }
  0x1f   :  { %545 = vmatpush3.bf16.msra.mxu0 %v646_v15  ;;  %573 = vmatpush3.bf16.msra.mxu1 %v647_v16 }
  0x20   :  { %586 = vmatprep.subr.bf16.mxu0 %v662_v0  ;;  %614 = vmatprep.subr.bf16.mxu1 %v662_v0 }
  0x22   :  { %547 = vmatmul.mubr.bf16.vlgmr.msra.gmra.mrb[0].mxu0 %v648_v17  ;;  %575 = vmatmul.mubr.bf16.vlgmr.msra.gmra.mrb[0].mxu1 %v649_v18 }
  0x23   :  { %550 = vmatprep.mubr.msk.bf16.mxu0 %vm663_vm0, %v662_v0  ;;  %578 = vmatprep.mubr.msk.bf16.mxu1 %vm663_vm0, %v662_v0 }
  0x24   :  { %587 = vmatpush3.bf16.msra.mxu0 %v654_v19  ;;  %622 = vmatpush3.bf16.msra.mxu1 %v654_v19 }
  0x25   :  { %588 = vmatprep.subr.bf16.mxu0 %v662_v0  ;;  %615 = vmatprep.subr.bf16.mxu1 %v662_v0 }
  0x28   :  { %589 = vmatpush3.bf16.msra.mxu0 %v655_v20  ;;  %623 = vmatpush3.bf16.msra.mxu1 %v655_v20 }
  0x29   :  { %590 = vmatprep.subr.bf16.mxu0 %v662_v0  ;;  %616 = vmatprep.subr.bf16.mxu1 %v662_v0 }
  0x2a   :  { %551 = vmatmul.mubr.bf16.gmra.mrb[4].mxu0 %v650_v21  ;;  %579 = vmatmul.mubr.bf16.gmra.mrb[4].mxu1 %v651_v22 }
  0x2b   :  { %554 = vmatprep.mubr.msk.bf16.mxu0 %vm663_vm0, %v662_v0  ;;  %582 = vmatprep.mubr.msk.bf16.mxu1 %vm663_vm0, %v662_v0 }
  0x2c   :  { %591 = vmatpush3.bf16.msra.mxu0 %v656_v23  ;;  %624 = vmatpush3.bf16.msra.mxu1 %v656_v23 }
  0x2d   :  { %592 = vmatprep.subr.bf16.mxu0 %v662_v0  ;;  %617 = vmatprep.subr.bf16.mxu1 %v662_v0 }
  0x30   :  { %593 = vmatpush3.bf16.msra.mxu0 %v657_v24  ;;  %625 = vmatpush3.bf16.msra.mxu1 %v657_v24 }
  0x31   :  { %594 = vmatprep.subr.bf16.mxu0 %v662_v0  ;;  %618 = vmatprep.subr.bf16.mxu1 %v662_v0 }
  0x32   :  { %555 = vmatmul.mubr.bf16.gmra.mrb[8].mxu0 %v652_v25  ;;  %583 = vmatmul.mubr.bf16.gmra.mrb[8].mxu1 %v653_v26 }
  0x33   :  { %602 = vmatprep.mubr.msk.bf16.mxu0 %vm663_vm0, %v662_v0  ;;  %606 = vmatprep.mubr.msk.bf16.mxu1 %vm663_vm0, %v662_v0 }
  0x34   :  { %595 = vmatpush3.bf16.msra.mxu0 %v658_v27  ;;  %626 = vmatpush3.bf16.msra.mxu1 %v658_v27 }
  0x35   :  { %596 = vmatprep.subr.bf16.mxu0 %v662_v0  ;;  %619 = vmatprep.subr.bf16.mxu1 %v662_v0 }
  0x38   :  { %597 = vmatpush3.bf16.msra.mxu0 %v659_v28  ;;  %627 = vmatpush3.bf16.msra.mxu1 %v659_v28 }
  0x39   :  { %598 = vmatprep.subr.bf16.mxu0 %v662_v0  ;;  %620 = vmatprep.subr.bf16.mxu1 %v662_v0 }
  0x3c   :  { %599 = vmatpush3.bf16.msra.mxu0 %v660_v29  ;;  %628 = vmatpush3.bf16.msra.mxu1 %v660_v29 }
  0x3d   :  { %600 = vmatprep.subr.bf16.mxu0 %v662_v0  ;;  %621 = vmatprep.subr.bf16.mxu1 %v662_v0 }
  0x40   :  { %601 = vmatpush3.bf16.msra.mxu0 %v661_v30  ;;  %629 = vmatpush3.bf16.msra.mxu1 %v661_v30 }
  0xf5   :  { %v167_v31 = vpop.f32.mrb[0].mxu0  ;;  %v287_v32 = vpop.f32.mrb[0].mxu1 }
  0xf6   :  { %v548_v34 = vpop.f32.mrb[1].mxu0  ;;  %v288_v35 = vadd.f32 %v287_v32, %v167_v31  ;;  %v576_v36 = vpop.f32.mrb[1].mxu1 }
  0xf7   :  { %v170_v37 = vpop.f32.mrb[2].mxu0  ;;  %v290_v38 = vpop.f32.mrb[2].mxu1 }
  0xf8   :  { %v549_v39 = vpop.f32.mrb[3].mxu0  ;;  %v316_v40 = vadd.f32 %v487_v33, %v288_v35  ;;  %v291_v41 = vadd.f32 %v290_v38, %v170_v37  ;;  %v577_v42 = vpop.f32.mrb[3].mxu1 }
  0xfa   :  { %v317_v43 = vadd.f32 %v487_v33, %v291_v41  ;;  %v321_v44 = vmax.f32 %v316_v40, 0.0 }
  0xfc   :  { %v322_v45 = vmax.f32 %v317_v43, 0.0 }
  0xfd   :  { %v175_v46 = vpop.f32.mrb[4].mxu0  ;;  %v295_v47 = vpop.f32.mrb[4].mxu1 }
  0xfe   :  { %v552_v48 = vpop.f32.mrb[5].mxu0  ;;  %v326_v49 = vpack.c.bf16 %v322_v45, %v321_v44  ;;  %v296_v50 = vadd.f32 %v295_v47, %v175_v46  ;;  %v580_v51 = vpop.f32.mrb[5].mxu1 }
  0xff   :  { %v178_v52 = vpop.f32.mrb[6].mxu0  ;;  %v298_v53 = vpop.f32.mrb[6].mxu1 }
 0x100   :  { %v553_v54 = vpop.f32.mrb[7].mxu0  ;;  %v318_v55 = vadd.f32 %v487_v33, %v296_v50  ;;  %v299_v56 = vadd.f32 %v298_v53, %v178_v52  ;;  %v581_v57 = vpop.f32.mrb[7].mxu1  ;;  %603 = vmatmul.mubr.bf16.vlgmr.msra.gmra.mrb[12].mxu0 %v326_v49 }
 0x102   :  { %v319_v58 = vadd.f32 %v487_v33, %v299_v56  ;;  %v323_v59 = vmax.f32 %v318_v55, 0.0 }
 0x104   :  { %v324_v60 = vmax.f32 %v319_v58, 0.0 }
 0x105   :  { %v183_v61 = vpop.f32.mrb[8].mxu0  ;;  %v303_v62 = vpop.f32.mrb[8].mxu1 }
 0x106   :  { %v556_v63 = vpop.f32.mrb[9].mxu0  ;;  %v327_v1 = vpack.c.bf16 %v324_v60, %v323_v59  ;;  %v304_v2 = vadd.f32 %v303_v62, %v183_v61  ;;  %v584_v3 = vpop.f32.mrb[9].mxu1 }
 0x107   :  { %v186_v4 = vpop.f32.mrb[10].mxu0  ;;  %v306_v5 = vpop.f32.mrb[10].mxu1 }
 0x108   :  { %v557_v6 = vpop.f32.mrb[11].mxu0  ;;  %v320_v7 = vadd.f32 %v487_v33, %v304_v2  ;;  %v585_v8 = vpop.f32.mrb[11].mxu1  ;;  %607 = vmatmul.mubr.bf16.vlgmr.msra.gmra.mrb[12].mxu1 %v327_v1 }
 0x109   :  { %610 = vmatprep.mubr.msk.bf16.mxu1 %vm663_vm0, %v662_v0 }
 0x10a   :  { %v325_v9 = vmax.f32 %v320_v7, 0.0 }
 0x10c   :  { %v328_v10 = vpack.c.bf16 %v325_v9, %v325_v9 }
 0x110   :  { %611 = vmatmul.mubr.bf16.gmra.mrb[16].mxu1 %v328_v10 }
 0x1d3   :  { %v434_v12 = vpop.f32.mrb[12].mxu0 }
 0x1d4   :  { %v435_v13 = vadd.f32 %v488_v11, %v434_v12  ;;  %v604_v14 = vpop.f32.mrb[13].mxu0 }
 0x1d5   :  { %v437_v15 = vpop.f32.mrb[14].mxu0 }
 0x1d6   :  { %456 = vst [vmem:[%s872_s7] sm:$0xff] %v435_v13  ;;  %v438_v16 = vadd.f32 %v488_v11, %v437_v15  ;;  %v605_v17 = vpop.f32.mrb[15].mxu0 }
 0x1d8   :  { %457 = vst [vmem:[%s872_s7 + $0x8] sm:$0xff] %v438_v16 }
 0x1db   :  { %v442_v0 = vpop.f32.mrb[12].mxu1 }
 0x1dc   :  { %v443_v18 = vadd.f32 %v488_v11, %v442_v0  ;;  %v608_v19 = vpop.f32.mrb[13].mxu1 }
 0x1dd   :  { %v445_v20 = vpop.f32.mrb[14].mxu1 }
 0x1de   :  { %458 = vst [vmem:[%s872_s7 + $0x10] sm:$0xff] %v443_v18  ;;  %v446_v21 = vadd.f32 %v488_v11, %v445_v20  ;;  %v609_v22 = vpop.f32.mrb[15].mxu1 }
 0x1e0   :  { %459 = vst [vmem:[%s872_s7 + $0x18] sm:$0xff] %v446_v21 }
 0x1e3   :  { %v450_v23 = vpop.f32.mrb[16].mxu1 }
 0x1e4   :  { %v451_v24 = vadd.f32 %v488_v11, %v450_v23  ;;  %v612_v25 = vpop.f32.mrb[17].mxu1 }
 0x1e5   :  { %v453_v26 = vpop.f32.mrb[18].mxu1 }
 0x1e6   :  { %460 = vst [vmem:[%s872_s7 + $0x20] sm:$0xff] %v451_v24  ;;  %v613_v27 = vpop.f32.mrb[19].mxu1 }

</bundles_post_ra>
